<compile_context>
chip_gen: v5e
topology: v5e:2x2
jax: 0.10.0
libtpu: 0.0.40
codegen_flags: <defaults>
</compile_context>

<pallas_src>
import functools
import math

import jax
import jax.numpy as jnp
from jax import lax
from jax.experimental import pallas as pl
from jax.experimental.pallas import tpu as pltpu


# ---------------------------------------------------------------------------
# Helpers
# ---------------------------------------------------------------------------

def _sigmoid(x):
    # Single EUP tanh instead of exp + full-precision divide.
    return 0.5 * jnp.tanh(0.5 * x) + 0.5


def _leaky_relu(x, slope=0.01):
    return jnp.where(x > 0, x, slope * x)


def _mm(a, w):
    # Cast the activation to the weight dtype (bf16 when use_bf16) at the MXU
    # input; always accumulate in f32.
    return jnp.dot(a.astype(w.dtype), w, preferred_element_type=jnp.float32)


# ---------------------------------------------------------------------------
# Fused kernel: input projection + 2-layer LSTM recurrence + heads
# ---------------------------------------------------------------------------

def lstm_fused_kernel(x_ref, wih1_ref, b1_ref, whh1_ref, w2_ref, b2_ref,
                      w_fc1_ref, b_fc1_ref, w_fc2_ref, b_fc2_ref,
                      wd1_ref, bd1_ref, g1_ref, be1_ref,
                      wd2_ref, bd2_ref, g2_ref, be2_ref,
                      wd3_ref, bd3_ref, g3_ref, be3_ref,
                      predict_ref, domain_ref, *, seq_len, batch):
    """x_ref   : (T*B, Dpad) time-major input, lane-padded to 128
       wih1_ref: (Dpad, 4H)  layer-1 input weight (f32, padded rows are zero)
       b1_ref  : (1, 4H)     b_ih1 + b_hh1
       whh1_ref: (H, 4H)     layer-1 recurrent weight
       w2_ref  : (2H, 4H)    stacked [W_ih2 ; W_hh2]
       b2_ref  : (1, 4H)     b_ih2 + b_hh2
       Gate order matches PyTorch: i, f, g, o.
    """
    T, B = seq_len, batch
    G = whh1_ref.shape[1]
    H = G // 4

    # Weights resident once; bias pre-broadcast (hoisted: JAX does not CSE
    # broadcast_in_dim inside the loop).
    whh1 = whh1_ref[...]
    w2 = w2_ref[...]
    b2 = jnp.broadcast_to(b2_ref[...], (B, G)).astype(jnp.float32)

    # Layer-1 input projection for ALL timesteps in one MXU call (off the
    # serial chain), bias folded in.  Kept f32 for input fidelity.
    xp = (jnp.dot(x_ref[...], wih1_ref[...], preferred_element_type=jnp.float32)
          + jnp.broadcast_to(b1_ref[...], (T * B, G)))        # (T*B, 4H)

    def gates_to_hc(gates, c):
        i = _sigmoid(gates[:, 0 * H:1 * H])
        f = _sigmoid(gates[:, 1 * H:2 * H])
        g = jnp.tanh(gates[:, 2 * H:3 * H])
        o = _sigmoid(gates[:, 3 * H:4 * H])
        c_new = f * c + i * g
        return o * jnp.tanh(c_new), c_new

    h1 = c1 = h2 = c2 = jnp.zeros((B, H), jnp.float32)
    # T is static and small -> static unroll; gate math of step t overlaps the
    # MXU work of step t+1.  Per-step slices of xp are static (lane-aligned).
    for t in range(T):
        # layer 1: only the recurrent matmul (B,H)@(H,4H) is on the chain.
        gates1 = xp[t * B:(t + 1) * B, :] + _mm(h1, whh1)
        h1, c1 = gates_to_hc(gates1, c1)
        # layer 2: fused input/hidden matmul, K = 2H = 256 fills the MXU.
        gates2 = _mm(jnp.concatenate([h1, h2], axis=1), w2) + b2
        h2, c2 = gates_to_hc(gates2, c2)

    # --- predictor: fc2(LeakyReLU(fc1(h2))); fc2 columns padded lane-dense ---
    z = _leaky_relu(_mm(h2, w_fc1_ref[...]) + b_fc1_ref[...])
    predict_ref[...] = _mm(z, w_fc2_ref[...]) + b_fc2_ref[...]

    # --- discriminator (GradientReverseLayer == identity in forward) ---
    # BatchNorm1d in training mode: batch mean / biased batch variance, eps=1e-5.
    def bn_train(xv, gamma, beta, eps=1e-5):
        mu = jnp.mean(xv, axis=0, keepdims=True)
        var = jnp.mean((xv - mu) * (xv - mu), axis=0, keepdims=True)
        return (xv - mu) * lax.rsqrt(var + eps) * gamma + beta

    d = _leaky_relu(bn_train(_mm(h2, wd1_ref[...]) + bd1_ref[...],
                             g1_ref[...], be1_ref[...]))
    d = _leaky_relu(bn_train(_mm(d, wd2_ref[...]) + bd2_ref[...],
                             g2_ref[...], be2_ref[...]))
    d = _leaky_relu(bn_train(_mm(d, wd3_ref[...]) + bd3_ref[...],
                             g3_ref[...], be3_ref[...]))

    # Softmax(dim=1) — exact divide so rows sum to 1 at f32 precision.
    m = jnp.max(d, axis=1, keepdims=True)
    e = jnp.exp(d - m)
    domain_ref[...] = e / jnp.sum(e, axis=1, keepdims=True)


# ---------------------------------------------------------------------------
# Wrapper
# ---------------------------------------------------------------------------

_VMEM = pl.BlockSpec(memory_space=pltpu.MemorySpace.VMEM)


def lstm_forward(X, mask, packed):
    """Forward pass. `mask` is unused (matches the PyTorch forward)."""
    del mask
    x = X[:, :, :, 0].astype(jnp.float32)          # (B, T, D_in)
    B, T, D = x.shape
    Dp = packed["wih1"].shape[0]
    out_len = packed["out_len"]
    out_pad = packed["w_fc2"].shape[1]

    # Trivial XLA copy: time-major, lane-pad D_in -> 128, flatten to (T*B, Dp).
    x_tb = jnp.pad(jnp.transpose(x, (1, 0, 2)), ((0, 0), (0, 0), (0, Dp - D)))
    x_tb = x_tb.reshape(T * B, Dp)

    kernel = functools.partial(lstm_fused_kernel, seq_len=T, batch=B)
    predict_pad, domain = pl.pallas_call(
        kernel,
        out_shape=(jax.ShapeDtypeStruct((B, out_pad), jnp.float32),
                   jax.ShapeDtypeStruct((B, 2), jnp.float32)),
        in_specs=[_VMEM] * 22,
        out_specs=(_VMEM, _VMEM),
    )(x_tb,
      packed["wih1"], packed["b1"], packed["whh1"], packed["w2"], packed["b2"],
      packed["w_fc1"], packed["b_fc1"], packed["w_fc2"], packed["b_fc2"],
      packed["wd1"], packed["bd1"], packed["g1"], packed["be1"],
      packed["wd2"], packed["bd2"], packed["g2"], packed["be2"],
      packed["wd3"], packed["bd3"], packed["g3"], packed["be3"])

    return predict_pad[:, :out_len], domain


# ---------------------------------------------------------------------------
# Deterministic parameter init (PyTorch-style uniform(-1/sqrt(fan), 1/sqrt(fan)))
# and kernel-layout packing.
# ---------------------------------------------------------------------------

def init_params(key, input_size=20, hidden_size=128, out_len=50):
    H = hidden_size
    ks = list(jax.random.split(key, 18))

    def unif(k, shape, fan_in):
        bound = 1.0 / math.sqrt(fan_in)
        return jax.random.uniform(k, shape, jnp.float32, -bound, bound)

    return dict(
        # LSTM layer 1 (weights stored transposed: (in, 4H)); b = b_ih + b_hh
        wih1=unif(ks[0], (input_size, 4 * H), H),
        whh1=unif(ks[1], (H, 4 * H), H),
        b1=unif(ks[2], (1, 4 * H), H) + unif(ks[3], (1, 4 * H), H),
        # LSTM layer 2
        wih2=unif(ks[4], (H, 4 * H), H),
        whh2=unif(ks[5], (H, 4 * H), H),
        b2=unif(ks[6], (1, 4 * H), H) + unif(ks[7], (1, 4 * H), H),
        # predictor head
        w_fc1=unif(ks[8], (H, 512), H), b_fc1=unif(ks[9], (1, 512), H),
        w_fc2=unif(ks[10], (512, out_len), 512), b_fc2=unif(ks[11], (1, out_len), 512),
        # discriminator
        wd1=unif(ks[12], (H, 128), H), bd1=unif(ks[13], (1, 128), H),
        g1=jnp.ones((1, 128), jnp.float32), be1=jnp.zeros((1, 128), jnp.float32),
        wd2=unif(ks[14], (128, 64), 128), bd2=unif(ks[15], (1, 64), 128),
        g2=jnp.ones((1, 64), jnp.float32), be2=jnp.zeros((1, 64), jnp.float32),
        wd3=unif(ks[16], (64, 2), 64), bd3=unif(ks[17], (1, 2), 64),
        g3=jnp.ones((1, 2), jnp.float32), be3=jnp.zeros((1, 2), jnp.float32),
    )


def pack_params(p, use_bf16=True):
    """Repack raw params for the fused kernel.

    - layer-1 input weight rows zero-padded to a lane-dense 128 (f32)
    - layer-2 input/hidden weights stacked to one (2H, 4H) matrix (K=2H matmul)
    - fc2 columns zero-padded to a lane-dense multiple of 128 (wrapper slices)
    - recurrent/head MXU operands optionally bf16 (f32 accumulation in-kernel);
      set use_bf16=False for f32 parity with the PyTorch reference.
    """
    out_len = p["w_fc2"].shape[1]
    out_pad = -(-out_len // 128) * 128
    d_in = p["wih1"].shape[0]
    d_pad = -(-d_in // 128) * 128
    mdt = jnp.bfloat16 if use_bf16 else jnp.float32

    w_fc2 = jnp.pad(p["w_fc2"], ((0, 0), (0, out_pad - out_len)))
    b_fc2 = jnp.pad(p["b_fc2"], ((0, 0), (0, out_pad - out_len)))
    wih1 = jnp.pad(p["wih1"], ((0, d_pad - d_in), (0, 0)))   # kept f32

    return dict(
        out_len=out_len,
        # layer-1 projection (in-kernel, f32, off the serial chain)
        wih1=wih1, b1=p["b1"],
        # recurrence
        whh1=p["whh1"].astype(mdt),
        w2=jnp.concatenate([p["wih2"], p["whh2"]], axis=0).astype(mdt),
        b2=p["b2"],
        # predictor head
        w_fc1=p["w_fc1"].astype(mdt), b_fc1=p["b_fc1"],
        w_fc2=w_fc2.astype(mdt), b_fc2=b_fc2,
        # discriminator
        wd1=p["wd1"].astype(mdt), bd1=p["bd1"], g1=p["g1"], be1=p["be1"],
        wd2=p["wd2"].astype(mdt), bd2=p["bd2"], g2=p["g2"], be2=p["be2"],
        wd3=p["wd3"].astype(mdt), bd3=p["bd3"], g3=p["g3"], be3=p["be3"],
    )


# ---------------------------------------------------------------------------

if __name__ == "__main__":
    key = jax.random.PRNGKey(0)
    kx, kp = jax.random.split(key)

    B, T, D_in, C = 2, 8, 20, 3          # X[:, :, :, 0] -> (B, T, input_size=20)
    out_len = 50

    X = jax.random.normal(kx, (B, T, D_in, C), jnp.float32)
    mask = jnp.ones((B, T), jnp.float32)  # unused by the forward pass
    params = init_params(kp, input_size=D_in, hidden_size=128, out_len=out_len)
    packed = pack_params(params, use_bf16=True)

    fwd = jax.jit(functools.partial(lstm_forward, packed=packed))
    predict, domain = fwd(X, mask)
    jax.block_until_ready((predict, domain))

    assert predict.shape == (B, out_len) and predict.dtype == jnp.float32
    assert domain.shape == (B, 2) and domain.dtype == jnp.float32
    # domain rows are softmax outputs -> should sum to 1
    assert bool(jnp.allclose(jnp.sum(domain, axis=1), 1.0, atol=1e-5))
    print("KERNEL_OK")
</pallas_src>

<mosaic_0001>
module attributes {stable_mosaic.version = 11 : i64} {
  func.func @lstm_fused_kernel(%arg0: memref<16x128xf32, #tpu.memory_space<vmem>>, %arg1: memref<128x512xf32, #tpu.memory_space<vmem>>, %arg2: memref<1x512xf32, #tpu.memory_space<vmem>>, %arg3: memref<128x512xbf16, #tpu.memory_space<vmem>>, %arg4: memref<256x512xbf16, #tpu.memory_space<vmem>>, %arg5: memref<1x512xf32, #tpu.memory_space<vmem>>, %arg6: memref<128x512xbf16, #tpu.memory_space<vmem>>, %arg7: memref<1x512xf32, #tpu.memory_space<vmem>>, %arg8: memref<512x128xbf16, #tpu.memory_space<vmem>>, %arg9: memref<1x128xf32, #tpu.memory_space<vmem>>, %arg10: memref<128x128xbf16, #tpu.memory_space<vmem>>, %arg11: memref<1x128xf32, #tpu.memory_space<vmem>>, %arg12: memref<1x128xf32, #tpu.memory_space<vmem>>, %arg13: memref<1x128xf32, #tpu.memory_space<vmem>>, %arg14: memref<128x64xbf16, #tpu.memory_space<vmem>>, %arg15: memref<1x64xf32, #tpu.memory_space<vmem>>, %arg16: memref<1x64xf32, #tpu.memory_space<vmem>>, %arg17: memref<1x64xf32, #tpu.memory_space<vmem>>, %arg18: memref<64x2xbf16, #tpu.memory_space<vmem>>, %arg19: memref<1x2xf32, #tpu.memory_space<vmem>>, %arg20: memref<1x2xf32, #tpu.memory_space<vmem>>, %arg21: memref<1x2xf32, #tpu.memory_space<vmem>>, %arg22: memref<2x128xf32, #tpu.memory_space<vmem>>, %arg23: memref<2x2xf32, #tpu.memory_space<vmem>>) attributes {dimension_semantics = [], scalar_prefetch = 0 : i64, scratch_operands = 0 : i64, tpu.core_type = #tpu.core_type<tc>} {
    %c0 = arith.constant 0 : index
    %c0_0 = arith.constant 0 : index
    %0 = vector.load %arg3[%c0, %c0_0] : memref<128x512xbf16, #tpu.memory_space<vmem>>, vector<128x512xbf16>
    %c0_1 = arith.constant 0 : index
    %c0_2 = arith.constant 0 : index
    %1 = vector.load %arg4[%c0_1, %c0_2] : memref<256x512xbf16, #tpu.memory_space<vmem>>, vector<256x512xbf16>
    %c0_3 = arith.constant 0 : index
    %c0_4 = arith.constant 0 : index
    %2 = vector.load %arg5[%c0_3, %c0_4] : memref<1x512xf32, #tpu.memory_space<vmem>>, vector<1x512xf32>
    %3 = vector.shape_cast %2 : vector<1x512xf32> to vector<1x512xf32>
    %4 = vector.broadcast %3 : vector<1x512xf32> to vector<2x512xf32>
    %c0_5 = arith.constant 0 : index
    %c0_6 = arith.constant 0 : index
    %5 = vector.load %arg0[%c0_5, %c0_6] : memref<16x128xf32, #tpu.memory_space<vmem>>, vector<16x128xf32>
    %c0_7 = arith.constant 0 : index
    %c0_8 = arith.constant 0 : index
    %6 = vector.load %arg1[%c0_7, %c0_8] : memref<128x512xf32, #tpu.memory_space<vmem>>, vector<128x512xf32>
    %cst = arith.constant dense<0.000000e+00> : vector<16x512xf32>
    %7 = tpu.matmul %5, %6, %cst {dimension_numbers = #tpu.dot_dimension_numbers<[1], [0], [0], [1], [0, 0, 1, 1], [], []>} : vector<16x128xf32>, vector<128x512xf32>, vector<16x512xf32> -> vector<16x512xf32>
    %c0_9 = arith.constant 0 : index
    %c0_10 = arith.constant 0 : index
    %8 = vector.load %arg2[%c0_9, %c0_10] : memref<1x512xf32, #tpu.memory_space<vmem>>, vector<1x512xf32>
    %9 = vector.shape_cast %8 : vector<1x512xf32> to vector<1x512xf32>
    %10 = vector.broadcast %9 : vector<1x512xf32> to vector<16x512xf32>
    %11 = arith.addf %7, %10 : vector<16x512xf32>
    %cst_11 = arith.constant 0.000000e+00 : f32
    %12 = vector.broadcast %cst_11 : f32 to vector<2x128xf32>
    %13 = vector.extract_strided_slice %11 {offsets = [0, 0], sizes = [2, 512], strides = [1, 1]} : vector<16x512xf32> to vector<2x512xf32>
    %14 = arith.truncf %12 : vector<2x128xf32> to vector<2x128xbf16>
    %cst_12 = arith.constant dense<0.000000e+00> : vector<2x512xf32>
    %15 = tpu.matmul %14, %0, %cst_12 {dimension_numbers = #tpu.dot_dimension_numbers<[1], [0], [0], [1], [0, 0, 1, 1], [], []>} : vector<2x128xbf16>, vector<128x512xbf16>, vector<2x512xf32> -> vector<2x512xf32>
    %16 = arith.addf %13, %15 : vector<2x512xf32>
    %17 = vector.extract_strided_slice %16 {offsets = [0, 0], sizes = [2, 128], strides = [1, 1]} : vector<2x512xf32> to vector<2x128xf32>
    %cst_13 = arith.constant 5.000000e-01 : f32
    %18 = vector.broadcast %cst_13 : f32 to vector<2x128xf32>
    %19 = arith.mulf %18, %17 : vector<2x128xf32>
    %20 = math.tanh %19 : vector<2x128xf32>
    %cst_14 = arith.constant 5.000000e-01 : f32
    %21 = vector.broadcast %cst_14 : f32 to vector<2x128xf32>
    %22 = arith.mulf %21, %20 : vector<2x128xf32>
    %cst_15 = arith.constant 5.000000e-01 : f32
    %23 = vector.broadcast %cst_15 : f32 to vector<2x128xf32>
    %24 = arith.addf %22, %23 : vector<2x128xf32>
    %25 = vector.extract_strided_slice %16 {offsets = [0, 128], sizes = [2, 128], strides = [1, 1]} : vector<2x512xf32> to vector<2x128xf32>
    %cst_16 = arith.constant 5.000000e-01 : f32
    %26 = vector.broadcast %cst_16 : f32 to vector<2x128xf32>
    %27 = arith.mulf %26, %25 : vector<2x128xf32>
    %28 = math.tanh %27 : vector<2x128xf32>
    %cst_17 = arith.constant 5.000000e-01 : f32
    %29 = vector.broadcast %cst_17 : f32 to vector<2x128xf32>
    %30 = arith.mulf %29, %28 : vector<2x128xf32>
    %cst_18 = arith.constant 5.000000e-01 : f32
    %31 = vector.broadcast %cst_18 : f32 to vector<2x128xf32>
    %32 = arith.addf %30, %31 : vector<2x128xf32>
    %33 = vector.extract_strided_slice %16 {offsets = [0, 256], sizes = [2, 128], strides = [1, 1]} : vector<2x512xf32> to vector<2x128xf32>
    %34 = math.tanh %33 : vector<2x128xf32>
    %35 = vector.extract_strided_slice %16 {offsets = [0, 384], sizes = [2, 128], strides = [1, 1]} : vector<2x512xf32> to vector<2x128xf32>
    %cst_19 = arith.constant 5.000000e-01 : f32
    %36 = vector.broadcast %cst_19 : f32 to vector<2x128xf32>
    %37 = arith.mulf %36, %35 : vector<2x128xf32>
    %38 = math.tanh %37 : vector<2x128xf32>
    %cst_20 = arith.constant 5.000000e-01 : f32
    %39 = vector.broadcast %cst_20 : f32 to vector<2x128xf32>
    %40 = arith.mulf %39, %38 : vector<2x128xf32>
    %cst_21 = arith.constant 5.000000e-01 : f32
    %41 = vector.broadcast %cst_21 : f32 to vector<2x128xf32>
    %42 = arith.addf %40, %41 : vector<2x128xf32>
    %43 = arith.mulf %32, %12 : vector<2x128xf32>
    %44 = arith.mulf %24, %34 : vector<2x128xf32>
    %45 = arith.addf %43, %44 : vector<2x128xf32>
    %46 = math.tanh %45 : vector<2x128xf32>
    %47 = arith.mulf %42, %46 : vector<2x128xf32>
    %48 = tpu.concatenate %47, %12 in 1 : vector<2x128xf32>, vector<2x128xf32> -> vector<2x256xf32>
    %49 = arith.truncf %48 : vector<2x256xf32> to vector<2x256xbf16>
    %cst_22 = arith.constant dense<0.000000e+00> : vector<2x512xf32>
    %50 = tpu.matmul %49, %1, %cst_22 {dimension_numbers = #tpu.dot_dimension_numbers<[1], [0], [0], [1], [0, 0, 1, 1], [], []>} : vector<2x256xbf16>, vector<256x512xbf16>, vector<2x512xf32> -> vector<2x512xf32>
    %51 = arith.addf %50, %4 : vector<2x512xf32>
    %52 = vector.extract_strided_slice %51 {offsets = [0, 0], sizes = [2, 128], strides = [1, 1]} : vector<2x512xf32> to vector<2x128xf32>
    %cst_23 = arith.constant 5.000000e-01 : f32
    %53 = vector.broadcast %cst_23 : f32 to vector<2x128xf32>
    %54 = arith.mulf %53, %52 : vector<2x128xf32>
    %55 = math.tanh %54 : vector<2x128xf32>
    %cst_24 = arith.constant 5.000000e-01 : f32
    %56 = vector.broadcast %cst_24 : f32 to vector<2x128xf32>
    %57 = arith.mulf %56, %55 : vector<2x128xf32>
    %cst_25 = arith.constant 5.000000e-01 : f32
    %58 = vector.broadcast %cst_25 : f32 to vector<2x128xf32>
    %59 = arith.addf %57, %58 : vector<2x128xf32>
    %60 = vector.extract_strided_slice %51 {offsets = [0, 128], sizes = [2, 128], strides = [1, 1]} : vector<2x512xf32> to vector<2x128xf32>
    %cst_26 = arith.constant 5.000000e-01 : f32
    %61 = vector.broadcast %cst_26 : f32 to vector<2x128xf32>
    %62 = arith.mulf %61, %60 : vector<2x128xf32>
    %63 = math.tanh %62 : vector<2x128xf32>
    %cst_27 = arith.constant 5.000000e-01 : f32
    %64 = vector.broadcast %cst_27 : f32 to vector<2x128xf32>
    %65 = arith.mulf %64, %63 : vector<2x128xf32>
    %cst_28 = arith.constant 5.000000e-01 : f32
    %66 = vector.broadcast %cst_28 : f32 to vector<2x128xf32>
    %67 = arith.addf %65, %66 : vector<2x128xf32>
    %68 = vector.extract_strided_slice %51 {offsets = [0, 256], sizes = [2, 128], strides = [1, 1]} : vector<2x512xf32> to vector<2x128xf32>
    %69 = math.tanh %68 : vector<2x128xf32>
    %70 = vector.extract_strided_slice %51 {offsets = [0, 384], sizes = [2, 128], strides = [1, 1]} : vector<2x512xf32> to vector<2x128xf32>
    %cst_29 = arith.constant 5.000000e-01 : f32
    %71 = vector.broadcast %cst_29 : f32 to vector<2x128xf32>
    %72 = arith.mulf %71, %70 : vector<2x128xf32>
    %73 = math.tanh %72 : vector<2x128xf32>
    %cst_30 = arith.constant 5.000000e-01 : f32
    %74 = vector.broadcast %cst_30 : f32 to vector<2x128xf32>
    %75 = arith.mulf %74, %73 : vector<2x128xf32>
    %cst_31 = arith.constant 5.000000e-01 : f32
    %76 = vector.broadcast %cst_31 : f32 to vector<2x128xf32>
    %77 = arith.addf %75, %76 : vector<2x128xf32>
    %78 = arith.mulf %67, %12 : vector<2x128xf32>
    %79 = arith.mulf %59, %69 : vector<2x128xf32>
    %80 = arith.addf %78, %79 : vector<2x128xf32>
    %81 = math.tanh %80 : vector<2x128xf32>
    %82 = arith.mulf %77, %81 : vector<2x128xf32>
    %83 = vector.extract_strided_slice %11 {offsets = [2, 0], sizes = [2, 512], strides = [1, 1]} : vector<16x512xf32> to vector<2x512xf32>
    %84 = arith.truncf %47 : vector<2x128xf32> to vector<2x128xbf16>
    %cst_32 = arith.constant dense<0.000000e+00> : vector<2x512xf32>
    %85 = tpu.matmul %84, %0, %cst_32 {dimension_numbers = #tpu.dot_dimension_numbers<[1], [0], [0], [1], [0, 0, 1, 1], [], []>} : vector<2x128xbf16>, vector<128x512xbf16>, vector<2x512xf32> -> vector<2x512xf32>
    %86 = arith.addf %83, %85 : vector<2x512xf32>
    %87 = vector.extract_strided_slice %86 {offsets = [0, 0], sizes = [2, 128], strides = [1, 1]} : vector<2x512xf32> to vector<2x128xf32>
    %cst_33 = arith.constant 5.000000e-01 : f32
    %88 = vector.broadcast %cst_33 : f32 to vector<2x128xf32>
    %89 = arith.mulf %88, %87 : vector<2x128xf32>
    %90 = math.tanh %89 : vector<2x128xf32>
    %cst_34 = arith.constant 5.000000e-01 : f32
    %91 = vector.broadcast %cst_34 : f32 to vector<2x128xf32>
    %92 = arith.mulf %91, %90 : vector<2x128xf32>
    %cst_35 = arith.constant 5.000000e-01 : f32
    %93 = vector.broadcast %cst_35 : f32 to vector<2x128xf32>
    %94 = arith.addf %92, %93 : vector<2x128xf32>
    %95 = vector.extract_strided_slice %86 {offsets = [0, 128], sizes = [2, 128], strides = [1, 1]} : vector<2x512xf32> to vector<2x128xf32>
    %cst_36 = arith.constant 5.000000e-01 : f32
    %96 = vector.broadcast %cst_36 : f32 to vector<2x128xf32>
    %97 = arith.mulf %96, %95 : vector<2x128xf32>
    %98 = math.tanh %97 : vector<2x128xf32>
    %cst_37 = arith.constant 5.000000e-01 : f32
    %99 = vector.broadcast %cst_37 : f32 to vector<2x128xf32>
    %100 = arith.mulf %99, %98 : vector<2x128xf32>
    %cst_38 = arith.constant 5.000000e-01 : f32
    %101 = vector.broadcast %cst_38 : f32 to vector<2x128xf32>
    %102 = arith.addf %100, %101 : vector<2x128xf32>
    %103 = vector.extract_strided_slice %86 {offsets = [0, 256], sizes = [2, 128], strides = [1, 1]} : vector<2x512xf32> to vector<2x128xf32>
    %104 = math.tanh %103 : vector<2x128xf32>
    %105 = vector.extract_strided_slice %86 {offsets = [0, 384], sizes = [2, 128], strides = [1, 1]} : vector<2x512xf32> to vector<2x128xf32>
    %cst_39 = arith.constant 5.000000e-01 : f32
    %106 = vector.broadcast %cst_39 : f32 to vector<2x128xf32>
    %107 = arith.mulf %106, %105 : vector<2x128xf32>
    %108 = math.tanh %107 : vector<2x128xf32>
    %cst_40 = arith.constant 5.000000e-01 : f32
    %109 = vector.broadcast %cst_40 : f32 to vector<2x128xf32>
    %110 = arith.mulf %109, %108 : vector<2x128xf32>
    %cst_41 = arith.constant 5.000000e-01 : f32
    %111 = vector.broadcast %cst_41 : f32 to vector<2x128xf32>
    %112 = arith.addf %110, %111 : vector<2x128xf32>
    %113 = arith.mulf %102, %45 : vector<2x128xf32>
    %114 = arith.mulf %94, %104 : vector<2x128xf32>
    %115 = arith.addf %113, %114 : vector<2x128xf32>
    %116 = math.tanh %115 : vector<2x128xf32>
    %117 = arith.mulf %112, %116 : vector<2x128xf32>
    %118 = tpu.concatenate %117, %82 in 1 : vector<2x128xf32>, vector<2x128xf32> -> vector<2x256xf32>
    %119 = arith.truncf %118 : vector<2x256xf32> to vector<2x256xbf16>
    %cst_42 = arith.constant dense<0.000000e+00> : vector<2x512xf32>
    %120 = tpu.matmul %119, %1, %cst_42 {dimension_numbers = #tpu.dot_dimension_numbers<[1], [0], [0], [1], [0, 0, 1, 1], [], []>} : vector<2x256xbf16>, vector<256x512xbf16>, vector<2x512xf32> -> vector<2x512xf32>
    %121 = arith.addf %120, %4 : vector<2x512xf32>
    %122 = vector.extract_strided_slice %121 {offsets = [0, 0], sizes = [2, 128], strides = [1, 1]} : vector<2x512xf32> to vector<2x128xf32>
    %cst_43 = arith.constant 5.000000e-01 : f32
    %123 = vector.broadcast %cst_43 : f32 to vector<2x128xf32>
    %124 = arith.mulf %123, %122 : vector<2x128xf32>
    %125 = math.tanh %124 : vector<2x128xf32>
    %cst_44 = arith.constant 5.000000e-01 : f32
    %126 = vector.broadcast %cst_44 : f32 to vector<2x128xf32>
    %127 = arith.mulf %126, %125 : vector<2x128xf32>
    %cst_45 = arith.constant 5.000000e-01 : f32
    %128 = vector.broadcast %cst_45 : f32 to vector<2x128xf32>
    %129 = arith.addf %127, %128 : vector<2x128xf32>
    %130 = vector.extract_strided_slice %121 {offsets = [0, 128], sizes = [2, 128], strides = [1, 1]} : vector<2x512xf32> to vector<2x128xf32>
    %cst_46 = arith.constant 5.000000e-01 : f32
    %131 = vector.broadcast %cst_46 : f32 to vector<2x128xf32>
    %132 = arith.mulf %131, %130 : vector<2x128xf32>
    %133 = math.tanh %132 : vector<2x128xf32>
    %cst_47 = arith.constant 5.000000e-01 : f32
    %134 = vector.broadcast %cst_47 : f32 to vector<2x128xf32>
    %135 = arith.mulf %134, %133 : vector<2x128xf32>
    %cst_48 = arith.constant 5.000000e-01 : f32
    %136 = vector.broadcast %cst_48 : f32 to vector<2x128xf32>
    %137 = arith.addf %135, %136 : vector<2x128xf32>
    %138 = vector.extract_strided_slice %121 {offsets = [0, 256], sizes = [2, 128], strides = [1, 1]} : vector<2x512xf32> to vector<2x128xf32>
    %139 = math.tanh %138 : vector<2x128xf32>
    %140 = vector.extract_strided_slice %121 {offsets = [0, 384], sizes = [2, 128], strides = [1, 1]} : vector<2x512xf32> to vector<2x128xf32>
    %cst_49 = arith.constant 5.000000e-01 : f32
    %141 = vector.broadcast %cst_49 : f32 to vector<2x128xf32>
    %142 = arith.mulf %141, %140 : vector<2x128xf32>
    %143 = math.tanh %142 : vector<2x128xf32>
    %cst_50 = arith.constant 5.000000e-01 : f32
    %144 = vector.broadcast %cst_50 : f32 to vector<2x128xf32>
    %145 = arith.mulf %144, %143 : vector<2x128xf32>
    %cst_51 = arith.constant 5.000000e-01 : f32
    %146 = vector.broadcast %cst_51 : f32 to vector<2x128xf32>
    %147 = arith.addf %145, %146 : vector<2x128xf32>
    %148 = arith.mulf %137, %80 : vector<2x128xf32>
    %149 = arith.mulf %129, %139 : vector<2x128xf32>
    %150 = arith.addf %148, %149 : vector<2x128xf32>
    %151 = math.tanh %150 : vector<2x128xf32>
    %152 = arith.mulf %147, %151 : vector<2x128xf32>
    %153 = vector.extract_strided_slice %11 {offsets = [4, 0], sizes = [2, 512], strides = [1, 1]} : vector<16x512xf32> to vector<2x512xf32>
    %154 = arith.truncf %117 : vector<2x128xf32> to vector<2x128xbf16>
    %cst_52 = arith.constant dense<0.000000e+00> : vector<2x512xf32>
    %155 = tpu.matmul %154, %0, %cst_52 {dimension_numbers = #tpu.dot_dimension_numbers<[1], [0], [0], [1], [0, 0, 1, 1], [], []>} : vector<2x128xbf16>, vector<128x512xbf16>, vector<2x512xf32> -> vector<2x512xf32>
    %156 = arith.addf %153, %155 : vector<2x512xf32>
    %157 = vector.extract_strided_slice %156 {offsets = [0, 0], sizes = [2, 128], strides = [1, 1]} : vector<2x512xf32> to vector<2x128xf32>
    %cst_53 = arith.constant 5.000000e-01 : f32
    %158 = vector.broadcast %cst_53 : f32 to vector<2x128xf32>
    %159 = arith.mulf %158, %157 : vector<2x128xf32>
    %160 = math.tanh %159 : vector<2x128xf32>
    %cst_54 = arith.constant 5.000000e-01 : f32
    %161 = vector.broadcast %cst_54 : f32 to vector<2x128xf32>
    %162 = arith.mulf %161, %160 : vector<2x128xf32>
    %cst_55 = arith.constant 5.000000e-01 : f32
    %163 = vector.broadcast %cst_55 : f32 to vector<2x128xf32>
    %164 = arith.addf %162, %163 : vector<2x128xf32>
    %165 = vector.extract_strided_slice %156 {offsets = [0, 128], sizes = [2, 128], strides = [1, 1]} : vector<2x512xf32> to vector<2x128xf32>
    %cst_56 = arith.constant 5.000000e-01 : f32
    %166 = vector.broadcast %cst_56 : f32 to vector<2x128xf32>
    %167 = arith.mulf %166, %165 : vector<2x128xf32>
    %168 = math.tanh %167 : vector<2x128xf32>
    %cst_57 = arith.constant 5.000000e-01 : f32
    %169 = vector.broadcast %cst_57 : f32 to vector<2x128xf32>
    %170 = arith.mulf %169, %168 : vector<2x128xf32>
    %cst_58 = arith.constant 5.000000e-01 : f32
    %171 = vector.broadcast %cst_58 : f32 to vector<2x128xf32>
    %172 = arith.addf %170, %171 : vector<2x128xf32>
    %173 = vector.extract_strided_slice %156 {offsets = [0, 256], sizes = [2, 128], strides = [1, 1]} : vector<2x512xf32> to vector<2x128xf32>
    %174 = math.tanh %173 : vector<2x128xf32>
    %175 = vector.extract_strided_slice %156 {offsets = [0, 384], sizes = [2, 128], strides = [1, 1]} : vector<2x512xf32> to vector<2x128xf32>
    %cst_59 = arith.constant 5.000000e-01 : f32
    %176 = vector.broadcast %cst_59 : f32 to vector<2x128xf32>
    %177 = arith.mulf %176, %175 : vector<2x128xf32>
    %178 = math.tanh %177 : vector<2x128xf32>
    %cst_60 = arith.constant 5.000000e-01 : f32
    %179 = vector.broadcast %cst_60 : f32 to vector<2x128xf32>
    %180 = arith.mulf %179, %178 : vector<2x128xf32>
    %cst_61 = arith.constant 5.000000e-01 : f32
    %181 = vector.broadcast %cst_61 : f32 to vector<2x128xf32>
    %182 = arith.addf %180, %181 : vector<2x128xf32>
    %183 = arith.mulf %172, %115 : vector<2x128xf32>
    %184 = arith.mulf %164, %174 : vector<2x128xf32>
    %185 = arith.addf %183, %184 : vector<2x128xf32>
    %186 = math.tanh %185 : vector<2x128xf32>
    %187 = arith.mulf %182, %186 : vector<2x128xf32>
    %188 = tpu.concatenate %187, %152 in 1 : vector<2x128xf32>, vector<2x128xf32> -> vector<2x256xf32>
    %189 = arith.truncf %188 : vector<2x256xf32> to vector<2x256xbf16>
    %cst_62 = arith.constant dense<0.000000e+00> : vector<2x512xf32>
    %190 = tpu.matmul %189, %1, %cst_62 {dimension_numbers = #tpu.dot_dimension_numbers<[1], [0], [0], [1], [0, 0, 1, 1], [], []>} : vector<2x256xbf16>, vector<256x512xbf16>, vector<2x512xf32> -> vector<2x512xf32>
    %191 = arith.addf %190, %4 : vector<2x512xf32>
    %192 = vector.extract_strided_slice %191 {offsets = [0, 0], sizes = [2, 128], strides = [1, 1]} : vector<2x512xf32> to vector<2x128xf32>
    %cst_63 = arith.constant 5.000000e-01 : f32
    %193 = vector.broadcast %cst_63 : f32 to vector<2x128xf32>
    %194 = arith.mulf %193, %192 : vector<2x128xf32>
    %195 = math.tanh %194 : vector<2x128xf32>
    %cst_64 = arith.constant 5.000000e-01 : f32
    %196 = vector.broadcast %cst_64 : f32 to vector<2x128xf32>
    %197 = arith.mulf %196, %195 : vector<2x128xf32>
    %cst_65 = arith.constant 5.000000e-01 : f32
    %198 = vector.broadcast %cst_65 : f32 to vector<2x128xf32>
    %199 = arith.addf %197, %198 : vector<2x128xf32>
    %200 = vector.extract_strided_slice %191 {offsets = [0, 128], sizes = [2, 128], strides = [1, 1]} : vector<2x512xf32> to vector<2x128xf32>
    %cst_66 = arith.constant 5.000000e-01 : f32
    %201 = vector.broadcast %cst_66 : f32 to vector<2x128xf32>
    %202 = arith.mulf %201, %200 : vector<2x128xf32>
    %203 = math.tanh %202 : vector<2x128xf32>
    %cst_67 = arith.constant 5.000000e-01 : f32
    %204 = vector.broadcast %cst_67 : f32 to vector<2x128xf32>
    %205 = arith.mulf %204, %203 : vector<2x128xf32>
    %cst_68 = arith.constant 5.000000e-01 : f32
    %206 = vector.broadcast %cst_68 : f32 to vector<2x128xf32>
    %207 = arith.addf %205, %206 : vector<2x128xf32>
    %208 = vector.extract_strided_slice %191 {offsets = [0, 256], sizes = [2, 128], strides = [1, 1]} : vector<2x512xf32> to vector<2x128xf32>
    %209 = math.tanh %208 : vector<2x128xf32>
    %210 = vector.extract_strided_slice %191 {offsets = [0, 384], sizes = [2, 128], strides = [1, 1]} : vector<2x512xf32> to vector<2x128xf32>
    %cst_69 = arith.constant 5.000000e-01 : f32
    %211 = vector.broadcast %cst_69 : f32 to vector<2x128xf32>
    %212 = arith.mulf %211, %210 : vector<2x128xf32>
    %213 = math.tanh %212 : vector<2x128xf32>
    %cst_70 = arith.constant 5.000000e-01 : f32
    %214 = vector.broadcast %cst_70 : f32 to vector<2x128xf32>
    %215 = arith.mulf %214, %213 : vector<2x128xf32>
    %cst_71 = arith.constant 5.000000e-01 : f32
    %216 = vector.broadcast %cst_71 : f32 to vector<2x128xf32>
    %217 = arith.addf %215, %216 : vector<2x128xf32>
    %218 = arith.mulf %207, %150 : vector<2x128xf32>
    %219 = arith.mulf %199, %209 : vector<2x128xf32>
    %220 = arith.addf %218, %219 : vector<2x128xf32>
    %221 = math.tanh %220 : vector<2x128xf32>
    %222 = arith.mulf %217, %221 : vector<2x128xf32>
    %223 = vector.extract_strided_slice %11 {offsets = [6, 0], sizes = [2, 512], strides = [1, 1]} : vector<16x512xf32> to vector<2x512xf32>
    %224 = arith.truncf %187 : vector<2x128xf32> to vector<2x128xbf16>
    %cst_72 = arith.constant dense<0.000000e+00> : vector<2x512xf32>
    %225 = tpu.matmul %224, %0, %cst_72 {dimension_numbers = #tpu.dot_dimension_numbers<[1], [0], [0], [1], [0, 0, 1, 1], [], []>} : vector<2x128xbf16>, vector<128x512xbf16>, vector<2x512xf32> -> vector<2x512xf32>
    %226 = arith.addf %223, %225 : vector<2x512xf32>
    %227 = vector.extract_strided_slice %226 {offsets = [0, 0], sizes = [2, 128], strides = [1, 1]} : vector<2x512xf32> to vector<2x128xf32>
    %cst_73 = arith.constant 5.000000e-01 : f32
    %228 = vector.broadcast %cst_73 : f32 to vector<2x128xf32>
    %229 = arith.mulf %228, %227 : vector<2x128xf32>
    %230 = math.tanh %229 : vector<2x128xf32>
    %cst_74 = arith.constant 5.000000e-01 : f32
    %231 = vector.broadcast %cst_74 : f32 to vector<2x128xf32>
    %232 = arith.mulf %231, %230 : vector<2x128xf32>
    %cst_75 = arith.constant 5.000000e-01 : f32
    %233 = vector.broadcast %cst_75 : f32 to vector<2x128xf32>
    %234 = arith.addf %232, %233 : vector<2x128xf32>
    %235 = vector.extract_strided_slice %226 {offsets = [0, 128], sizes = [2, 128], strides = [1, 1]} : vector<2x512xf32> to vector<2x128xf32>
    %cst_76 = arith.constant 5.000000e-01 : f32
    %236 = vector.broadcast %cst_76 : f32 to vector<2x128xf32>
    %237 = arith.mulf %236, %235 : vector<2x128xf32>
    %238 = math.tanh %237 : vector<2x128xf32>
    %cst_77 = arith.constant 5.000000e-01 : f32
    %239 = vector.broadcast %cst_77 : f32 to vector<2x128xf32>
    %240 = arith.mulf %239, %238 : vector<2x128xf32>
    %cst_78 = arith.constant 5.000000e-01 : f32
    %241 = vector.broadcast %cst_78 : f32 to vector<2x128xf32>
    %242 = arith.addf %240, %241 : vector<2x128xf32>
    %243 = vector.extract_strided_slice %226 {offsets = [0, 256], sizes = [2, 128], strides = [1, 1]} : vector<2x512xf32> to vector<2x128xf32>
    %244 = math.tanh %243 : vector<2x128xf32>
    %245 = vector.extract_strided_slice %226 {offsets = [0, 384], sizes = [2, 128], strides = [1, 1]} : vector<2x512xf32> to vector<2x128xf32>
    %cst_79 = arith.constant 5.000000e-01 : f32
    %246 = vector.broadcast %cst_79 : f32 to vector<2x128xf32>
    %247 = arith.mulf %246, %245 : vector<2x128xf32>
    %248 = math.tanh %247 : vector<2x128xf32>
    %cst_80 = arith.constant 5.000000e-01 : f32
    %249 = vector.broadcast %cst_80 : f32 to vector<2x128xf32>
    %250 = arith.mulf %249, %248 : vector<2x128xf32>
    %cst_81 = arith.constant 5.000000e-01 : f32
    %251 = vector.broadcast %cst_81 : f32 to vector<2x128xf32>
    %252 = arith.addf %250, %251 : vector<2x128xf32>
    %253 = arith.mulf %242, %185 : vector<2x128xf32>
    %254 = arith.mulf %234, %244 : vector<2x128xf32>
    %255 = arith.addf %253, %254 : vector<2x128xf32>
    %256 = math.tanh %255 : vector<2x128xf32>
    %257 = arith.mulf %252, %256 : vector<2x128xf32>
    %258 = tpu.concatenate %257, %222 in 1 : vector<2x128xf32>, vector<2x128xf32> -> vector<2x256xf32>
    %259 = arith.truncf %258 : vector<2x256xf32> to vector<2x256xbf16>
    %cst_82 = arith.constant dense<0.000000e+00> : vector<2x512xf32>
    %260 = tpu.matmul %259, %1, %cst_82 {dimension_numbers = #tpu.dot_dimension_numbers<[1], [0], [0], [1], [0, 0, 1, 1], [], []>} : vector<2x256xbf16>, vector<256x512xbf16>, vector<2x512xf32> -> vector<2x512xf32>
    %261 = arith.addf %260, %4 : vector<2x512xf32>
    %262 = vector.extract_strided_slice %261 {offsets = [0, 0], sizes = [2, 128], strides = [1, 1]} : vector<2x512xf32> to vector<2x128xf32>
    %cst_83 = arith.constant 5.000000e-01 : f32
    %263 = vector.broadcast %cst_83 : f32 to vector<2x128xf32>
    %264 = arith.mulf %263, %262 : vector<2x128xf32>
    %265 = math.tanh %264 : vector<2x128xf32>
    %cst_84 = arith.constant 5.000000e-01 : f32
    %266 = vector.broadcast %cst_84 : f32 to vector<2x128xf32>
    %267 = arith.mulf %266, %265 : vector<2x128xf32>
    %cst_85 = arith.constant 5.000000e-01 : f32
    %268 = vector.broadcast %cst_85 : f32 to vector<2x128xf32>
    %269 = arith.addf %267, %268 : vector<2x128xf32>
    %270 = vector.extract_strided_slice %261 {offsets = [0, 128], sizes = [2, 128], strides = [1, 1]} : vector<2x512xf32> to vector<2x128xf32>
    %cst_86 = arith.constant 5.000000e-01 : f32
    %271 = vector.broadcast %cst_86 : f32 to vector<2x128xf32>
    %272 = arith.mulf %271, %270 : vector<2x128xf32>
    %273 = math.tanh %272 : vector<2x128xf32>
    %cst_87 = arith.constant 5.000000e-01 : f32
    %274 = vector.broadcast %cst_87 : f32 to vector<2x128xf32>
    %275 = arith.mulf %274, %273 : vector<2x128xf32>
    %cst_88 = arith.constant 5.000000e-01 : f32
    %276 = vector.broadcast %cst_88 : f32 to vector<2x128xf32>
    %277 = arith.addf %275, %276 : vector<2x128xf32>
    %278 = vector.extract_strided_slice %261 {offsets = [0, 256], sizes = [2, 128], strides = [1, 1]} : vector<2x512xf32> to vector<2x128xf32>
    %279 = math.tanh %278 : vector<2x128xf32>
    %280 = vector.extract_strided_slice %261 {offsets = [0, 384], sizes = [2, 128], strides = [1, 1]} : vector<2x512xf32> to vector<2x128xf32>
    %cst_89 = arith.constant 5.000000e-01 : f32
    %281 = vector.broadcast %cst_89 : f32 to vector<2x128xf32>
    %282 = arith.mulf %281, %280 : vector<2x128xf32>
    %283 = math.tanh %282 : vector<2x128xf32>
    %cst_90 = arith.constant 5.000000e-01 : f32
    %284 = vector.broadcast %cst_90 : f32 to vector<2x128xf32>
    %285 = arith.mulf %284, %283 : vector<2x128xf32>
    %cst_91 = arith.constant 5.000000e-01 : f32
    %286 = vector.broadcast %cst_91 : f32 to vector<2x128xf32>
    %287 = arith.addf %285, %286 : vector<2x128xf32>
    %288 = arith.mulf %277, %220 : vector<2x128xf32>
    %289 = arith.mulf %269, %279 : vector<2x128xf32>
    %290 = arith.addf %288, %289 : vector<2x128xf32>
    %291 = math.tanh %290 : vector<2x128xf32>
    %292 = arith.mulf %287, %291 : vector<2x128xf32>
    %293 = vector.extract_strided_slice %11 {offsets = [8, 0], sizes = [2, 512], strides = [1, 1]} : vector<16x512xf32> to vector<2x512xf32>
    %294 = arith.truncf %257 : vector<2x128xf32> to vector<2x128xbf16>
    %cst_92 = arith.constant dense<0.000000e+00> : vector<2x512xf32>
    %295 = tpu.matmul %294, %0, %cst_92 {dimension_numbers = #tpu.dot_dimension_numbers<[1], [0], [0], [1], [0, 0, 1, 1], [], []>} : vector<2x128xbf16>, vector<128x512xbf16>, vector<2x512xf32> -> vector<2x512xf32>
    %296 = arith.addf %293, %295 : vector<2x512xf32>
    %297 = vector.extract_strided_slice %296 {offsets = [0, 0], sizes = [2, 128], strides = [1, 1]} : vector<2x512xf32> to vector<2x128xf32>
    %cst_93 = arith.constant 5.000000e-01 : f32
    %298 = vector.broadcast %cst_93 : f32 to vector<2x128xf32>
    %299 = arith.mulf %298, %297 : vector<2x128xf32>
    %300 = math.tanh %299 : vector<2x128xf32>
    %cst_94 = arith.constant 5.000000e-01 : f32
    %301 = vector.broadcast %cst_94 : f32 to vector<2x128xf32>
    %302 = arith.mulf %301, %300 : vector<2x128xf32>
    %cst_95 = arith.constant 5.000000e-01 : f32
    %303 = vector.broadcast %cst_95 : f32 to vector<2x128xf32>
    %304 = arith.addf %302, %303 : vector<2x128xf32>
    %305 = vector.extract_strided_slice %296 {offsets = [0, 128], sizes = [2, 128], strides = [1, 1]} : vector<2x512xf32> to vector<2x128xf32>
    %cst_96 = arith.constant 5.000000e-01 : f32
    %306 = vector.broadcast %cst_96 : f32 to vector<2x128xf32>
    %307 = arith.mulf %306, %305 : vector<2x128xf32>
    %308 = math.tanh %307 : vector<2x128xf32>
    %cst_97 = arith.constant 5.000000e-01 : f32
    %309 = vector.broadcast %cst_97 : f32 to vector<2x128xf32>
    %310 = arith.mulf %309, %308 : vector<2x128xf32>
    %cst_98 = arith.constant 5.000000e-01 : f32
    %311 = vector.broadcast %cst_98 : f32 to vector<2x128xf32>
    %312 = arith.addf %310, %311 : vector<2x128xf32>
    %313 = vector.extract_strided_slice %296 {offsets = [0, 256], sizes = [2, 128], strides = [1, 1]} : vector<2x512xf32> to vector<2x128xf32>
    %314 = math.tanh %313 : vector<2x128xf32>
    %315 = vector.extract_strided_slice %296 {offsets = [0, 384], sizes = [2, 128], strides = [1, 1]} : vector<2x512xf32> to vector<2x128xf32>
    %cst_99 = arith.constant 5.000000e-01 : f32
    %316 = vector.broadcast %cst_99 : f32 to vector<2x128xf32>
    %317 = arith.mulf %316, %315 : vector<2x128xf32>
    %318 = math.tanh %317 : vector<2x128xf32>
    %cst_100 = arith.constant 5.000000e-01 : f32
    %319 = vector.broadcast %cst_100 : f32 to vector<2x128xf32>
    %320 = arith.mulf %319, %318 : vector<2x128xf32>
    %cst_101 = arith.constant 5.000000e-01 : f32
    %321 = vector.broadcast %cst_101 : f32 to vector<2x128xf32>
    %322 = arith.addf %320, %321 : vector<2x128xf32>
    %323 = arith.mulf %312, %255 : vector<2x128xf32>
    %324 = arith.mulf %304, %314 : vector<2x128xf32>
    %325 = arith.addf %323, %324 : vector<2x128xf32>
    %326 = math.tanh %325 : vector<2x128xf32>
    %327 = arith.mulf %322, %326 : vector<2x128xf32>
    %328 = tpu.concatenate %327, %292 in 1 : vector<2x128xf32>, vector<2x128xf32> -> vector<2x256xf32>
    %329 = arith.truncf %328 : vector<2x256xf32> to vector<2x256xbf16>
    %cst_102 = arith.constant dense<0.000000e+00> : vector<2x512xf32>
    %330 = tpu.matmul %329, %1, %cst_102 {dimension_numbers = #tpu.dot_dimension_numbers<[1], [0], [0], [1], [0, 0, 1, 1], [], []>} : vector<2x256xbf16>, vector<256x512xbf16>, vector<2x512xf32> -> vector<2x512xf32>
    %331 = arith.addf %330, %4 : vector<2x512xf32>
    %332 = vector.extract_strided_slice %331 {offsets = [0, 0], sizes = [2, 128], strides = [1, 1]} : vector<2x512xf32> to vector<2x128xf32>
    %cst_103 = arith.constant 5.000000e-01 : f32
    %333 = vector.broadcast %cst_103 : f32 to vector<2x128xf32>
    %334 = arith.mulf %333, %332 : vector<2x128xf32>
    %335 = math.tanh %334 : vector<2x128xf32>
    %cst_104 = arith.constant 5.000000e-01 : f32
    %336 = vector.broadcast %cst_104 : f32 to vector<2x128xf32>
    %337 = arith.mulf %336, %335 : vector<2x128xf32>
    %cst_105 = arith.constant 5.000000e-01 : f32
    %338 = vector.broadcast %cst_105 : f32 to vector<2x128xf32>
    %339 = arith.addf %337, %338 : vector<2x128xf32>
    %340 = vector.extract_strided_slice %331 {offsets = [0, 128], sizes = [2, 128], strides = [1, 1]} : vector<2x512xf32> to vector<2x128xf32>
    %cst_106 = arith.constant 5.000000e-01 : f32
    %341 = vector.broadcast %cst_106 : f32 to vector<2x128xf32>
    %342 = arith.mulf %341, %340 : vector<2x128xf32>
    %343 = math.tanh %342 : vector<2x128xf32>
    %cst_107 = arith.constant 5.000000e-01 : f32
    %344 = vector.broadcast %cst_107 : f32 to vector<2x128xf32>
    %345 = arith.mulf %344, %343 : vector<2x128xf32>
    %cst_108 = arith.constant 5.000000e-01 : f32
    %346 = vector.broadcast %cst_108 : f32 to vector<2x128xf32>
    %347 = arith.addf %345, %346 : vector<2x128xf32>
    %348 = vector.extract_strided_slice %331 {offsets = [0, 256], sizes = [2, 128], strides = [1, 1]} : vector<2x512xf32> to vector<2x128xf32>
    %349 = math.tanh %348 : vector<2x128xf32>
    %350 = vector.extract_strided_slice %331 {offsets = [0, 384], sizes = [2, 128], strides = [1, 1]} : vector<2x512xf32> to vector<2x128xf32>
    %cst_109 = arith.constant 5.000000e-01 : f32
    %351 = vector.broadcast %cst_109 : f32 to vector<2x128xf32>
    %352 = arith.mulf %351, %350 : vector<2x128xf32>
    %353 = math.tanh %352 : vector<2x128xf32>
    %cst_110 = arith.constant 5.000000e-01 : f32
    %354 = vector.broadcast %cst_110 : f32 to vector<2x128xf32>
    %355 = arith.mulf %354, %353 : vector<2x128xf32>
    %cst_111 = arith.constant 5.000000e-01 : f32
    %356 = vector.broadcast %cst_111 : f32 to vector<2x128xf32>
    %357 = arith.addf %355, %356 : vector<2x128xf32>
    %358 = arith.mulf %347, %290 : vector<2x128xf32>
    %359 = arith.mulf %339, %349 : vector<2x128xf32>
    %360 = arith.addf %358, %359 : vector<2x128xf32>
    %361 = math.tanh %360 : vector<2x128xf32>
    %362 = arith.mulf %357, %361 : vector<2x128xf32>
    %363 = vector.extract_strided_slice %11 {offsets = [10, 0], sizes = [2, 512], strides = [1, 1]} : vector<16x512xf32> to vector<2x512xf32>
    %364 = arith.truncf %327 : vector<2x128xf32> to vector<2x128xbf16>
    %cst_112 = arith.constant dense<0.000000e+00> : vector<2x512xf32>
    %365 = tpu.matmul %364, %0, %cst_112 {dimension_numbers = #tpu.dot_dimension_numbers<[1], [0], [0], [1], [0, 0, 1, 1], [], []>} : vector<2x128xbf16>, vector<128x512xbf16>, vector<2x512xf32> -> vector<2x512xf32>
    %366 = arith.addf %363, %365 : vector<2x512xf32>
    %367 = vector.extract_strided_slice %366 {offsets = [0, 0], sizes = [2, 128], strides = [1, 1]} : vector<2x512xf32> to vector<2x128xf32>
    %cst_113 = arith.constant 5.000000e-01 : f32
    %368 = vector.broadcast %cst_113 : f32 to vector<2x128xf32>
    %369 = arith.mulf %368, %367 : vector<2x128xf32>
    %370 = math.tanh %369 : vector<2x128xf32>
    %cst_114 = arith.constant 5.000000e-01 : f32
    %371 = vector.broadcast %cst_114 : f32 to vector<2x128xf32>
    %372 = arith.mulf %371, %370 : vector<2x128xf32>
    %cst_115 = arith.constant 5.000000e-01 : f32
    %373 = vector.broadcast %cst_115 : f32 to vector<2x128xf32>
    %374 = arith.addf %372, %373 : vector<2x128xf32>
    %375 = vector.extract_strided_slice %366 {offsets = [0, 128], sizes = [2, 128], strides = [1, 1]} : vector<2x512xf32> to vector<2x128xf32>
    %cst_116 = arith.constant 5.000000e-01 : f32
    %376 = vector.broadcast %cst_116 : f32 to vector<2x128xf32>
    %377 = arith.mulf %376, %375 : vector<2x128xf32>
    %378 = math.tanh %377 : vector<2x128xf32>
    %cst_117 = arith.constant 5.000000e-01 : f32
    %379 = vector.broadcast %cst_117 : f32 to vector<2x128xf32>
    %380 = arith.mulf %379, %378 : vector<2x128xf32>
    %cst_118 = arith.constant 5.000000e-01 : f32
    %381 = vector.broadcast %cst_118 : f32 to vector<2x128xf32>
    %382 = arith.addf %380, %381 : vector<2x128xf32>
    %383 = vector.extract_strided_slice %366 {offsets = [0, 256], sizes = [2, 128], strides = [1, 1]} : vector<2x512xf32> to vector<2x128xf32>
    %384 = math.tanh %383 : vector<2x128xf32>
    %385 = vector.extract_strided_slice %366 {offsets = [0, 384], sizes = [2, 128], strides = [1, 1]} : vector<2x512xf32> to vector<2x128xf32>
    %cst_119 = arith.constant 5.000000e-01 : f32
    %386 = vector.broadcast %cst_119 : f32 to vector<2x128xf32>
    %387 = arith.mulf %386, %385 : vector<2x128xf32>
    %388 = math.tanh %387 : vector<2x128xf32>
    %cst_120 = arith.constant 5.000000e-01 : f32
    %389 = vector.broadcast %cst_120 : f32 to vector<2x128xf32>
    %390 = arith.mulf %389, %388 : vector<2x128xf32>
    %cst_121 = arith.constant 5.000000e-01 : f32
    %391 = vector.broadcast %cst_121 : f32 to vector<2x128xf32>
    %392 = arith.addf %390, %391 : vector<2x128xf32>
    %393 = arith.mulf %382, %325 : vector<2x128xf32>
    %394 = arith.mulf %374, %384 : vector<2x128xf32>
    %395 = arith.addf %393, %394 : vector<2x128xf32>
    %396 = math.tanh %395 : vector<2x128xf32>
    %397 = arith.mulf %392, %396 : vector<2x128xf32>
    %398 = tpu.concatenate %397, %362 in 1 : vector<2x128xf32>, vector<2x128xf32> -> vector<2x256xf32>
    %399 = arith.truncf %398 : vector<2x256xf32> to vector<2x256xbf16>
    %cst_122 = arith.constant dense<0.000000e+00> : vector<2x512xf32>
    %400 = tpu.matmul %399, %1, %cst_122 {dimension_numbers = #tpu.dot_dimension_numbers<[1], [0], [0], [1], [0, 0, 1, 1], [], []>} : vector<2x256xbf16>, vector<256x512xbf16>, vector<2x512xf32> -> vector<2x512xf32>
    %401 = arith.addf %400, %4 : vector<2x512xf32>
    %402 = vector.extract_strided_slice %401 {offsets = [0, 0], sizes = [2, 128], strides = [1, 1]} : vector<2x512xf32> to vector<2x128xf32>
    %cst_123 = arith.constant 5.000000e-01 : f32
    %403 = vector.broadcast %cst_123 : f32 to vector<2x128xf32>
    %404 = arith.mulf %403, %402 : vector<2x128xf32>
    %405 = math.tanh %404 : vector<2x128xf32>
    %cst_124 = arith.constant 5.000000e-01 : f32
    %406 = vector.broadcast %cst_124 : f32 to vector<2x128xf32>
    %407 = arith.mulf %406, %405 : vector<2x128xf32>
    %cst_125 = arith.constant 5.000000e-01 : f32
    %408 = vector.broadcast %cst_125 : f32 to vector<2x128xf32>
    %409 = arith.addf %407, %408 : vector<2x128xf32>
    %410 = vector.extract_strided_slice %401 {offsets = [0, 128], sizes = [2, 128], strides = [1, 1]} : vector<2x512xf32> to vector<2x128xf32>
    %cst_126 = arith.constant 5.000000e-01 : f32
    %411 = vector.broadcast %cst_126 : f32 to vector<2x128xf32>
    %412 = arith.mulf %411, %410 : vector<2x128xf32>
    %413 = math.tanh %412 : vector<2x128xf32>
    %cst_127 = arith.constant 5.000000e-01 : f32
    %414 = vector.broadcast %cst_127 : f32 to vector<2x128xf32>
    %415 = arith.mulf %414, %413 : vector<2x128xf32>
    %cst_128 = arith.constant 5.000000e-01 : f32
    %416 = vector.broadcast %cst_128 : f32 to vector<2x128xf32>
    %417 = arith.addf %415, %416 : vector<2x128xf32>
    %418 = vector.extract_strided_slice %401 {offsets = [0, 256], sizes = [2, 128], strides = [1, 1]} : vector<2x512xf32> to vector<2x128xf32>
    %419 = math.tanh %418 : vector<2x128xf32>
    %420 = vector.extract_strided_slice %401 {offsets = [0, 384], sizes = [2, 128], strides = [1, 1]} : vector<2x512xf32> to vector<2x128xf32>
    %cst_129 = arith.constant 5.000000e-01 : f32
    %421 = vector.broadcast %cst_129 : f32 to vector<2x128xf32>
    %422 = arith.mulf %421, %420 : vector<2x128xf32>
    %423 = math.tanh %422 : vector<2x128xf32>
    %cst_130 = arith.constant 5.000000e-01 : f32
    %424 = vector.broadcast %cst_130 : f32 to vector<2x128xf32>
    %425 = arith.mulf %424, %423 : vector<2x128xf32>
    %cst_131 = arith.constant 5.000000e-01 : f32
    %426 = vector.broadcast %cst_131 : f32 to vector<2x128xf32>
    %427 = arith.addf %425, %426 : vector<2x128xf32>
    %428 = arith.mulf %417, %360 : vector<2x128xf32>
    %429 = arith.mulf %409, %419 : vector<2x128xf32>
    %430 = arith.addf %428, %429 : vector<2x128xf32>
    %431 = math.tanh %430 : vector<2x128xf32>
    %432 = arith.mulf %427, %431 : vector<2x128xf32>
    %433 = vector.extract_strided_slice %11 {offsets = [12, 0], sizes = [2, 512], strides = [1, 1]} : vector<16x512xf32> to vector<2x512xf32>
    %434 = arith.truncf %397 : vector<2x128xf32> to vector<2x128xbf16>
    %cst_132 = arith.constant dense<0.000000e+00> : vector<2x512xf32>
    %435 = tpu.matmul %434, %0, %cst_132 {dimension_numbers = #tpu.dot_dimension_numbers<[1], [0], [0], [1], [0, 0, 1, 1], [], []>} : vector<2x128xbf16>, vector<128x512xbf16>, vector<2x512xf32> -> vector<2x512xf32>
    %436 = arith.addf %433, %435 : vector<2x512xf32>
    %437 = vector.extract_strided_slice %436 {offsets = [0, 0], sizes = [2, 128], strides = [1, 1]} : vector<2x512xf32> to vector<2x128xf32>
    %cst_133 = arith.constant 5.000000e-01 : f32
    %438 = vector.broadcast %cst_133 : f32 to vector<2x128xf32>
    %439 = arith.mulf %438, %437 : vector<2x128xf32>
    %440 = math.tanh %439 : vector<2x128xf32>
    %cst_134 = arith.constant 5.000000e-01 : f32
    %441 = vector.broadcast %cst_134 : f32 to vector<2x128xf32>
    %442 = arith.mulf %441, %440 : vector<2x128xf32>
    %cst_135 = arith.constant 5.000000e-01 : f32
    %443 = vector.broadcast %cst_135 : f32 to vector<2x128xf32>
    %444 = arith.addf %442, %443 : vector<2x128xf32>
    %445 = vector.extract_strided_slice %436 {offsets = [0, 128], sizes = [2, 128], strides = [1, 1]} : vector<2x512xf32> to vector<2x128xf32>
    %cst_136 = arith.constant 5.000000e-01 : f32
    %446 = vector.broadcast %cst_136 : f32 to vector<2x128xf32>
    %447 = arith.mulf %446, %445 : vector<2x128xf32>
    %448 = math.tanh %447 : vector<2x128xf32>
    %cst_137 = arith.constant 5.000000e-01 : f32
    %449 = vector.broadcast %cst_137 : f32 to vector<2x128xf32>
    %450 = arith.mulf %449, %448 : vector<2x128xf32>
    %cst_138 = arith.constant 5.000000e-01 : f32
    %451 = vector.broadcast %cst_138 : f32 to vector<2x128xf32>
    %452 = arith.addf %450, %451 : vector<2x128xf32>
    %453 = vector.extract_strided_slice %436 {offsets = [0, 256], sizes = [2, 128], strides = [1, 1]} : vector<2x512xf32> to vector<2x128xf32>
    %454 = math.tanh %453 : vector<2x128xf32>
    %455 = vector.extract_strided_slice %436 {offsets = [0, 384], sizes = [2, 128], strides = [1, 1]} : vector<2x512xf32> to vector<2x128xf32>
    %cst_139 = arith.constant 5.000000e-01 : f32
    %456 = vector.broadcast %cst_139 : f32 to vector<2x128xf32>
    %457 = arith.mulf %456, %455 : vector<2x128xf32>
    %458 = math.tanh %457 : vector<2x128xf32>
    %cst_140 = arith.constant 5.000000e-01 : f32
    %459 = vector.broadcast %cst_140 : f32 to vector<2x128xf32>
    %460 = arith.mulf %459, %458 : vector<2x128xf32>
    %cst_141 = arith.constant 5.000000e-01 : f32
    %461 = vector.broadcast %cst_141 : f32 to vector<2x128xf32>
    %462 = arith.addf %460, %461 : vector<2x128xf32>
    %463 = arith.mulf %452, %395 : vector<2x128xf32>
    %464 = arith.mulf %444, %454 : vector<2x128xf32>
    %465 = arith.addf %463, %464 : vector<2x128xf32>
    %466 = math.tanh %465 : vector<2x128xf32>
    %467 = arith.mulf %462, %466 : vector<2x128xf32>
    %468 = tpu.concatenate %467, %432 in 1 : vector<2x128xf32>, vector<2x128xf32> -> vector<2x256xf32>
    %469 = arith.truncf %468 : vector<2x256xf32> to vector<2x256xbf16>
    %cst_142 = arith.constant dense<0.000000e+00> : vector<2x512xf32>
    %470 = tpu.matmul %469, %1, %cst_142 {dimension_numbers = #tpu.dot_dimension_numbers<[1], [0], [0], [1], [0, 0, 1, 1], [], []>} : vector<2x256xbf16>, vector<256x512xbf16>, vector<2x512xf32> -> vector<2x512xf32>
    %471 = arith.addf %470, %4 : vector<2x512xf32>
    %472 = vector.extract_strided_slice %471 {offsets = [0, 0], sizes = [2, 128], strides = [1, 1]} : vector<2x512xf32> to vector<2x128xf32>
    %cst_143 = arith.constant 5.000000e-01 : f32
    %473 = vector.broadcast %cst_143 : f32 to vector<2x128xf32>
    %474 = arith.mulf %473, %472 : vector<2x128xf32>
    %475 = math.tanh %474 : vector<2x128xf32>
    %cst_144 = arith.constant 5.000000e-01 : f32
    %476 = vector.broadcast %cst_144 : f32 to vector<2x128xf32>
    %477 = arith.mulf %476, %475 : vector<2x128xf32>
    %cst_145 = arith.constant 5.000000e-01 : f32
    %478 = vector.broadcast %cst_145 : f32 to vector<2x128xf32>
    %479 = arith.addf %477, %478 : vector<2x128xf32>
    %480 = vector.extract_strided_slice %471 {offsets = [0, 128], sizes = [2, 128], strides = [1, 1]} : vector<2x512xf32> to vector<2x128xf32>
    %cst_146 = arith.constant 5.000000e-01 : f32
    %481 = vector.broadcast %cst_146 : f32 to vector<2x128xf32>
    %482 = arith.mulf %481, %480 : vector<2x128xf32>
    %483 = math.tanh %482 : vector<2x128xf32>
    %cst_147 = arith.constant 5.000000e-01 : f32
    %484 = vector.broadcast %cst_147 : f32 to vector<2x128xf32>
    %485 = arith.mulf %484, %483 : vector<2x128xf32>
    %cst_148 = arith.constant 5.000000e-01 : f32
    %486 = vector.broadcast %cst_148 : f32 to vector<2x128xf32>
    %487 = arith.addf %485, %486 : vector<2x128xf32>
    %488 = vector.extract_strided_slice %471 {offsets = [0, 256], sizes = [2, 128], strides = [1, 1]} : vector<2x512xf32> to vector<2x128xf32>
    %489 = math.tanh %488 : vector<2x128xf32>
    %490 = vector.extract_strided_slice %471 {offsets = [0, 384], sizes = [2, 128], strides = [1, 1]} : vector<2x512xf32> to vector<2x128xf32>
    %cst_149 = arith.constant 5.000000e-01 : f32
    %491 = vector.broadcast %cst_149 : f32 to vector<2x128xf32>
    %492 = arith.mulf %491, %490 : vector<2x128xf32>
    %493 = math.tanh %492 : vector<2x128xf32>
    %cst_150 = arith.constant 5.000000e-01 : f32
    %494 = vector.broadcast %cst_150 : f32 to vector<2x128xf32>
    %495 = arith.mulf %494, %493 : vector<2x128xf32>
    %cst_151 = arith.constant 5.000000e-01 : f32
    %496 = vector.broadcast %cst_151 : f32 to vector<2x128xf32>
    %497 = arith.addf %495, %496 : vector<2x128xf32>
    %498 = arith.mulf %487, %430 : vector<2x128xf32>
    %499 = arith.mulf %479, %489 : vector<2x128xf32>
    %500 = arith.addf %498, %499 : vector<2x128xf32>
    %501 = math.tanh %500 : vector<2x128xf32>
    %502 = arith.mulf %497, %501 : vector<2x128xf32>
    %503 = vector.extract_strided_slice %11 {offsets = [14, 0], sizes = [2, 512], strides = [1, 1]} : vector<16x512xf32> to vector<2x512xf32>
    %504 = arith.truncf %467 : vector<2x128xf32> to vector<2x128xbf16>
    %cst_152 = arith.constant dense<0.000000e+00> : vector<2x512xf32>
    %505 = tpu.matmul %504, %0, %cst_152 {dimension_numbers = #tpu.dot_dimension_numbers<[1], [0], [0], [1], [0, 0, 1, 1], [], []>} : vector<2x128xbf16>, vector<128x512xbf16>, vector<2x512xf32> -> vector<2x512xf32>
    %506 = arith.addf %503, %505 : vector<2x512xf32>
    %507 = vector.extract_strided_slice %506 {offsets = [0, 0], sizes = [2, 128], strides = [1, 1]} : vector<2x512xf32> to vector<2x128xf32>
    %cst_153 = arith.constant 5.000000e-01 : f32
    %508 = vector.broadcast %cst_153 : f32 to vector<2x128xf32>
    %509 = arith.mulf %508, %507 : vector<2x128xf32>
    %510 = math.tanh %509 : vector<2x128xf32>
    %cst_154 = arith.constant 5.000000e-01 : f32
    %511 = vector.broadcast %cst_154 : f32 to vector<2x128xf32>
    %512 = arith.mulf %511, %510 : vector<2x128xf32>
    %cst_155 = arith.constant 5.000000e-01 : f32
    %513 = vector.broadcast %cst_155 : f32 to vector<2x128xf32>
    %514 = arith.addf %512, %513 : vector<2x128xf32>
    %515 = vector.extract_strided_slice %506 {offsets = [0, 128], sizes = [2, 128], strides = [1, 1]} : vector<2x512xf32> to vector<2x128xf32>
    %cst_156 = arith.constant 5.000000e-01 : f32
    %516 = vector.broadcast %cst_156 : f32 to vector<2x128xf32>
    %517 = arith.mulf %516, %515 : vector<2x128xf32>
    %518 = math.tanh %517 : vector<2x128xf32>
    %cst_157 = arith.constant 5.000000e-01 : f32
    %519 = vector.broadcast %cst_157 : f32 to vector<2x128xf32>
    %520 = arith.mulf %519, %518 : vector<2x128xf32>
    %cst_158 = arith.constant 5.000000e-01 : f32
    %521 = vector.broadcast %cst_158 : f32 to vector<2x128xf32>
    %522 = arith.addf %520, %521 : vector<2x128xf32>
    %523 = vector.extract_strided_slice %506 {offsets = [0, 256], sizes = [2, 128], strides = [1, 1]} : vector<2x512xf32> to vector<2x128xf32>
    %524 = math.tanh %523 : vector<2x128xf32>
    %525 = vector.extract_strided_slice %506 {offsets = [0, 384], sizes = [2, 128], strides = [1, 1]} : vector<2x512xf32> to vector<2x128xf32>
    %cst_159 = arith.constant 5.000000e-01 : f32
    %526 = vector.broadcast %cst_159 : f32 to vector<2x128xf32>
    %527 = arith.mulf %526, %525 : vector<2x128xf32>
    %528 = math.tanh %527 : vector<2x128xf32>
    %cst_160 = arith.constant 5.000000e-01 : f32
    %529 = vector.broadcast %cst_160 : f32 to vector<2x128xf32>
    %530 = arith.mulf %529, %528 : vector<2x128xf32>
    %cst_161 = arith.constant 5.000000e-01 : f32
    %531 = vector.broadcast %cst_161 : f32 to vector<2x128xf32>
    %532 = arith.addf %530, %531 : vector<2x128xf32>
    %533 = arith.mulf %522, %465 : vector<2x128xf32>
    %534 = arith.mulf %514, %524 : vector<2x128xf32>
    %535 = arith.addf %533, %534 : vector<2x128xf32>
    %536 = math.tanh %535 : vector<2x128xf32>
    %537 = arith.mulf %532, %536 : vector<2x128xf32>
    %538 = tpu.concatenate %537, %502 in 1 : vector<2x128xf32>, vector<2x128xf32> -> vector<2x256xf32>
    %539 = arith.truncf %538 : vector<2x256xf32> to vector<2x256xbf16>
    %cst_162 = arith.constant dense<0.000000e+00> : vector<2x512xf32>
    %540 = tpu.matmul %539, %1, %cst_162 {dimension_numbers = #tpu.dot_dimension_numbers<[1], [0], [0], [1], [0, 0, 1, 1], [], []>} : vector<2x256xbf16>, vector<256x512xbf16>, vector<2x512xf32> -> vector<2x512xf32>
    %541 = arith.addf %540, %4 : vector<2x512xf32>
    %542 = vector.extract_strided_slice %541 {offsets = [0, 0], sizes = [2, 128], strides = [1, 1]} : vector<2x512xf32> to vector<2x128xf32>
    %cst_163 = arith.constant 5.000000e-01 : f32
    %543 = vector.broadcast %cst_163 : f32 to vector<2x128xf32>
    %544 = arith.mulf %543, %542 : vector<2x128xf32>
    %545 = math.tanh %544 : vector<2x128xf32>
    %cst_164 = arith.constant 5.000000e-01 : f32
    %546 = vector.broadcast %cst_164 : f32 to vector<2x128xf32>
    %547 = arith.mulf %546, %545 : vector<2x128xf32>
    %cst_165 = arith.constant 5.000000e-01 : f32
    %548 = vector.broadcast %cst_165 : f32 to vector<2x128xf32>
    %549 = arith.addf %547, %548 : vector<2x128xf32>
    %550 = vector.extract_strided_slice %541 {offsets = [0, 128], sizes = [2, 128], strides = [1, 1]} : vector<2x512xf32> to vector<2x128xf32>
    %cst_166 = arith.constant 5.000000e-01 : f32
    %551 = vector.broadcast %cst_166 : f32 to vector<2x128xf32>
    %552 = arith.mulf %551, %550 : vector<2x128xf32>
    %553 = math.tanh %552 : vector<2x128xf32>
    %cst_167 = arith.constant 5.000000e-01 : f32
    %554 = vector.broadcast %cst_167 : f32 to vector<2x128xf32>
    %555 = arith.mulf %554, %553 : vector<2x128xf32>
    %cst_168 = arith.constant 5.000000e-01 : f32
    %556 = vector.broadcast %cst_168 : f32 to vector<2x128xf32>
    %557 = arith.addf %555, %556 : vector<2x128xf32>
    %558 = vector.extract_strided_slice %541 {offsets = [0, 256], sizes = [2, 128], strides = [1, 1]} : vector<2x512xf32> to vector<2x128xf32>
    %559 = math.tanh %558 : vector<2x128xf32>
    %560 = vector.extract_strided_slice %541 {offsets = [0, 384], sizes = [2, 128], strides = [1, 1]} : vector<2x512xf32> to vector<2x128xf32>
    %cst_169 = arith.constant 5.000000e-01 : f32
    %561 = vector.broadcast %cst_169 : f32 to vector<2x128xf32>
    %562 = arith.mulf %561, %560 : vector<2x128xf32>
    %563 = math.tanh %562 : vector<2x128xf32>
    %cst_170 = arith.constant 5.000000e-01 : f32
    %564 = vector.broadcast %cst_170 : f32 to vector<2x128xf32>
    %565 = arith.mulf %564, %563 : vector<2x128xf32>
    %cst_171 = arith.constant 5.000000e-01 : f32
    %566 = vector.broadcast %cst_171 : f32 to vector<2x128xf32>
    %567 = arith.addf %565, %566 : vector<2x128xf32>
    %568 = arith.mulf %557, %500 : vector<2x128xf32>
    %569 = arith.mulf %549, %559 : vector<2x128xf32>
    %570 = arith.addf %568, %569 : vector<2x128xf32>
    %571 = math.tanh %570 : vector<2x128xf32>
    %572 = arith.mulf %567, %571 : vector<2x128xf32>
    %c0_172 = arith.constant 0 : index
    %c0_173 = arith.constant 0 : index
    %573 = vector.load %arg6[%c0_172, %c0_173] : memref<128x512xbf16, #tpu.memory_space<vmem>>, vector<128x512xbf16>
    %574 = arith.truncf %572 : vector<2x128xf32> to vector<2x128xbf16>
    %cst_174 = arith.constant dense<0.000000e+00> : vector<2x512xf32>
    %575 = tpu.matmul %574, %573, %cst_174 {dimension_numbers = #tpu.dot_dimension_numbers<[1], [0], [0], [1], [0, 0, 1, 1], [], []>} : vector<2x128xbf16>, vector<128x512xbf16>, vector<2x512xf32> -> vector<2x512xf32>
    %c0_175 = arith.constant 0 : index
    %c0_176 = arith.constant 0 : index
    %576 = vector.load %arg7[%c0_175, %c0_176] : memref<1x512xf32, #tpu.memory_space<vmem>>, vector<1x512xf32>
    %577 = vector.broadcast %576 : vector<1x512xf32> to vector<2x512xf32>
    %578 = arith.addf %575, %577 : vector<2x512xf32>
    %cst_177 = arith.constant 0.000000e+00 : f32
    %579 = vector.broadcast %cst_177 : f32 to vector<2x512xf32>
    %580 = arith.cmpf ogt, %578, %579 : vector<2x512xf32>
    %cst_178 = arith.constant 0.00999999977 : f32
    %581 = vector.broadcast %cst_178 : f32 to vector<2x512xf32>
    %582 = arith.mulf %581, %578 : vector<2x512xf32>
    %583 = arith.select %580, %578, %582 : vector<2x512xi1>, vector<2x512xf32>
    %c0_179 = arith.constant 0 : index
    %c0_180 = arith.constant 0 : index
    %584 = vector.load %arg8[%c0_179, %c0_180] : memref<512x128xbf16, #tpu.memory_space<vmem>>, vector<512x128xbf16>
    %585 = arith.truncf %583 : vector<2x512xf32> to vector<2x512xbf16>
    %cst_181 = arith.constant dense<0.000000e+00> : vector<2x128xf32>
    %586 = tpu.matmul %585, %584, %cst_181 {dimension_numbers = #tpu.dot_dimension_numbers<[1], [0], [0], [1], [0, 0, 1, 1], [], []>} : vector<2x512xbf16>, vector<512x128xbf16>, vector<2x128xf32> -> vector<2x128xf32>
    %c0_182 = arith.constant 0 : index
    %c0_183 = arith.constant 0 : index
    %587 = vector.load %arg9[%c0_182, %c0_183] : memref<1x128xf32, #tpu.memory_space<vmem>>, vector<1x128xf32>
    %588 = vector.broadcast %587 : vector<1x128xf32> to vector<2x128xf32>
    %589 = arith.addf %586, %588 : vector<2x128xf32>
    %c0_184 = arith.constant 0 : index
    %c0_185 = arith.constant 0 : index
    %590 = vector.load %arg22[%c0_184, %c0_185] : memref<2x128xf32, #tpu.memory_space<vmem>>, vector<2x128xf32>
    tpu.vector_store %arg22[%c0_184, %c0_185], %589 {strides = array<i32>} : memref<2x128xf32, #tpu.memory_space<vmem>>, vector<2x128xf32>,
    %c0_186 = arith.constant 0 : index
    %c0_187 = arith.constant 0 : index
    %591 = vector.load %arg10[%c0_186, %c0_187] : memref<128x128xbf16, #tpu.memory_space<vmem>>, vector<128x128xbf16>
    %592 = arith.truncf %572 : vector<2x128xf32> to vector<2x128xbf16>
    %cst_188 = arith.constant dense<0.000000e+00> : vector<2x128xf32>
    %593 = tpu.matmul %592, %591, %cst_188 {dimension_numbers = #tpu.dot_dimension_numbers<[1], [0], [0], [1], [0, 0, 1, 1], [], []>} : vector<2x128xbf16>, vector<128x128xbf16>, vector<2x128xf32> -> vector<2x128xf32>
    %c0_189 = arith.constant 0 : index
    %c0_190 = arith.constant 0 : index
    %594 = vector.load %arg11[%c0_189, %c0_190] : memref<1x128xf32, #tpu.memory_space<vmem>>, vector<1x128xf32>
    %595 = vector.broadcast %594 : vector<1x128xf32> to vector<2x128xf32>
    %596 = arith.addf %593, %595 : vector<2x128xf32>
    %c0_191 = arith.constant 0 : index
    %c0_192 = arith.constant 0 : index
    %597 = vector.load %arg12[%c0_191, %c0_192] : memref<1x128xf32, #tpu.memory_space<vmem>>, vector<1x128xf32>
    %c0_193 = arith.constant 0 : index
    %c0_194 = arith.constant 0 : index
    %598 = vector.load %arg13[%c0_193, %c0_194] : memref<1x128xf32, #tpu.memory_space<vmem>>, vector<1x128xf32>
    %cst_195 = arith.constant dense<0.000000e+00> : vector<128xf32>
    %599 = vector.multi_reduction <add>, %596, %cst_195 [0] : vector<2x128xf32> to vector<128xf32>
    %600 = vector.shape_cast %599 : vector<128xf32> to vector<1x128xf32>
    %cst_196 = arith.constant 2.000000e+00 : f32
    %601 = vector.broadcast %cst_196 : f32 to vector<1x128xf32>
    %602 = arith.divf %600, %601 : vector<1x128xf32>
    %603 = vector.broadcast %602 : vector<1x128xf32> to vector<2x128xf32>
    %604 = arith.subf %596, %603 : vector<2x128xf32>
    %605 = vector.broadcast %602 : vector<1x128xf32> to vector<2x128xf32>
    %606 = arith.subf %596, %605 : vector<2x128xf32>
    %607 = arith.mulf %604, %606 : vector<2x128xf32>
    %cst_197 = arith.constant dense<0.000000e+00> : vector<128xf32>
    %608 = vector.multi_reduction <add>, %607, %cst_197 [0] : vector<2x128xf32> to vector<128xf32>
    %609 = vector.shape_cast %608 : vector<128xf32> to vector<1x128xf32>
    %cst_198 = arith.constant 2.000000e+00 : f32
    %610 = vector.broadcast %cst_198 : f32 to vector<1x128xf32>
    %611 = arith.divf %609, %610 : vector<1x128xf32>
    %612 = vector.broadcast %602 : vector<1x128xf32> to vector<2x128xf32>
    %613 = arith.subf %596, %612 : vector<2x128xf32>
    %cst_199 = arith.constant 9.99999974E-6 : f32
    %614 = vector.broadcast %cst_199 : f32 to vector<1x128xf32>
    %615 = arith.addf %611, %614 : vector<1x128xf32>
    %616 = math.rsqrt %615 : vector<1x128xf32>
    %617 = vector.broadcast %616 : vector<1x128xf32> to vector<2x128xf32>
    %618 = arith.mulf %613, %617 : vector<2x128xf32>
    %619 = vector.broadcast %597 : vector<1x128xf32> to vector<2x128xf32>
    %620 = arith.mulf %618, %619 : vector<2x128xf32>
    %621 = vector.broadcast %598 : vector<1x128xf32> to vector<2x128xf32>
    %622 = arith.addf %620, %621 : vector<2x128xf32>
    %cst_200 = arith.constant 0.000000e+00 : f32
    %623 = vector.broadcast %cst_200 : f32 to vector<2x128xf32>
    %624 = arith.cmpf ogt, %622, %623 : vector<2x128xf32>
    %cst_201 = arith.constant 0.00999999977 : f32
    %625 = vector.broadcast %cst_201 : f32 to vector<2x128xf32>
    %626 = arith.mulf %625, %622 : vector<2x128xf32>
    %627 = arith.select %624, %622, %626 : vector<2x128xi1>, vector<2x128xf32>
    %c0_202 = arith.constant 0 : index
    %c0_203 = arith.constant 0 : index
    %628 = vector.load %arg14[%c0_202, %c0_203] : memref<128x64xbf16, #tpu.memory_space<vmem>>, vector<128x64xbf16>
    %629 = arith.truncf %627 : vector<2x128xf32> to vector<2x128xbf16>
    %cst_204 = arith.constant dense<0.000000e+00> : vector<2x64xf32>
    %630 = tpu.matmul %629, %628, %cst_204 {dimension_numbers = #tpu.dot_dimension_numbers<[1], [0], [0], [1], [0, 0, 1, 1], [], []>} : vector<2x128xbf16>, vector<128x64xbf16>, vector<2x64xf32> -> vector<2x64xf32>
    %c0_205 = arith.constant 0 : index
    %c0_206 = arith.constant 0 : index
    %631 = vector.load %arg15[%c0_205, %c0_206] : memref<1x64xf32, #tpu.memory_space<vmem>>, vector<1x64xf32>
    %632 = vector.broadcast %631 : vector<1x64xf32> to vector<2x64xf32>
    %633 = arith.addf %630, %632 : vector<2x64xf32>
    %c0_207 = arith.constant 0 : index
    %c0_208 = arith.constant 0 : index
    %634 = vector.load %arg16[%c0_207, %c0_208] : memref<1x64xf32, #tpu.memory_space<vmem>>, vector<1x64xf32>
    %c0_209 = arith.constant 0 : index
    %c0_210 = arith.constant 0 : index
    %635 = vector.load %arg17[%c0_209, %c0_210] : memref<1x64xf32, #tpu.memory_space<vmem>>, vector<1x64xf32>
    %cst_211 = arith.constant dense<0.000000e+00> : vector<64xf32>
    %636 = vector.multi_reduction <add>, %633, %cst_211 [0] : vector<2x64xf32> to vector<64xf32>
    %637 = vector.shape_cast %636 : vector<64xf32> to vector<1x64xf32>
    %cst_212 = arith.constant 2.000000e+00 : f32
    %638 = vector.broadcast %cst_212 : f32 to vector<1x64xf32>
    %639 = arith.divf %637, %638 : vector<1x64xf32>
    %640 = vector.broadcast %639 : vector<1x64xf32> to vector<2x64xf32>
    %641 = arith.subf %633, %640 : vector<2x64xf32>
    %642 = vector.broadcast %639 : vector<1x64xf32> to vector<2x64xf32>
    %643 = arith.subf %633, %642 : vector<2x64xf32>
    %644 = arith.mulf %641, %643 : vector<2x64xf32>
    %cst_213 = arith.constant dense<0.000000e+00> : vector<64xf32>
    %645 = vector.multi_reduction <add>, %644, %cst_213 [0] : vector<2x64xf32> to vector<64xf32>
    %646 = vector.shape_cast %645 : vector<64xf32> to vector<1x64xf32>
    %cst_214 = arith.constant 2.000000e+00 : f32
    %647 = vector.broadcast %cst_214 : f32 to vector<1x64xf32>
    %648 = arith.divf %646, %647 : vector<1x64xf32>
    %649 = vector.broadcast %639 : vector<1x64xf32> to vector<2x64xf32>
    %650 = arith.subf %633, %649 : vector<2x64xf32>
    %cst_215 = arith.constant 9.99999974E-6 : f32
    %651 = vector.broadcast %cst_215 : f32 to vector<1x64xf32>
    %652 = arith.addf %648, %651 : vector<1x64xf32>
    %653 = math.rsqrt %652 : vector<1x64xf32>
    %654 = vector.broadcast %653 : vector<1x64xf32> to vector<2x64xf32>
    %655 = arith.mulf %650, %654 : vector<2x64xf32>
    %656 = vector.broadcast %634 : vector<1x64xf32> to vector<2x64xf32>
    %657 = arith.mulf %655, %656 : vector<2x64xf32>
    %658 = vector.broadcast %635 : vector<1x64xf32> to vector<2x64xf32>
    %659 = arith.addf %657, %658 : vector<2x64xf32>
    %cst_216 = arith.constant 0.000000e+00 : f32
    %660 = vector.broadcast %cst_216 : f32 to vector<2x64xf32>
    %661 = arith.cmpf ogt, %659, %660 : vector<2x64xf32>
    %cst_217 = arith.constant 0.00999999977 : f32
    %662 = vector.broadcast %cst_217 : f32 to vector<2x64xf32>
    %663 = arith.mulf %662, %659 : vector<2x64xf32>
    %664 = arith.select %661, %659, %663 : vector<2x64xi1>, vector<2x64xf32>
    %c0_218 = arith.constant 0 : index
    %c0_219 = arith.constant 0 : index
    %665 = vector.load %arg18[%c0_218, %c0_219] : memref<64x2xbf16, #tpu.memory_space<vmem>>, vector<64x2xbf16>
    %666 = arith.truncf %664 : vector<2x64xf32> to vector<2x64xbf16>
    %cst_220 = arith.constant dense<0.000000e+00> : vector<2x2xf32>
    %667 = tpu.matmul %666, %665, %cst_220 {dimension_numbers = #tpu.dot_dimension_numbers<[1], [0], [0], [1], [0, 0, 1, 1], [], []>} : vector<2x64xbf16>, vector<64x2xbf16>, vector<2x2xf32> -> vector<2x2xf32>
    %c0_221 = arith.constant 0 : index
    %c0_222 = arith.constant 0 : index
    %668 = vector.load %arg19[%c0_221, %c0_222] : memref<1x2xf32, #tpu.memory_space<vmem>>, vector<1x2xf32>
    %669 = vector.broadcast %668 : vector<1x2xf32> to vector<2x2xf32>
    %670 = arith.addf %667, %669 : vector<2x2xf32>
    %c0_223 = arith.constant 0 : index
    %c0_224 = arith.constant 0 : index
    %671 = vector.load %arg20[%c0_223, %c0_224] : memref<1x2xf32, #tpu.memory_space<vmem>>, vector<1x2xf32>
    %c0_225 = arith.constant 0 : index
    %c0_226 = arith.constant 0 : index
    %672 = vector.load %arg21[%c0_225, %c0_226] : memref<1x2xf32, #tpu.memory_space<vmem>>, vector<1x2xf32>
    %cst_227 = arith.constant dense<0.000000e+00> : vector<2xf32>
    %673 = vector.multi_reduction <add>, %670, %cst_227 [0] : vector<2x2xf32> to vector<2xf32>
    %674 = vector.shape_cast %673 : vector<2xf32> to vector<1x2xf32>
    %cst_228 = arith.constant 2.000000e+00 : f32
    %675 = vector.broadcast %cst_228 : f32 to vector<1x2xf32>
    %676 = arith.divf %674, %675 : vector<1x2xf32>
    %677 = vector.broadcast %676 : vector<1x2xf32> to vector<2x2xf32>
    %678 = arith.subf %670, %677 : vector<2x2xf32>
    %679 = vector.broadcast %676 : vector<1x2xf32> to vector<2x2xf32>
    %680 = arith.subf %670, %679 : vector<2x2xf32>
    %681 = arith.mulf %678, %680 : vector<2x2xf32>
    %cst_229 = arith.constant dense<0.000000e+00> : vector<2xf32>
    %682 = vector.multi_reduction <add>, %681, %cst_229 [0] : vector<2x2xf32> to vector<2xf32>
    %683 = vector.shape_cast %682 : vector<2xf32> to vector<1x2xf32>
    %cst_230 = arith.constant 2.000000e+00 : f32
    %684 = vector.broadcast %cst_230 : f32 to vector<1x2xf32>
    %685 = arith.divf %683, %684 : vector<1x2xf32>
    %686 = vector.broadcast %676 : vector<1x2xf32> to vector<2x2xf32>
    %687 = arith.subf %670, %686 : vector<2x2xf32>
    %cst_231 = arith.constant 9.99999974E-6 : f32
    %688 = vector.broadcast %cst_231 : f32 to vector<1x2xf32>
    %689 = arith.addf %685, %688 : vector<1x2xf32>
    %690 = math.rsqrt %689 : vector<1x2xf32>
    %691 = vector.broadcast %690 : vector<1x2xf32> to vector<2x2xf32>
    %692 = arith.mulf %687, %691 : vector<2x2xf32>
    %693 = vector.broadcast %671 : vector<1x2xf32> to vector<2x2xf32>
    %694 = arith.mulf %692, %693 : vector<2x2xf32>
    %695 = vector.broadcast %672 : vector<1x2xf32> to vector<2x2xf32>
    %696 = arith.addf %694, %695 : vector<2x2xf32>
    %cst_232 = arith.constant 0.000000e+00 : f32
    %697 = vector.broadcast %cst_232 : f32 to vector<2x2xf32>
    %698 = arith.cmpf ogt, %696, %697 : vector<2x2xf32>
    %cst_233 = arith.constant 0.00999999977 : f32
    %699 = vector.broadcast %cst_233 : f32 to vector<2x2xf32>
    %700 = arith.mulf %699, %696 : vector<2x2xf32>
    %701 = arith.select %698, %696, %700 : vector<2x2xi1>, vector<2x2xf32>
    %cst_234 = arith.constant dense<0xFF800000> : vector<2xf32>
    %702 = vector.multi_reduction <maximumf>, %701, %cst_234 [1] : vector<2x2xf32> to vector<2xf32>
    %703 = vector.shape_cast %702 : vector<2xf32> to vector<2x1xf32>
    %704 = vector.broadcast %703 : vector<2x1xf32> to vector<2x2xf32>
    %705 = arith.subf %701, %704 : vector<2x2xf32>
    %706 = math.exp %705 : vector<2x2xf32>
    %cst_235 = arith.constant dense<0.000000e+00> : vector<2xf32>
    %707 = vector.multi_reduction <add>, %706, %cst_235 [1] : vector<2x2xf32> to vector<2xf32>
    %708 = vector.shape_cast %707 : vector<2xf32> to vector<2x1xf32>
    %709 = vector.broadcast %708 : vector<2x1xf32> to vector<2x2xf32>
    %710 = arith.divf %706, %709 : vector<2x2xf32>
    %c0_236 = arith.constant 0 : index
    %c0_237 = arith.constant 0 : index
    %711 = vector.load %arg23[%c0_236, %c0_237] : memref<2x2xf32, #tpu.memory_space<vmem>>, vector<2x2xf32>
    tpu.vector_store %arg23[%c0_236, %c0_237], %710 {strides = array<i32>} : memref<2x2xf32, #tpu.memory_space<vmem>>, vector<2x2xf32>,
    return
  }
}

</mosaic_0001>

<bundles_post_ra>
// kernel: lstm_forward.1
= control target key start
LH: loop header
LB: loop body
LE: loop exit
PB: predicated region body
PF: predicated region fallthrough
CT: control target
= control target key end

     0   :  { %s6374_s0 = inlined_call_operand.vmem [shape: f32[16,128], index: 0, kind: input, shape index: {}]   ;;  %s6375_s1 = inlined_call_operand.hbm [shape: f32[128,512], index: 1, kind: input, shape index: {}]   ;;  %s6376_s2 = inlined_call_operand.vmem [shape: f32[1,512], index: 2, kind: input, shape index: {}]   ;;  %s6377_s3 = inlined_call_operand.hbm [shape: bf16[128,512], index: 3, kind: input, shape index: {}]   ;;  %s6378_s4 = inlined_call_operand.hbm [shape: bf16[256,512], index: 4, kind: input, shape index: {}]   ;;  %s6379_s5 = inlined_call_operand.vmem [shape: f32[1,512], index: 5, kind: input, shape index: {}]   ;;  %s6380_s6 = inlined_call_operand.hbm [shape: bf16[128,512], index: 6, kind: input, shape index: {}]   ;;  %s6381_s7 = inlined_call_operand.vmem [shape: f32[1,512], index: 7, kind: input, shape index: {}]   ;;  %s6382_s8 = inlined_call_operand.hbm [shape: bf16[512,128], index: 8, kind: input, shape index: {}]   ;;  %s6383_s9 = inlined_call_operand.vmem [shape: f32[1,128], index: 9, kind: input, shape index: {}]   ;;  %s6384_s10 = inlined_call_operand.vmem [shape: bf16[128,128], index: 10, kind: input, shape index: {}]   ;;  %s6385_s11 = inlined_call_operand.vmem [shape: f32[1,128], index: 11, kind: input, shape index: {}]   ;;  %s6386_s12 = inlined_call_operand.vmem [shape: f32[1,128], index: 12, kind: input, shape index: {}]   ;;  %s6387_s13 = inlined_call_operand.vmem [shape: f32[1,128], index: 13, kind: input, shape index: {}]   ;;  %s6388_s14 = inlined_call_operand.hbm [shape: bf16[128,64], index: 14, kind: input, shape index: {}]   ;;  %s6389_s15 = inlined_call_operand.vmem [shape: f32[1,64], index: 15, kind: input, shape index: {}]   ;;  %s6390_s16 = inlined_call_operand.vmem [shape: f32[1,64], index: 16, kind: input, shape index: {}]   ;;  %s6391_s17 = inlined_call_operand.vmem [shape: f32[1,64], index: 17, kind: input, shape index: {}]   ;;  %s6392_s18 = inlined_call_operand.vmem [shape: bf16[64,2], index: 18, kind: input, shape index: {}]   ;;  %s6393_s19 = inlined_call_operand.vmem [shape: f32[1,2], index: 19, kind: input, shape index: {}]   ;;  %s6394_s20 = inlined_call_operand.vmem [shape: f32[1,2], index: 20, kind: input, shape index: {}]   ;;  %s6395_s21 = inlined_call_operand.vmem [shape: f32[1,2], index: 21, kind: input, shape index: {}]   ;;  %s6396_s22 = inlined_call_operand.hbm [shape: f32[2,128], index: 22, kind: output, shape index: {0}]   ;;  %s6397_s23 = inlined_call_operand.hbm [shape: f32[2,2], index: 23, kind: output, shape index: {1}]  }
   0x1   :  { %6600 = sst [smem:[#allocation113_spill]] %s6374_s0 }
   0x2   :  { %6601 = sst [smem:[#allocation114_spill]] %s6375_s1 }
   0x3   :  { %6602 = sst [smem:[#allocation115_spill]] %s6376_s2 }
   0x4   :  { %6603 = sst [smem:[#allocation116_spill]] %s6377_s3 }
   0x5   :  { %6604 = sst [smem:[#allocation117_spill]] %s6378_s4 }
   0x6   :  { %6605 = sst [smem:[#allocation118_spill]] %s6379_s5 }
   0x7   :  { %6606 = sst [smem:[#allocation119_spill]] %s6380_s6 }
   0x8   :  { %6607 = sst [smem:[#allocation120_spill]] %s6381_s7 }
   0x9   :  { %6608 = sst [smem:[#allocation121_spill]] %s6393_s19 }
   0xa   :  { %6609 = sst [smem:[#allocation122_spill]] %s6394_s20 }
   0xb   :  { %6610 = sst [smem:[#allocation123_spill]] %s6395_s21 }
   0xc   :  { %6611 = sst [smem:[#allocation124_spill]] %s6396_s22 }
   0xd   :  { %6612 = sst [smem:[#allocation125_spill]] %s6397_s23 }
   0xe   :  { %29 = vsyncpa [#allocation3], 0 }
   0xf   :  { %30 = vsyncpa [#allocation6], 0 }
  0x10   :  { %31 = vsyncpa [#allocation9], 0 }
  0x11   :  { %32 = vsyncpa [#allocation12], 0 }
  0x12   :  { %33 = vsyncpa [#allocation4], 0  ;;  %s6613_s24 = sld [smem:[#allocation116_spill]] }
  0x18   :  { %s56_s25 = sshll.u32 %s6613_s24, 4  ;;  %s57_s25 = int_to_ptr.hbm [resolvable:$true] %s56_s25 }
  0x19   :  { %34 = vsyncpa [#allocation15], 0  ;;  %s4960_s5 = smov [#allocation5]   ;;  %s6614_s6 = sld [smem:[#allocation119_spill]] }
  0x1a   :  { %s58_s1 = sshll.u32 %s4960_s5, 4  ;;  %s4961_s7 = smov 256   ;;  %s59_s1 = int_to_ptr.vmem [resolvable:$true] %s58_s1 }
  0x1b   :  { %s4962_s28 = smov 16   ;;  %s4963_s29 = smov [#allocation8]  }
  0x1c   :  { %64 = dma.hbm_to_vmem [thread:$0]  %s57_s25, 4096, %s59_s1, [#allocation6], %s4961_s7, %s4961_s7, %s4962_s28  }
  0x1d   :  { %s86_s3 = sshll.u32 %s4963_s29, 4  ;;  %s6615_s22 = sld [smem:[#allocation114_spill]]  ;;  %s87_s3 = int_to_ptr.vmem [resolvable:$true] %s86_s3 }
  0x1e   :  { %s4964_s30 = smov [#allocation2]   ;;  %s6616_s26 = sld [smem:[#allocation117_spill]] }
  0x1f   :  { %s84_s27 = sshll.u32 %s6614_s6, 4  ;;  %s43_s24 = sshll.u32 %s4964_s30, 4  ;;  %s85_s27 = int_to_ptr.hbm [resolvable:$true] %s84_s27  ;;  %s44_s24 = int_to_ptr.vmem [resolvable:$true] %s43_s24 }
  0x20   :  { %92 = dma.hbm_to_vmem [thread:$0]  %s85_s27, 4096, %s87_s3, [#allocation9], %s4961_s7, %s4961_s7, %s4962_s28  }
  0x21   :  { %s4965_s6 = smov 512   ;;  %s4966_s20 = smov 32  }
  0x22   :  { %s4967_s25 = smov [#allocation7]   ;;  %s4968_s23 = smov [#allocation10]  }
  0x23   :  { %s41_s4 = sshll.u32 %s6615_s22, 4  ;;  %s71_s1 = sshll.u32 %s4967_s25, 4  ;;  %s42_s4 = int_to_ptr.hbm [resolvable:$true] %s41_s4  ;;  %s72_s1 = int_to_ptr.vmem [resolvable:$true] %s71_s1 }
  0x24   :  { %s69_s2 = sshll.u32 %s6616_s26, 4  ;;  %s99_s22 = sshll.u32 %s6382_s8, 4  ;;  %s70_s2 = int_to_ptr.hbm [resolvable:$true] %s69_s2  ;;  %s100_s22 = int_to_ptr.hbm [resolvable:$true] %s99_s22 }
  0x25   :  { %49 = dma.hbm_to_vmem [thread:$0]  %s42_s4, 8192, %s44_s24, [#allocation3], %s4965_s6, %s4965_s6, %s4966_s20  }
  0x26   :  { %77 = dma.hbm_to_vmem [thread:$0]  %s70_s2, 8192, %s72_s1, [#allocation6], %s4961_s7, %s4961_s7, %s4962_s28  }
  0x27   :  { %s101_s27 = sshll.u32 %s4968_s23, 4  ;;  %s122_s21 = sshll.u32 %s6388_s14, 4  ;;  %s102_s27 = int_to_ptr.vmem [resolvable:$true] %s101_s27  ;;  %s123_s21 = int_to_ptr.hbm [resolvable:$true] %s122_s21 }
  0x28   :  { %s4969_s30 = smov 64   ;;  %s4970_s5 = smov 4  }
  0x29   :  { %107 = dma.hbm_to_vmem [thread:$0]  %s100_s22, 4096, %s102_s27, [#allocation9], %s4969_s30, %s4969_s30, %s4970_s5  }
  0x2a   :  { %s4971_s20 = smov [#allocation11]  }
  0x2b   :  { %s124_s4 = sshll.u32 %s4971_s20, 4  ;;  %s125_s4 = int_to_ptr.vmem [resolvable:$true] %s124_s4 }
  0x2c   :  { %130 = dma.hbm_to_vmem [thread:$0]  %s123_s21, 1024, %s125_s4, [#allocation12], %s4969_s30, %s4969_s30, %s4970_s5  }
  0x2d   :  { %4948 = dma.done.wait [#allocation3], 8192  }
  0x2e   :  { %4949 = vsyncadd [#allocation3], 4294959104 }
  0x2f   :  { %4950 = dma.done.wait [#allocation6], 12288  }
  0x30   :  { %4951 = vsyncadd [#allocation6], 4294955008 }
  0x31   :  { %4952 = dma.done.wait [#allocation9], 8192  }
  0x32   :  { %4953 = vsyncadd [#allocation9], 4294959104 }
  0x33   :  { %4954 = dma.done.wait [#allocation12], 1024  }
  0x34   :  { %4955 = vsyncadd [#allocation12], 4294966272  ;;  %v338_v0 = vld [vmem:[#allocation2 + $0x1e0] sm:$0xff]  ;;  %v339_v1 = vld [vmem:[#allocation2 + $0x1e8] sm:$0xff]  ;;  %s6619_s19 = sld [smem:[#allocation113_spill]]  ;;  %vm3322_vm4 = vcmask 1041408  }
  0x35   :  { %v340_v2 = vld [vmem:[#allocation2 + $0x1f0] sm:$0xff]  ;;  %352 = vmatpush.msra.mxu0 %v338_v0  ;;  %375 = vmatpush.msra.mxu1 %v339_v1  ;;  %v341_v3 = vld [vmem:[#allocation2 + $0x1f8] sm:$0xff]  ;;  %v334_v4 = vld [vmem:[#allocation2 + $0x1c0] sm:$0xff]  ;;  %s6702_s2 = sld [smem:[#allocation115_spill]]  ;;  %vm3455_vm10 = vcmask 517120   ;;  %vm3534_vm15 = vcmask 523264  }
  0x36   :  { %v335_v5 = vld [vmem:[#allocation2 + $0x1c8] sm:$0xff]  ;;  %398 = vmatpush.msra.mxu2 %v340_v2  ;;  %421 = vmatpush.msra.mxu3 %v341_v3  ;;  %v336_v6 = vld [vmem:[#allocation2 + $0x1d0] sm:$0xff]  ;;  %v337_v7 = vld [vmem:[#allocation2 + $0x1d8] sm:$0xff]  ;;  %s6738_s1 = sld [smem:[#allocation118_spill]]  ;;  %s4976_s29 = smov [#allocation14]  }
  0x37   :  { %v330_v8 = vld [vmem:[#allocation2 + $0x1a0] sm:$0xff]  ;;  %353 = vmatpush.msra.mxu0 %v334_v4  ;;  %376 = vmatpush.msra.mxu1 %v335_v5  ;;  %v331_v9 = vld [vmem:[#allocation2 + $0x1a8] sm:$0xff]  ;;  %v332_v10 = vld [vmem:[#allocation2 + $0x1b0] sm:$0xff]  ;;  %s7134_s7 = sld [smem:[#allocation121_spill]]  ;;  %s3636_s22 = sshll.u32 %s4976_s29, 4  ;;  %s3637_s22 = int_to_ptr.vmem [resolvable:$true] %s3636_s22 }
  0x38   :  { %v333_v11 = vld [vmem:[#allocation2 + $0x1b8] sm:$0xff]  ;;  %399 = vmatpush.msra.mxu2 %v336_v6  ;;  %422 = vmatpush.msra.mxu3 %v337_v7  ;;  %v326_v12 = vld [vmem:[#allocation2 + $0x180] sm:$0xff]  ;;  %v327_v13 = vld [vmem:[#allocation2 + $0x188] sm:$0xff]  ;;  %s7135_s28 = sld [smem:[#allocation122_spill]] }
  0x39   :  { %354 = vmatpush.msra.mxu0 %v330_v8  ;;  %377 = vmatpush.msra.mxu1 %v331_v9  ;;  %v328_v14 = vld [vmem:[#allocation2 + $0x190] sm:$0xff]  ;;  %v329_v15 = vld [vmem:[#allocation2 + $0x198] sm:$0xff]  ;;  %v322_v16 = vld [vmem:[#allocation2 + $0x160] sm:$0xff]  ;;  %s7137_s25 = sld [smem:[#allocation124_spill]] }
  0x3a   :  { %400 = vmatpush.msra.mxu2 %v332_v10  ;;  %423 = vmatpush.msra.mxu3 %v333_v11  ;;  %v323_v17 = vld [vmem:[#allocation2 + $0x168] sm:$0xff]  ;;  %v324_v18 = vld [vmem:[#allocation2 + $0x170] sm:$0xff]  ;;  %v325_v19 = vld [vmem:[#allocation2 + $0x178] sm:$0xff] }
  0x3b   :  { %355 = vmatpush.msra.mxu0 %v326_v12  ;;  %378 = vmatpush.msra.mxu1 %v327_v13  ;;  %v318_v20 = vld [vmem:[#allocation2 + $0x140] sm:$0xff]  ;;  %v319_v21 = vld [vmem:[#allocation2 + $0x148] sm:$0xff]  ;;  %v320_v22 = vld [vmem:[#allocation2 + $0x150] sm:$0xff] }
  0x3c   :  { %401 = vmatpush.msra.mxu2 %v328_v14  ;;  %424 = vmatpush.msra.mxu3 %v329_v15  ;;  %v321_v23 = vld [vmem:[#allocation2 + $0x158] sm:$0xff]  ;;  %v314_v24 = vld [vmem:[#allocation2 + $0x120] sm:$0xff]  ;;  %v315_v25 = vld [vmem:[#allocation2 + $0x128] sm:$0xff] }
  0x3d   :  { %356 = vmatpush.msra.mxu0 %v322_v16  ;;  %379 = vmatpush.msra.mxu1 %v323_v17  ;;  %v316_v26 = vld [vmem:[#allocation2 + $0x130] sm:$0xff]  ;;  %v317_v27 = vld [vmem:[#allocation2 + $0x138] sm:$0xff]  ;;  %v310_v28 = vld [vmem:[#allocation2 + $0x100] sm:$0xff] }
  0x3e   :  { %402 = vmatpush.msra.mxu2 %v324_v18  ;;  %425 = vmatpush.msra.mxu3 %v325_v19  ;;  %v311_v29 = vld [vmem:[#allocation2 + $0x108] sm:$0xff]  ;;  %v312_v30 = vld [vmem:[#allocation2 + $0x110] sm:$0xff]  ;;  %v313_v31 = vld [vmem:[#allocation2 + $0x118] sm:$0xff] }
  0x3f   :  { %357 = vmatpush.msra.mxu0 %v318_v20  ;;  %380 = vmatpush.msra.mxu1 %v319_v21  ;;  %v306_v32 = vld [vmem:[#allocation2 + $0xe0] sm:$0xff]  ;;  %v307_v33 = vld [vmem:[#allocation2 + $0xe8] sm:$0xff]  ;;  %v308_v34 = vld [vmem:[#allocation2 + $0xf0] sm:$0xff] }
  0x40   :  { %403 = vmatpush.msra.mxu2 %v320_v22  ;;  %426 = vmatpush.msra.mxu3 %v321_v23  ;;  %v309_v35 = vld [vmem:[#allocation2 + $0xf8] sm:$0xff]  ;;  %v302_v36 = vld [vmem:[#allocation2 + $0xc0] sm:$0xff]  ;;  %v303_v37 = vld [vmem:[#allocation2 + $0xc8] sm:$0xff] }
  0x41   :  { %358 = vmatpush.msra.mxu0 %v314_v24  ;;  %381 = vmatpush.msra.mxu1 %v315_v25  ;;  %v304_v38 = vld [vmem:[#allocation2 + $0xd0] sm:$0xff]  ;;  %v305_v39 = vld [vmem:[#allocation2 + $0xd8] sm:$0xff]  ;;  %v298_v40 = vld [vmem:[#allocation2 + $0xa0] sm:$0xff] }
  0x42   :  { %404 = vmatpush.msra.mxu2 %v316_v26  ;;  %427 = vmatpush.msra.mxu3 %v317_v27  ;;  %v299_v41 = vld [vmem:[#allocation2 + $0xa8] sm:$0xff]  ;;  %v300_v42 = vld [vmem:[#allocation2 + $0xb0] sm:$0xff]  ;;  %v301_v43 = vld [vmem:[#allocation2 + $0xb8] sm:$0xff] }
  0x43   :  { %359 = vmatpush.msra.mxu0 %v310_v28  ;;  %382 = vmatpush.msra.mxu1 %v311_v29  ;;  %v294_v44 = vld [vmem:[#allocation2 + $0x80] sm:$0xff]  ;;  %v295_v45 = vld [vmem:[#allocation2 + $0x88] sm:$0xff]  ;;  %v296_v46 = vld [vmem:[#allocation2 + $0x90] sm:$0xff] }
  0x44   :  { %405 = vmatpush.msra.mxu2 %v312_v30  ;;  %428 = vmatpush.msra.mxu3 %v313_v31  ;;  %v297_v47 = vld [vmem:[#allocation2 + $0x98] sm:$0xff]  ;;  %v290_v48 = vld [vmem:[#allocation2 + $0x60] sm:$0xff]  ;;  %v291_v49 = vld [vmem:[#allocation2 + $0x68] sm:$0xff] }
  0x45   :  { %360 = vmatpush.msra.mxu0 %v306_v32  ;;  %383 = vmatpush.msra.mxu1 %v307_v33  ;;  %v292_v50 = vld [vmem:[#allocation2 + $0x70] sm:$0xff]  ;;  %v293_v51 = vld [vmem:[#allocation2 + $0x78] sm:$0xff]  ;;  %v286_v52 = vld [vmem:[#allocation2 + $0x40] sm:$0xff] }
  0x46   :  { %406 = vmatpush.msra.mxu2 %v308_v34  ;;  %429 = vmatpush.msra.mxu3 %v309_v35  ;;  %v287_v53 = vld [vmem:[#allocation2 + $0x48] sm:$0xff]  ;;  %v288_v54 = vld [vmem:[#allocation2 + $0x50] sm:$0xff]  ;;  %v289_v55 = vld [vmem:[#allocation2 + $0x58] sm:$0xff] }
  0x47   :  { %361 = vmatpush.msra.mxu0 %v302_v36  ;;  %384 = vmatpush.msra.mxu1 %v303_v37  ;;  %v282_v56 = vld [vmem:[#allocation2 + $0x20] sm:$0xff]  ;;  %v283_v57 = vld [vmem:[#allocation2 + $0x28] sm:$0xff]  ;;  %v284_v58 = vld [vmem:[#allocation2 + $0x30] sm:$0xff] }
  0x48   :  { %407 = vmatpush.msra.mxu2 %v304_v38  ;;  %430 = vmatpush.msra.mxu3 %v305_v39  ;;  %v285_v59 = vld [vmem:[#allocation2 + $0x38] sm:$0xff]  ;;  %v3770_v60 = vld [vmem:[#allocation5 + $0xe0] sm:$0xf]  ;;  %v4407_v61 = vld [vmem:[#allocation5 + $0xec] sm:$0xf0] }
  0x49   :  { %362 = vmatpush.msra.mxu0 %v298_v40  ;;  %385 = vmatpush.msra.mxu1 %v299_v41  ;;  %v4405_v62 = vld [vmem:[#allocation5 + $0xe4] sm:$0xf]  ;;  %v3772_v63 = vld [vmem:[#allocation5 + $0xf0] sm:$0xf0]  ;;  %v3778_v0 = vld [vmem:[#allocation5 + $0xe8] sm:$0xf]  ;;  %v5115_v8 = vor.u32 %v4407_v61, %v3770_v60 }
  0x4a   :  { %408 = vmatpush.msra.mxu2 %v300_v42  ;;  %431 = vmatpush.msra.mxu3 %v301_v43  ;;  %v4408_v1 = vld [vmem:[#allocation5 + $0xf4] sm:$0xf0]  ;;  %v4406_v2 = vld [vmem:[#allocation5 + $0xec] sm:$0xf]  ;;  %v3780_v3 = vld [vmem:[#allocation5 + $0xf8] sm:$0xf0]  ;;  %v5117_v9 = vor.u32 %v4405_v62, %v3772_v63 }
  0x4b   :  { %363 = vmatpush.msra.mxu0 %v294_v44  ;;  %386 = vmatpush.msra.mxu1 %v295_v45  ;;  %v278_v4 = vld [vmem:[#allocation2] sm:$0xff]  ;;  %v279_v5 = vld [vmem:[#allocation2 + $0x8] sm:$0xff]  ;;  %v280_v6 = vld [vmem:[#allocation2 + $0x10] sm:$0xff]  ;;  %v5119_v12 = vor.u32 %v4408_v1, %v3778_v0  ;;  %v5121_v13 = vor.u32 %v4406_v2, %v3780_v3 }
  0x4c   :  { %409 = vmatpush.msra.mxu2 %v296_v46  ;;  %432 = vmatpush.msra.mxu3 %v297_v47  ;;  %v281_v7 = vld [vmem:[#allocation2 + $0x18] sm:$0xff]  ;;  %6617 = vst [vmem:[#allocation22_spill] sm:$0xff] %v5117_v9  ;;  %v3754_v10 = vld [vmem:[#allocation5 + $0xc0] sm:$0xf]  ;;  %v4403_v11 = vld [vmem:[#allocation5 + $0xcc] sm:$0xf0] }
  0x4d   :  { %364 = vmatpush.msra.mxu0 %v290_v48  ;;  %387 = vmatpush.msra.mxu1 %v291_v49  ;;  %6618 = vst [vmem:[#allocation23_spill] sm:$0xff] %v5121_v13  ;;  %v4401_v14 = vld [vmem:[#allocation5 + $0xc4] sm:$0xf]  ;;  %v3756_v15 = vld [vmem:[#allocation5 + $0xd0] sm:$0xf0]  ;;  %v5128_v21 = vor.u32 %v4403_v11, %v3754_v10  ;;  %v277_v45 = vld [vmem:[%s6619_s19 + $0x8] sm:$0xff] }
  0x4e   :  { %410 = vmatpush.msra.mxu2 %v292_v50  ;;  %433 = vmatpush.msra.mxu3 %v293_v51  ;;  %v3762_v16 = vld [vmem:[#allocation5 + $0xc8] sm:$0xf]  ;;  %v4404_v17 = vld [vmem:[#allocation5 + $0xd4] sm:$0xf0]  ;;  %v4402_v18 = vld [vmem:[#allocation5 + $0xcc] sm:$0xf]  ;;  %v5130_v22 = vor.u32 %v4401_v14, %v3756_v15 }
  0x4f   :  { %365 = vmatpush.msra.mxu0 %v286_v52  ;;  %388 = vmatpush.msra.mxu1 %v287_v53  ;;  %v3764_v19 = vld [vmem:[#allocation5 + $0xd8] sm:$0xf0]  ;;  %v276_v20 = vld [vmem:[%s6619_s19] sm:$0xff]  ;;  %v4399_v24 = vld [vmem:[#allocation5 + $0xac] sm:$0xf0]  ;;  %v5134_v25 = vor.u32 %v4404_v17, %v3762_v16 }
  0x50   :  { %411 = vmatpush.msra.mxu2 %v288_v54  ;;  %434 = vmatpush.msra.mxu3 %v289_v55  ;;  %6620 = vst [vmem:[#allocation24_spill] sm:$0xff] %v5130_v22  ;;  %v3738_v23 = vld [vmem:[#allocation5 + $0xa0] sm:$0xf]  ;;  %v5136_v26 = vor.u32 %v4402_v18, %v3764_v19  ;;  %v4397_v27 = vld [vmem:[#allocation5 + $0xa4] sm:$0xf] }
  0x51   :  { %366 = vmatpush.msra.mxu0 %v282_v56  ;;  %389 = vmatpush.msra.mxu1 %v283_v57  ;;  %v3740_v28 = vld [vmem:[#allocation5 + $0xb0] sm:$0xf0]  ;;  %v3746_v29 = vld [vmem:[#allocation5 + $0xa8] sm:$0xf]  ;;  %v4400_v30 = vld [vmem:[#allocation5 + $0xb4] sm:$0xf0]  ;;  %v5140_v33 = vor.u32 %v4399_v24, %v3738_v23 }
  0x52   :  { %412 = vmatpush.msra.mxu2 %v284_v58  ;;  %435 = vmatpush.msra.mxu3 %v285_v59  ;;  %6621 = vst [vmem:[#allocation25_spill] sm:$0xff] %v5136_v26  ;;  %v4398_v31 = vld [vmem:[#allocation5 + $0xac] sm:$0xf]  ;;  %v3748_v32 = vld [vmem:[#allocation5 + $0xb8] sm:$0xf0]  ;;  %v5142_v34 = vor.u32 %v4397_v27, %v3740_v28  ;;  %v5146_v37 = vor.u32 %v4400_v30, %v3746_v29 }
  0x53   :  { %367 = vmatpush.msra.mxu0 %v278_v4  ;;  %390 = vmatpush.msra.mxu1 %v279_v5  ;;  %v3722_v35 = vld [vmem:[#allocation5 + $0x80] sm:$0xf]  ;;  %v4395_v36 = vld [vmem:[#allocation5 + $0x8c] sm:$0xf0]  ;;  %v5148_v38 = vor.u32 %v4398_v31, %v3748_v32  ;;  %v4393_v39 = vld [vmem:[#allocation5 + $0x84] sm:$0xf] }
  0x54   :  { %413 = vmatpush.msra.mxu2 %v280_v6  ;;  %436 = vmatpush.msra.mxu3 %v281_v7  ;;  %6622 = vst [vmem:[#allocation26_spill] sm:$0xff] %v5142_v34  ;;  %v3724_v40 = vld [vmem:[#allocation5 + $0x90] sm:$0xf0]  ;;  %v3730_v41 = vld [vmem:[#allocation5 + $0x88] sm:$0xf]  ;;  %v5155_v46 = vor.u32 %v4395_v36, %v3722_v35 }
  0x55   :  { %604 = vmatpush.bf16.msrb.mxu0 %v5115_v8  ;;  %617 = vmatpush.bf16.msrb.mxu1 %v5117_v9  ;;  %6623 = vst [vmem:[#allocation27_spill] sm:$0xff] %v5148_v38  ;;  %v4396_v42 = vld [vmem:[#allocation5 + $0x94] sm:$0xf0]  ;;  %v4394_v43 = vld [vmem:[#allocation5 + $0x8c] sm:$0xf]  ;;  %v5157_v47 = vor.u32 %v4393_v39, %v3724_v40 }
  0x56   :  { %630 = vmatpush.bf16.msrb.mxu2 %v5119_v12  ;;  %643 = vmatpush.bf16.msrb.mxu3 %v5121_v13  ;;  %v3732_v44 = vld [vmem:[#allocation5 + $0x98] sm:$0xf0]  ;;  %v3706_v48 = vld [vmem:[#allocation5 + $0x60] sm:$0xf]  ;;  %v4391_v49 = vld [vmem:[#allocation5 + $0x6c] sm:$0xf0]  ;;  %v5161_v50 = vor.u32 %v4396_v42, %v3730_v41 }
  0x57   :  { %368 = vmatmul.f32.vlgmr.msra.gmra.mxu0 %v276_v20  ;;  %391 = vmatmul.f32.vlgmr.msra.gmra.mxu1 %v276_v20  ;;  %6624 = vst [vmem:[#allocation28_spill] sm:$0xff] %v5157_v47  ;;  %v5163_v51 = vor.u32 %v4394_v43, %v3732_v44  ;;  %v4389_v52 = vld [vmem:[#allocation5 + $0x64] sm:$0xf]  ;;  %v3708_v53 = vld [vmem:[#allocation5 + $0x70] sm:$0xf0]  ;;  %v5167_v58 = vor.u32 %v4391_v49, %v3706_v48 }
  0x58   :  { %414 = vmatmul.f32.vlgmr.msra.gmra.mxu2 %v276_v20  ;;  %437 = vmatmul.f32.vlgmr.msra.gmra.mxu3 %v276_v20  ;;  %v3714_v54 = vld [vmem:[#allocation5 + $0x68] sm:$0xf]  ;;  %v4392_v55 = vld [vmem:[#allocation5 + $0x74] sm:$0xf0]  ;;  %v4390_v56 = vld [vmem:[#allocation5 + $0x6c] sm:$0xf]  ;;  %v5169_v59 = vor.u32 %v4389_v52, %v3708_v53 }
  0x59   :  { %605 = vmatpush.bf16.msrb.mxu0 %v5128_v21  ;;  %618 = vmatpush.bf16.msrb.mxu1 %v5130_v22  ;;  %6625 = vst [vmem:[#allocation29_spill] sm:$0xff] %v5163_v51  ;;  %v3716_v57 = vld [vmem:[#allocation5 + $0x78] sm:$0xf0]  ;;  %v3690_v60 = vld [vmem:[#allocation5 + $0x40] sm:$0xf]  ;;  %v5173_v62 = vor.u32 %v4392_v55, %v3714_v54 }
  0x5a   :  { %631 = vmatpush.bf16.msrb.mxu2 %v5134_v25  ;;  %644 = vmatpush.bf16.msrb.mxu3 %v5136_v26  ;;  %6626 = vst [vmem:[#allocation30_spill] sm:$0xff] %v5167_v58  ;;  %v4387_v61 = vld [vmem:[#allocation5 + $0x4c] sm:$0xf0]  ;;  %v5175_v63 = vor.u32 %v4390_v56, %v3716_v57  ;;  %v4385_v0 = vld [vmem:[#allocation5 + $0x44] sm:$0xf] }
  0x5b   :  { %6627 = vst [vmem:[#allocation31_spill] sm:$0xff] %v5169_v59  ;;  %v3692_v1 = vld [vmem:[#allocation5 + $0x50] sm:$0xf0]  ;;  %v3698_v2 = vld [vmem:[#allocation5 + $0x48] sm:$0xf]  ;;  %v5179_v6 = vor.u32 %v4387_v61, %v3690_v60 }
  0x5c   :  { %6628 = vst [vmem:[#allocation32_spill] sm:$0xff] %v5173_v62  ;;  %v4388_v3 = vld [vmem:[#allocation5 + $0x54] sm:$0xf0]  ;;  %v4386_v4 = vld [vmem:[#allocation5 + $0x4c] sm:$0xf]  ;;  %v5181_v7 = vor.u32 %v4385_v0, %v3692_v1 }
  0x5d   :  { %606 = vmatpush.bf16.msrb.mxu0 %v5140_v33  ;;  %619 = vmatpush.bf16.msrb.mxu1 %v5142_v34  ;;  %6629 = vst [vmem:[#allocation33_spill] sm:$0xff] %v5175_v63  ;;  %v3700_v5 = vld [vmem:[#allocation5 + $0x58] sm:$0xf0]  ;;  %v3674_v10 = vld [vmem:[#allocation5 + $0x20] sm:$0xf]  ;;  %v5185_v15 = vor.u32 %v4388_v3, %v3698_v2 }
  0x5e   :  { %632 = vmatpush.bf16.msrb.mxu2 %v5146_v37  ;;  %645 = vmatpush.bf16.msrb.mxu3 %v5148_v38  ;;  %6630 = vst [vmem:[#allocation34_spill] sm:$0xff] %v5179_v6  ;;  %v4383_v11 = vld [vmem:[#allocation5 + $0x2c] sm:$0xf0]  ;;  %v4381_v14 = vld [vmem:[#allocation5 + $0x24] sm:$0xf]  ;;  %v5187_v16 = vor.u32 %v4386_v4, %v3700_v5 }
  0x5f   :  { %371 = vmatmul.f32.gmra.mxu0 %v277_v45  ;;  %394 = vmatmul.f32.gmra.mxu1 %v277_v45  ;;  %6631 = vst [vmem:[#allocation35_spill] sm:$0xff] %v5181_v7  ;;  %v3676_v17 = vld [vmem:[#allocation5 + $0x30] sm:$0xf0]  ;;  %v3682_v18 = vld [vmem:[#allocation5 + $0x28] sm:$0xf]  ;;  %v5191_v30 = vor.u32 %v4383_v11, %v3674_v10 }
  0x60   :  { %417 = vmatmul.f32.gmra.mxu2 %v277_v45  ;;  %440 = vmatmul.f32.gmra.mxu3 %v277_v45  ;;  %6632 = vst [vmem:[#allocation36_spill] sm:$0xff] %v5185_v15  ;;  %v4384_v19 = vld [vmem:[#allocation5 + $0x34] sm:$0xf0]  ;;  %v4382_v20 = vld [vmem:[#allocation5 + $0x2c] sm:$0xf]  ;;  %v5193_v31 = vor.u32 %v4381_v14, %v3676_v17 }
  0x61   :  { %607 = vmatpush.bf16.msrb.mxu0 %v5155_v46  ;;  %620 = vmatpush.bf16.msrb.mxu1 %v5157_v47  ;;  %6633 = vst [vmem:[#allocation37_spill] sm:$0xff] %v5187_v16  ;;  %v3684_v23 = vld [vmem:[#allocation5 + $0x38] sm:$0xf0]  ;;  %v3658_v24 = vld [vmem:[#allocation5] sm:$0xf]  ;;  %v5197_v39 = vor.u32 %v4384_v19, %v3682_v18  ;;  %v4972_v18 = vmov 0  }
  0x62   :  { %633 = vmatpush.bf16.msrb.mxu2 %v5161_v50  ;;  %646 = vmatpush.bf16.msrb.mxu3 %v5163_v51  ;;  %v4379_v27 = vld [vmem:[#allocation5 + $0xc] sm:$0xf0]  ;;  %v4377_v28 = vld [vmem:[#allocation5 + $0x4] sm:$0xf]  ;;  %v3660_v29 = vld [vmem:[#allocation5 + $0x10] sm:$0xf0]  ;;  %v5199_v40 = vor.u32 %v4382_v20, %v3684_v23 }
  0x63   :  { %6634 = vst [vmem:[#allocation38_spill] sm:$0xff] %v5191_v30  ;;  %v3666_v32 = vld [vmem:[#allocation5 + $0x8] sm:$0xf]  ;;  %v4380_v35 = vld [vmem:[#allocation5 + $0x14] sm:$0xf0]  ;;  %v5203_v48 = vor.u32 %v4379_v27, %v3658_v24  ;;  %v5205_v49 = vor.u32 %v4377_v28, %v3660_v29 }
  0x64   :  { %6635 = vst [vmem:[#allocation39_spill] sm:$0xff] %v5193_v31  ;;  %v4378_v36 = vld [vmem:[#allocation5 + $0xc] sm:$0xf]  ;;  %v3668_v41 = vld [vmem:[#allocation5 + $0x18] sm:$0xf0]  ;;  %v5209_v52 = vor.u32 %v4380_v35, %v3666_v32 }
  0x65   :  { %608 = vmatpush.bf16.msrb.mxu0 %v5167_v58  ;;  %621 = vmatpush.bf16.msrb.mxu1 %v5169_v59  ;;  %6636 = vst [vmem:[#allocation40_spill] sm:$0xff] %v5197_v39  ;;  %v4026_v42 = vld [vmem:[#allocation7 + $0x1e0] sm:$0xf]  ;;  %v4471_v43 = vld [vmem:[#allocation7 + $0x1ec] sm:$0xf0]  ;;  %v5211_v53 = vor.u32 %v4378_v36, %v3668_v41 }
  0x66   :  { %634 = vmatpush.bf16.msrb.mxu2 %v5173_v62  ;;  %647 = vmatpush.bf16.msrb.mxu3 %v5175_v63  ;;  %6637 = vst [vmem:[#allocation41_spill] sm:$0xff] %v5199_v40  ;;  %v4469_v44 = vld [vmem:[#allocation7 + $0x1e4] sm:$0xf]  ;;  %v4028_v45 = vld [vmem:[#allocation7 + $0x1f0] sm:$0xf0]  ;;  %v5213_v54 = vor.u32 %v4471_v43, %v4026_v42 }
  0x67   :  { %6638 = vst [vmem:[#allocation42_spill] sm:$0xff] %v5203_v48  ;;  %v5215_v55 = vor.u32 %v4469_v44, %v4028_v45  ;;  %v4010_v56 = vld [vmem:[#allocation7 + $0x1c0] sm:$0xf]  ;;  %v4467_v57 = vld [vmem:[#allocation7 + $0x1cc] sm:$0xf0] }
  0x68   :  { %6639 = vst [vmem:[#allocation43_spill] sm:$0xff] %v5205_v49  ;;  %v4465_v60 = vld [vmem:[#allocation7 + $0x1c4] sm:$0xf]  ;;  %v4012_v61 = vld [vmem:[#allocation7 + $0x1d0] sm:$0xf0]  ;;  %v5225_v5 = vor.u32 %v4467_v57, %v4010_v56 }
  0x69   :  { %609 = vmatpush.bf16.msrb.mxu0 %v5179_v6  ;;  %622 = vmatpush.bf16.msrb.mxu1 %v5181_v7  ;;  %6640 = vst [vmem:[#allocation44_spill] sm:$0xff] %v5209_v52  ;;  %v3898_v0 = vld [vmem:[#allocation7 + $0xe0] sm:$0xf]  ;;  %v4439_v1 = vld [vmem:[#allocation7 + $0xec] sm:$0xf0]  ;;  %v5227_v10 = vor.u32 %v4465_v60, %v4012_v61 }
  0x6a   :  { %635 = vmatpush.bf16.msrb.mxu2 %v5185_v15  ;;  %648 = vmatpush.bf16.msrb.mxu3 %v5187_v16  ;;  %6641 = vst [vmem:[#allocation45_spill] sm:$0xff] %v5211_v53  ;;  %v4437_v2 = vld [vmem:[#allocation7 + $0xe4] sm:$0xf]  ;;  %v5221_v3 = vor.u32 %v4439_v1, %v3898_v0  ;;  %v3900_v4 = vld [vmem:[#allocation7 + $0xf0] sm:$0xf0] }
  0x6b   :  { %6642 = vst [vmem:[#allocation46_spill] sm:$0xff] %v5213_v54  ;;  %v3994_v11 = vld [vmem:[#allocation7 + $0x1a0] sm:$0xf]  ;;  %v4463_v14 = vld [vmem:[#allocation7 + $0x1ac] sm:$0xf0]  ;;  %v5229_v17 = vor.u32 %v4437_v2, %v3900_v4 }
  0x6c   :  { %6643 = vst [vmem:[#allocation47_spill] sm:$0xff] %v5215_v55  ;;  %v4461_v19 = vld [vmem:[#allocation7 + $0x1a4] sm:$0xf]  ;;  %v3996_v20 = vld [vmem:[#allocation7 + $0x1b0] sm:$0xf0]  ;;  %v5239_v35 = vor.u32 %v4463_v14, %v3994_v11 }
  0x6d   :  { %610 = vmatpush.bf16.msrb.mxu0 %v5191_v30  ;;  %623 = vmatpush.bf16.msrb.mxu1 %v5193_v31  ;;  %6644 = vst [vmem:[#allocation48_spill] sm:$0xff] %v5221_v3  ;;  %v3882_v23 = vld [vmem:[#allocation7 + $0xc0] sm:$0xf]  ;;  %v4435_v24 = vld [vmem:[#allocation7 + $0xcc] sm:$0xf0]  ;;  %v5241_v36 = vor.u32 %v4461_v19, %v3996_v20 }
  0x6e   :  { %636 = vmatpush.bf16.msrb.mxu2 %v5197_v39  ;;  %649 = vmatpush.bf16.msrb.mxu3 %v5199_v40  ;;  %6645 = vst [vmem:[#allocation49_spill] sm:$0xff] %v5225_v5  ;;  %v4433_v27 = vld [vmem:[#allocation7 + $0xc4] sm:$0xf]  ;;  %v3884_v28 = vld [vmem:[#allocation7 + $0xd0] sm:$0xf0]  ;;  %v5233_v29 = vor.u32 %v4435_v24, %v3882_v23 }
  0x6f   :  { %6646 = vst [vmem:[#allocation50_spill] sm:$0xff] %v5227_v10  ;;  %v5235_v32 = vor.u32 %v4433_v27, %v3884_v28  ;;  %v3978_v41 = vld [vmem:[#allocation7 + $0x180] sm:$0xf]  ;;  %v4459_v42 = vld [vmem:[#allocation7 + $0x18c] sm:$0xf0] }
  0x70   :  { %6647 = vst [vmem:[#allocation51_spill] sm:$0xff] %v5229_v17  ;;  %v4457_v43 = vld [vmem:[#allocation7 + $0x184] sm:$0xf]  ;;  %v3980_v44 = vld [vmem:[#allocation7 + $0x190] sm:$0xf0]  ;;  %v5251_v1 = vor.u32 %v4459_v42, %v3978_v41 }
  0x71   :  { %611 = vmatpush.bf16.msrb.mxu0 %v5203_v48  ;;  %624 = vmatpush.bf16.msrb.mxu1 %v5205_v49  ;;  %6648 = vst [vmem:[#allocation52_spill] sm:$0xff] %v5233_v29  ;;  %v3866_v45 = vld [vmem:[#allocation7 + $0xa0] sm:$0xf]  ;;  %v4431_v56 = vld [vmem:[#allocation7 + $0xac] sm:$0xf0]  ;;  %v5253_v2 = vor.u32 %v4457_v43, %v3980_v44 }
  0x72   :  { %637 = vmatpush.bf16.msrb.mxu2 %v5209_v52  ;;  %650 = vmatpush.bf16.msrb.mxu3 %v5211_v53  ;;  %6649 = vst [vmem:[#allocation53_spill] sm:$0xff] %v5235_v32  ;;  %v4429_v57 = vld [vmem:[#allocation7 + $0xa4] sm:$0xf]  ;;  %v3868_v60 = vld [vmem:[#allocation7 + $0xb0] sm:$0xf0]  ;;  %v5245_v61 = vor.u32 %v4431_v56, %v3866_v45 }
  0x73   :  { %v5247_v0 = vor.u32 %v4429_v57, %v3868_v60  ;;  %6652 = vst [vmem:[#allocation56_spill] sm:$0xff] %v5251_v1  ;;  %v3962_v4 = vld [vmem:[#allocation7 + $0x160] sm:$0xf]  ;;  %v4455_v11 = vld [vmem:[#allocation7 + $0x16c] sm:$0xf0] }
  0x74   :  { %612 = vmatmul.bf16.vlgmr.msrb.gmra.mxu0 %v4972_v18  ;;  %625 = vmatmul.bf16.vlgmr.msrb.gmra.mxu1 %v4972_v18  ;;  %6650 = vst [vmem:[#allocation54_spill] sm:$0xff] %v5245_v61  ;;  %v4453_v14 = vld [vmem:[#allocation7 + $0x164] sm:$0xf]  ;;  %v5259_v19 = vor.u32 %v4455_v11, %v3962_v4  ;;  %v3946_v23 = vld [vmem:[#allocation7 + $0x140] sm:$0xf] }
  0x75   :  { %1013 = vmatpush.bf16.msra.mxu1 %v5213_v54  ;;  %638 = vmatmul.bf16.vlgmr.msrb.gmra.mxu2 %v4972_v18  ;;  %6651 = vst [vmem:[#allocation55_spill] sm:$0xff] %v5247_v0  ;;  %v4451_v24 = vld [vmem:[#allocation7 + $0x14c] sm:$0xf0]  ;;  %v4449_v27 = vld [vmem:[#allocation7 + $0x144] sm:$0xf] }
  0x76   :  { %1039 = vmatpush.bf16.msra.mxu3 %v5215_v55  ;;  %1000 = vmatpush.bf16.msra.mxu0 %v5221_v3  ;;  %6653 = vst [vmem:[#allocation57_spill] sm:$0xff] %v5253_v2  ;;  %v3948_v28 = vld [vmem:[#allocation7 + $0x150] sm:$0xf0]  ;;  %v5265_v41 = vor.u32 %v4451_v24, %v3946_v23  ;;  %v3930_v43 = vld [vmem:[#allocation7 + $0x120] sm:$0xf] }
  0x77   :  { %651 = vmatmul.bf16.vlgmr.msrb.gmra.mxu3 %v4972_v18  ;;  %1026 = vmatpush.bf16.msra.mxu2 %v5229_v17  ;;  %v3964_v18 = vld [vmem:[#allocation7 + $0x170] sm:$0xf0]  ;;  %6654 = vst [vmem:[#allocation58_spill] sm:$0xff] %v5259_v19  ;;  %v5267_v42 = vor.u32 %v4449_v27, %v3948_v28  ;;  %v4447_v44 = vld [vmem:[#allocation7 + $0x12c] sm:$0xf0] }
  0x78   :  { %v5261_v20 = vor.u32 %v4453_v14, %v3964_v18  ;;  %6656 = vst [vmem:[#allocation60_spill] sm:$0xff] %v5265_v41  ;;  %v4445_v45 = vld [vmem:[#allocation7 + $0x124] sm:$0xf]  ;;  %v3932_v56 = vld [vmem:[#allocation7 + $0x130] sm:$0xf0]  ;;  %v5271_v57 = vor.u32 %v4447_v44, %v3930_v43 }
  0x79   :  { %1014 = vmatpush.bf16.msra.mxu1 %v5225_v5  ;;  %6657 = vst [vmem:[#allocation61_spill] sm:$0xff] %v5267_v42  ;;  %v5273_v60 = vor.u32 %v4445_v45, %v3932_v56  ;;  %v3914_v4 = vld [vmem:[#allocation7 + $0x100] sm:$0xf]  ;;  %v4443_v11 = vld [vmem:[#allocation7 + $0x10c] sm:$0xf0] }
  0x7a   :  { %1040 = vmatpush.bf16.msra.mxu3 %v5227_v10  ;;  %1001 = vmatpush.bf16.msra.mxu0 %v5233_v29  ;;  %6655 = vst [vmem:[#allocation59_spill] sm:$0xff] %v5261_v20  ;;  %v4441_v14 = vld [vmem:[#allocation7 + $0x104] sm:$0xf]  ;;  %v3916_v18 = vld [vmem:[#allocation7 + $0x110] sm:$0xf0] }
  0x7b   :  { %1027 = vmatpush.bf16.msra.mxu2 %v5235_v32  ;;  %6658 = vst [vmem:[#allocation62_spill] sm:$0xff] %v5271_v57  ;;  %v4034_v23 = vld [vmem:[#allocation7 + $0x1e8] sm:$0xf]  ;;  %v4472_v24 = vld [vmem:[#allocation7 + $0x1f4] sm:$0xf0] }
  0x7c   :  { %6659 = vst [vmem:[#allocation63_spill] sm:$0xff] %v5273_v60  ;;  %v4470_v27 = vld [vmem:[#allocation7 + $0x1ec] sm:$0xf]  ;;  %v4036_v28 = vld [vmem:[#allocation7 + $0x1f8] sm:$0xf0]  ;;  %v5281_v43 = vor.u32 %v4472_v24, %v4034_v23 }
  0x7d   :  { %1015 = vmatpush.bf16.msra.mxu1 %v5239_v35  ;;  %v5283_v44 = vor.u32 %v4470_v27, %v4036_v28  ;;  %v4018_v45 = vld [vmem:[#allocation7 + $0x1c8] sm:$0xf]  ;;  %v4468_v56 = vld [vmem:[#allocation7 + $0x1d4] sm:$0xf0]  ;;  %v4466_v32 = vld [vmem:[#allocation7 + $0x1cc] sm:$0xf] }
  0x7e   :  { %1041 = vmatpush.bf16.msra.mxu3 %v5241_v36  ;;  %1002 = vmatpush.bf16.msra.mxu0 %v5245_v61  ;;  %v5279_v61 = vor.u32 %v4441_v14, %v3916_v18  ;;  %6662 = vst [vmem:[#allocation66_spill] sm:$0xff] %v5281_v43  ;;  %v4020_v29 = vld [vmem:[#allocation7 + $0x1d8] sm:$0xf0]  ;;  %v4002_v14 = vld [vmem:[#allocation7 + $0x1a8] sm:$0xf] }
  0x7f   :  { %1028 = vmatpush.bf16.msra.mxu2 %v5247_v0  ;;  %v5277_v0 = vor.u32 %v4443_v11, %v3914_v4  ;;  %6663 = vst [vmem:[#allocation67_spill] sm:$0xff] %v5283_v44  ;;  %v5289_v4 = vor.u32 %v4468_v56, %v4018_v45  ;;  %v5291_v11 = vor.u32 %v4466_v32, %v4020_v29  ;;  %v4464_v18 = vld [vmem:[#allocation7 + $0x1b4] sm:$0xf0]  ;;  %v4462_v23 = vld [vmem:[#allocation7 + $0x1ac] sm:$0xf] }
  0x80   :  { %6661 = vst [vmem:[#allocation65_spill] sm:$0xff] %v5279_v61  ;;  %v4004_v24 = vld [vmem:[#allocation7 + $0x1b8] sm:$0xf0]  ;;  %v5295_v27 = vor.u32 %v4464_v18, %v4002_v14  ;;  %v3986_v17 = vld [vmem:[#allocation7 + $0x188] sm:$0xf] }
  0x81   :  { %1016 = vmatpush.bf16.msra.mxu1 %v5251_v1  ;;  %6660 = vst [vmem:[#allocation64_spill] sm:$0xff] %v5277_v0  ;;  %v5297_v28 = vor.u32 %v4462_v23, %v4004_v24  ;;  %v4460_v3 = vld [vmem:[#allocation7 + $0x194] sm:$0xf0]  ;;  %v4458_v52 = vld [vmem:[#allocation7 + $0x18c] sm:$0xf] }
  0x82   :  { %1042 = vmatpush.bf16.msra.mxu3 %v5253_v2  ;;  %6664 = vst [vmem:[#allocation68_spill] sm:$0xff] %v5289_v4  ;;  %v3988_v48 = vld [vmem:[#allocation7 + $0x198] sm:$0xf0]  ;;  %v5301_v29 = vor.u32 %v4460_v3, %v3986_v17  ;;  %v3850_v45 = vld [vmem:[#allocation7 + $0x80] sm:$0xf] }
  0x83   :  { %6665 = vst [vmem:[#allocation69_spill] sm:$0xff] %v5291_v11  ;;  %v5303_v32 = vor.u32 %v4458_v52, %v3988_v48  ;;  %v4427_v56 = vld [vmem:[#allocation7 + $0x8c] sm:$0xf0]  ;;  %v4425_v18 = vld [vmem:[#allocation7 + $0x84] sm:$0xf] }
  0x84   :  { %6666 = vst [vmem:[#allocation70_spill] sm:$0xff] %v5295_v27  ;;  %v5307_v14 = vor.u32 %v4427_v56, %v3850_v45  ;;  %v3852_v23 = vld [vmem:[#allocation7 + $0x90] sm:$0xf0]  ;;  %v3970_v24 = vld [vmem:[#allocation7 + $0x168] sm:$0xf] }
  0x85   :  { %1017 = vmatpush.bf16.msra.mxu1 %v5259_v19  ;;  %6667 = vst [vmem:[#allocation71_spill] sm:$0xff] %v5297_v28  ;;  %v5309_v39 = vor.u32 %v4425_v18, %v3852_v23  ;;  %v4456_v30 = vld [vmem:[#allocation7 + $0x174] sm:$0xf0]  ;;  %v4454_v15 = vld [vmem:[#allocation7 + $0x16c] sm:$0xf] }
  0x86   :  { %1043 = vmatpush.bf16.msra.mxu3 %v5261_v20  ;;  %6668 = vst [vmem:[#allocation72_spill] sm:$0xff] %v5301_v29  ;;  %v3972_v6 = vld [vmem:[#allocation7 + $0x178] sm:$0xf0]  ;;  %1003 = vmatpush.bf16.msra.mxu0 %v5307_v14  ;;  %v5312_v48 = vor.u32 %v4456_v30, %v3970_v24  ;;  %v3834_v3 = vld [vmem:[#allocation7 + $0x60] sm:$0xf] }
  0x87   :  { %6669 = vst [vmem:[#allocation73_spill] sm:$0xff] %v5303_v32  ;;  %v5314_v52 = vor.u32 %v4454_v15, %v3972_v6  ;;  %1029 = vmatpush.bf16.msra.mxu2 %v5309_v39  ;;  %v4423_v17 = vld [vmem:[#allocation7 + $0x6c] sm:$0xf0]  ;;  %v4421_v56 = vld [vmem:[#allocation7 + $0x64] sm:$0xf] }
  0x88   :  { %6670 = vst [vmem:[#allocation74_spill] sm:$0xff] %v5307_v14  ;;  %v5319_v45 = vor.u32 %v4423_v17, %v3834_v3  ;;  %v3836_v18 = vld [vmem:[#allocation7 + $0x70] sm:$0xf0]  ;;  %v3954_v23 = vld [vmem:[#allocation7 + $0x148] sm:$0xf] }
  0x89   :  { %1018 = vmatpush.bf16.msra.mxu1 %v5265_v41  ;;  %6671 = vst [vmem:[#allocation75_spill] sm:$0xff] %v5309_v39  ;;  %v5321_v62 = vor.u32 %v4421_v56, %v3836_v18  ;;  %v4452_v14 = vld [vmem:[#allocation7 + $0x154] sm:$0xf0]  ;;  %v4450_v30 = vld [vmem:[#allocation7 + $0x14c] sm:$0xf] }
  0x8a   :  { %1044 = vmatpush.bf16.msra.mxu3 %v5267_v42  ;;  %6672 = vst [vmem:[#allocation76_spill] sm:$0xff] %v5312_v48  ;;  %v3956_v24 = vld [vmem:[#allocation7 + $0x158] sm:$0xf0]  ;;  %1004 = vmatpush.bf16.msra.mxu0 %v5319_v45  ;;  %v5324_v6 = vor.u32 %v4452_v14, %v3954_v23  ;;  %v3818_v39 = vld [vmem:[#allocation7 + $0x40] sm:$0xf] }
  0x8b   :  { %6673 = vst [vmem:[#allocation77_spill] sm:$0xff] %v5314_v52  ;;  %v5326_v15 = vor.u32 %v4450_v30, %v3956_v24  ;;  %1030 = vmatpush.bf16.msra.mxu2 %v5321_v62  ;;  %v3820_v17 = vld [vmem:[#allocation7 + $0x50] sm:$0xf0]  ;;  %v3938_v58 = vld [vmem:[#allocation7 + $0x128] sm:$0xf] }
  0x8c   :  { %6674 = vst [vmem:[#allocation78_spill] sm:$0xff] %v5319_v45  ;;  %v4448_v56 = vld [vmem:[#allocation7 + $0x134] sm:$0xf0]  ;;  %v4446_v23 = vld [vmem:[#allocation7 + $0x12c] sm:$0xf] }
  0x8d   :  { %1019 = vmatpush.bf16.msra.mxu1 %v5271_v57  ;;  %6675 = vst [vmem:[#allocation79_spill] sm:$0xff] %v5321_v62  ;;  %v5335_v14 = vor.u32 %v4448_v56, %v3938_v58  ;;  %v3940_v30 = vld [vmem:[#allocation7 + $0x138] sm:$0xf0]  ;;  %v4413_v62 = vld [vmem:[#allocation7 + $0x24] sm:$0xf]  ;;  %v4973_v56 = vmov 0.0|0.0  }
  0x8e   :  { %1045 = vmatpush.bf16.msra.mxu3 %v5273_v60  ;;  %6676 = vst [vmem:[#allocation80_spill] sm:$0xff] %v5324_v6  ;;  %v5337_v24 = vor.u32 %v4446_v23, %v3940_v30  ;;  %v3922_v58 = vld [vmem:[#allocation7 + $0x108] sm:$0xf]  ;;  %v4444_v23 = vld [vmem:[#allocation7 + $0x114] sm:$0xf0] }
  0x8f   :  { %6677 = vst [vmem:[#allocation81_spill] sm:$0xff] %v5326_v15  ;;  %v4442_v30 = vld [vmem:[#allocation7 + $0x10c] sm:$0xf] }
  0x90   :  { %6680 = vst [vmem:[#allocation84_spill] sm:$0xff] %v5335_v14 }
  0x91   :  { %1020 = vmatpush.bf16.msra.mxu1 %v5277_v0  ;;  %6681 = vst [vmem:[#allocation85_spill] sm:$0xff] %v5337_v24 }
  0x92   :  { %1046 = vmatpush.bf16.msra.mxu3 %v5279_v61 }
  0x94   :  { %1021 = vmatmul.bf16.vlgmr.msra.gmra.mxu1 %v4973_v56 }
  0x95   :  { %1065 = vmatpush.bf16.msrb.mxu1 %v5281_v43  ;;  %1047 = vmatmul.bf16.vlgmr.msra.gmra.mxu3 %v4973_v56 }
  0x96   :  { %1091 = vmatpush.bf16.msrb.mxu3 %v5283_v44 }
  0x99   :  { %1066 = vmatpush.bf16.msrb.mxu1 %v5289_v4 }
  0x9a   :  { %1092 = vmatpush.bf16.msrb.mxu3 %v5291_v11 }
  0x9d   :  { %1067 = vmatpush.bf16.msrb.mxu1 %v5295_v27 }
  0x9e   :  { %1093 = vmatpush.bf16.msrb.mxu3 %v5297_v28 }
  0xa1   :  { %1068 = vmatpush.bf16.msrb.mxu1 %v5301_v29 }
  0xa2   :  { %1094 = vmatpush.bf16.msrb.mxu3 %v5303_v32 }
  0xa5   :  { %1069 = vmatpush.bf16.msrb.mxu1 %v5312_v48  ;;  %v4417_v48 = vld [vmem:[#allocation7 + $0x44] sm:$0xf] }
  0xa6   :  { %1095 = vmatpush.bf16.msrb.mxu3 %v5314_v52  ;;  %v4419_v52 = vld [vmem:[#allocation7 + $0x4c] sm:$0xf0]  ;;  %v5333_v18 = vor.u32 %v4417_v48, %v3820_v17  ;;  %v3804_v48 = vld [vmem:[#allocation7 + $0x30] sm:$0xf0] }
  0xa7   :  { %v5329_v3 = vor.u32 %v4419_v52, %v3818_v39  ;;  %v3802_v39 = vld [vmem:[#allocation7 + $0x20] sm:$0xf]  ;;  %v4415_v52 = vld [vmem:[#allocation7 + $0x2c] sm:$0xf0]  ;;  %v5345_v17 = vor.u32 %v4413_v62, %v3804_v48 }
  0xa8   :  { %6679 = vst [vmem:[#allocation83_spill] sm:$0xff] %v5333_v18  ;;  %1031 = vmatpush.bf16.msra.mxu2 %v5333_v18  ;;  %v5343_v45 = vor.u32 %v4415_v52, %v3802_v39  ;;  %v5348_v18 = vor.u32 %v4444_v23, %v3922_v58  ;;  %v3786_v62 = vld [vmem:[#allocation7] sm:$0xf]  ;;  %v4411_v39 = vld [vmem:[#allocation7 + $0xc] sm:$0xf0] }
  0xa9   :  { %6678 = vst [vmem:[#allocation82_spill] sm:$0xff] %v5329_v3  ;;  %1070 = vmatpush.bf16.msrb.mxu1 %v5324_v6  ;;  %1005 = vmatpush.bf16.msra.mxu0 %v5329_v3  ;;  %v3924_v3 = vld [vmem:[#allocation7 + $0x118] sm:$0xf0]  ;;  %v4409_v52 = vld [vmem:[#allocation7 + $0x4] sm:$0xf]  ;;  %v5359_v48 = vor.u32 %v4411_v39, %v3786_v62 }
  0xaa   :  { %1096 = vmatpush.bf16.msrb.mxu3 %v5326_v15  ;;  %6682 = vst [vmem:[#allocation86_spill] sm:$0xff] %v5343_v45  ;;  %v5350_v15 = vor.u32 %v4442_v30, %v3924_v3  ;;  %v3788_v3 = vld [vmem:[#allocation7 + $0x10] sm:$0xf0]  ;;  %v3906_v58 = vld [vmem:[#allocation7 + $0xe8] sm:$0xf] }
  0xab   :  { %6683 = vst [vmem:[#allocation87_spill] sm:$0xff] %v5345_v17  ;;  %v4440_v23 = vld [vmem:[#allocation7 + $0xf4] sm:$0xf0]  ;;  %v5363_v30 = vor.u32 %v4409_v52, %v3788_v3  ;;  %v3890_v62 = vld [vmem:[#allocation7 + $0xc8] sm:$0xf] }
  0xac   :  { %6684 = vst [vmem:[#allocation88_spill] sm:$0xff] %v5348_v18  ;;  %1032 = vmatpush.bf16.msra.mxu2 %v5345_v17  ;;  %v4436_v39 = vld [vmem:[#allocation7 + $0xd4] sm:$0xf0]  ;;  %v3892_v3 = vld [vmem:[#allocation7 + $0xd8] sm:$0xf0] }
  0xad   :  { %1071 = vmatpush.bf16.msrb.mxu1 %v5335_v14  ;;  %1006 = vmatpush.bf16.msra.mxu0 %v5343_v45  ;;  %6685 = vst [vmem:[#allocation89_spill] sm:$0xff] %v5350_v15  ;;  %v5374_v52 = vor.u32 %v4436_v39, %v3890_v62  ;;  %v3876_v62 = vld [vmem:[#allocation7 + $0xb8] sm:$0xf0] }
  0xae   :  { %1097 = vmatpush.bf16.msrb.mxu3 %v5337_v24  ;;  %6686 = vst [vmem:[#allocation90_spill] sm:$0xff] %v5359_v48 }
  0xaf   :  { %6687 = vst [vmem:[#allocation91_spill] sm:$0xff] %v5363_v30 }
  0xb0   :  { %1033 = vmatpush.bf16.msra.mxu2 %v5363_v30  ;;  %6690 = vst [vmem:[#allocation94_spill] sm:$0xff] %v5374_v52 }
  0xb1   :  { %1072 = vmatpush.bf16.msrb.mxu1 %v5348_v18  ;;  %1007 = vmatpush.bf16.msra.mxu0 %v5359_v48 }
  0xb2   :  { %1098 = vmatpush.bf16.msrb.mxu3 %v5350_v15 }
  0xb4   :  { %1073 = vmatmul.bf16.vlgmr.msrb.gmra.mxu1 %v4973_v56 }
  0xb5   :  { %1135 = vmatpush.bf16.msra.mxu1 %v5117_v9  ;;  %v5365_v9 = vor.u32 %v4440_v23, %v3906_v58  ;;  %1099 = vmatmul.bf16.vlgmr.msrb.gmra.mxu3 %v4973_v56  ;;  %v4430_v23 = vld [vmem:[#allocation7 + $0xac] sm:$0xf]  ;;  %v3858_v56 = vld [vmem:[#allocation7 + $0x88] sm:$0xf] }
  0xb6   :  { %1161 = vmatpush.bf16.msra.mxu3 %v5121_v13  ;;  %v4438_v13 = vld [vmem:[#allocation7 + $0xec] sm:$0xf]  ;;  %v5385_v39 = vor.u32 %v4430_v23, %v3876_v62  ;;  %v3842_v23 = vld [vmem:[#allocation7 + $0x68] sm:$0xf]  ;;  %v4424_v62 = vld [vmem:[#allocation7 + $0x74] sm:$0xf0] }
  0xb7   :  { %6688 = vst [vmem:[#allocation92_spill] sm:$0xff] %v5365_v9  ;;  %1052 = vmatpush.bf16.msrb.mxu0 %v5365_v9 }
  0xb8   :  { %6693 = vst [vmem:[#allocation97_spill] sm:$0xff] %v5385_v39 }
  0xb9   :  { %1136 = vmatpush.bf16.msra.mxu1 %v5130_v22  ;;  %v3908_v22 = vld [vmem:[#allocation7 + $0xf8] sm:$0xf0] }
  0xba   :  { %1162 = vmatpush.bf16.msra.mxu3 %v5136_v26  ;;  %v5368_v26 = vor.u32 %v4438_v13, %v3908_v22  ;;  %v3874_v13 = vld [vmem:[#allocation7 + $0xa8] sm:$0xf]  ;;  %v4432_v22 = vld [vmem:[#allocation7 + $0xb4] sm:$0xf0] }
  0xbb   :  { %1053 = vmatpush.bf16.msrb.mxu0 %v5374_v52 }
  0xbc   :  { %6689 = vst [vmem:[#allocation93_spill] sm:$0xff] %v5368_v26  ;;  %1078 = vmatpush.bf16.msrb.mxu2 %v5368_v26 }
  0xbd   :  { %1137 = vmatpush.bf16.msra.mxu1 %v5142_v34  ;;  %v4434_v34 = vld [vmem:[#allocation7 + $0xcc] sm:$0xf] }
  0xbe   :  { %1163 = vmatpush.bf16.msra.mxu3 %v5148_v38  ;;  %v5377_v58 = vor.u32 %v4434_v34, %v3892_v3  ;;  %v5382_v38 = vor.u32 %v4432_v22, %v3874_v13  ;;  %v4428_v3 = vld [vmem:[#allocation7 + $0x94] sm:$0xf0]  ;;  %v3860_v13 = vld [vmem:[#allocation7 + $0x98] sm:$0xf0] }
  0xc0   :  { %6691 = vst [vmem:[#allocation95_spill] sm:$0xff] %v5377_v58  ;;  %1079 = vmatpush.bf16.msrb.mxu2 %v5377_v58  ;;  %1054 = vmatpush.bf16.msrb.mxu0 %v5382_v38  ;;  %v5390_v58 = vor.u32 %v4428_v3, %v3858_v56 }
  0xc1   :  { %1138 = vmatpush.bf16.msra.mxu1 %v5157_v47  ;;  %6692 = vst [vmem:[#allocation96_spill] sm:$0xff] %v5382_v38  ;;  %v4426_v47 = vld [vmem:[#allocation7 + $0x8c] sm:$0xf] }
  0xc2   :  { %1164 = vmatpush.bf16.msra.mxu3 %v5163_v51  ;;  %6694 = vst [vmem:[#allocation98_spill] sm:$0xff] %v5390_v58  ;;  %v5393_v22 = vor.u32 %v4426_v47, %v3860_v13  ;;  %v3826_v47 = vld [vmem:[#allocation7 + $0x48] sm:$0xf]  ;;  %v4420_v13 = vld [vmem:[#allocation7 + $0x54] sm:$0xf0] }
  0xc4   :  { %1080 = vmatpush.bf16.msrb.mxu2 %v5385_v39  ;;  %6695 = vst [vmem:[#allocation99_spill] sm:$0xff] %v5393_v22  ;;  %1055 = vmatpush.bf16.msrb.mxu0 %v5390_v58  ;;  %v3844_v39 = vld [vmem:[#allocation7 + $0x78] sm:$0xf0] }
  0xc5   :  { %1139 = vmatpush.bf16.msra.mxu1 %v5169_v59  ;;  %v5398_v59 = vor.u32 %v4424_v62, %v3842_v23  ;;  %v5410_v62 = vor.u32 %v4420_v13, %v3826_v47  ;;  %v3810_v47 = vld [vmem:[#allocation7 + $0x28] sm:$0xf]  ;;  %v4416_v13 = vld [vmem:[#allocation7 + $0x34] sm:$0xf0] }
  0xc6   :  { %1165 = vmatpush.bf16.msra.mxu3 %v5175_v63  ;;  %v4422_v63 = vld [vmem:[#allocation7 + $0x6c] sm:$0xf] }
  0xc7   :  { %6696 = vst [vmem:[#allocation100_spill] sm:$0xff] %v5398_v59 }
  0xc8   :  { %1081 = vmatpush.bf16.msrb.mxu2 %v5393_v22  ;;  %1056 = vmatpush.bf16.msrb.mxu0 %v5398_v59  ;;  %6700 = vst [vmem:[#allocation104_spill] sm:$0xff] %v5410_v62 }
  0xc9   :  { %1140 = vmatpush.bf16.msra.mxu1 %v5181_v7  ;;  %v5401_v7 = vor.u32 %v4422_v63, %v3844_v39  ;;  %v5420_v39 = vld [vmem:[%s6702_s2] sm:$0xf]  ;;  %s7133_s2 = sld [smem:[#allocation120_spill]] }
  0xca   :  { %1166 = vmatpush.bf16.msra.mxu3 %v5187_v16  ;;  %v4418_v16 = vld [vmem:[#allocation7 + $0x4c] sm:$0xf]  ;;  %6703 = vst [vmem:[#allocation106_spill] sm:$0xff] %v5420_v39 }
  0xcb   :  { %6697 = vst [vmem:[#allocation101_spill] sm:$0xff] %v5401_v7 }
  0xcc   :  { %1082 = vmatpush.bf16.msrb.mxu2 %v5401_v7  ;;  %1057 = vmatpush.bf16.msrb.mxu0 %v5410_v62 }
  0xcd   :  { %1141 = vmatpush.bf16.msra.mxu1 %v5193_v31  ;;  %v4410_v31 = vld [vmem:[#allocation7 + $0xc] sm:$0xf] }
  0xce   :  { %1167 = vmatpush.bf16.msra.mxu3 %v5199_v40  ;;  %v3828_v40 = vld [vmem:[#allocation7 + $0x58] sm:$0xf0] }
  0xcf   :  { %v5414_v63 = vor.u32 %v4418_v16, %v3828_v40  ;;  %v6493_v40 = vperm.slane %v5420_v39, 1  ;;  %v3796_v16 = vld [vmem:[#allocation7 + $0x18] sm:$0xf0] }
  0xd1   :  { %1142 = vmatpush.bf16.msra.mxu1 %v5205_v49  ;;  %6701 = vst [vmem:[#allocation105_spill] sm:$0xff] %v5414_v63  ;;  %1083 = vmatpush.bf16.msrb.mxu2 %v5414_v63 }
  0xd2   :  { %1168 = vmatpush.bf16.msra.mxu3 %v5211_v53  ;;  %v3812_v53 = vld [vmem:[#allocation7 + $0x38] sm:$0xf0] }
  0xd4   :  { %v369_v51 = vpop.f32.mrf.mxu0  ;;  %v392_v34 = vpop.f32.mrf.mxu1 }
  0xd5   :  { %1235 = vmatpush.bf16.msrb.mxu1 %v5213_v54 }
  0xd6   :  { %1261 = vmatpush.bf16.msrb.mxu3 %v5215_v55 }
  0xd9   :  { %1236 = vmatpush.bf16.msrb.mxu1 %v5225_v5 }
  0xda   :  { %1262 = vmatpush.bf16.msrb.mxu3 %v5227_v10  ;;  %v5447_v10 = vadd.f32 %v392_v34, %v6493_v40 }
  0xdb   :  { %v415_v56 = vpop.f32.mrf.mxu2  ;;  %v438_v3 = vpop.f32.mrf.mxu3 }
  0xdc   :  { %v5406_v22 = vpop.f32.mrf.mxu0  ;;  %v5408_v23 = vpop.f32.mrf.mxu1 }
  0xdd   :  { %6698 = vst [vmem:[#allocation102_spill] sm:$0xff] %v5406_v22  ;;  %v4414_v22 = vld [vmem:[#allocation7 + $0x2c] sm:$0xf]  ;;  %1237 = vmatpush.bf16.msrb.mxu1 %v5239_v35 }
  0xde   :  { %6699 = vst [vmem:[#allocation103_spill] sm:$0xff] %v5408_v23  ;;  %v5424_v23 = vor.u32 %v4416_v13, %v3810_v47  ;;  %v5429_v55 = vor.u32 %v4414_v22, %v3812_v53  ;;  %v3794_v47 = vld [vmem:[#allocation7 + $0x8] sm:$0xf]  ;;  %v4412_v13 = vld [vmem:[#allocation7 + $0x14] sm:$0xf0]  ;;  %v6709_v53 = vperm.slane %v5420_v39, 0  ;;  %1263 = vmatpush.bf16.msrb.mxu3 %v5241_v36 }
  0xdf   :  { %v5438_v5 = vor.u32 %v4412_v13, %v3794_v47 }
  0xe0   :  { %6704 = vst [vmem:[#allocation107_spill] sm:$0xff] %v5424_v23  ;;  %1058 = vmatpush.bf16.msrb.mxu0 %v5424_v23  ;;  %1084 = vmatpush.bf16.msrb.mxu2 %v5429_v55  ;;  %v5443_v22 = vadd.f32 %v369_v51, %v6709_v53  ;;  %v6496_v51 = vperm.slane %v5420_v39, 2  ;;  %v6497_v53 = vperm.slane %v5420_v39, 3 }
  0xe1   :  { %6705 = vst [vmem:[#allocation108_spill] sm:$0xff] %v5429_v55  ;;  %1238 = vmatpush.bf16.msrb.mxu1 %v5251_v1 }
  0xe2   :  { %6708 = vst [vmem:[#allocation111_spill] sm:$0xff] %v5438_v5  ;;  %1264 = vmatpush.bf16.msrb.mxu3 %v5253_v2 }
  0xe3   :  { %v5433_v54 = vpop.f32.mrf.mxu2  ;;  %v5435_v49 = vpop.f32.mrf.mxu3 }
  0xe4   :  { %6706 = vst [vmem:[#allocation109_spill] sm:$0xff] %v5433_v54  ;;  %v5449_v54 = vor.u32 %v4410_v31, %v3796_v16  ;;  %1059 = vmatpush.bf16.msrb.mxu0 %v5438_v5  ;;  %v5462_v16 = vadd.f32 %v415_v56, %v6496_v51 }
  0xe5   :  { %6707 = vst [vmem:[#allocation110_spill] sm:$0xff] %v5435_v49  ;;  %1239 = vmatpush.bf16.msrb.mxu1 %v5259_v19 }
  0xe6   :  { %6710 = vst [vmem:[#allocation112_spill] sm:$0xff] %v5449_v54  ;;  %1085 = vmatpush.bf16.msrb.mxu2 %v5449_v54  ;;  %1265 = vmatpush.bf16.msrb.mxu3 %v5261_v20 }
  0xe9   :  { %1240 = vmatpush.bf16.msrb.mxu1 %v5265_v41 }
  0xea   :  { %1266 = vmatpush.bf16.msrb.mxu3 %v5267_v42 }
  0xed   :  { %1241 = vmatpush.bf16.msrb.mxu1 %v5271_v57 }
  0xee   :  { %1267 = vmatpush.bf16.msrb.mxu3 %v5273_v60 }
  0xf1   :  { %v613_v49 = vpop.f32.mrf.mxu0  ;;  %v626_v55 = vpop.f32.mrf.mxu1  ;;  %1242 = vmatpush.bf16.msrb.mxu1 %v5277_v0 }
  0xf2   :  { %v656_v47 = vadd.f32 %v613_v49, %v5443_v22  ;;  %v657_v13 = vadd.f32 %v626_v55, %v5447_v10  ;;  %v5466_v49 = vadd.f32 %v438_v3, %v6497_v53  ;;  %1268 = vmatpush.bf16.msrb.mxu3 %v5279_v61 }
  0xf4   :  { %v660_v31 = vmul.f32 0.5, %v656_v47  ;;  %v664_v34 = vmul.f32 0.5, %v657_v13 }
  0xf6   :  { %4584 = vtanh.f32 %v660_v31 }
  0xf7   :  { %4586 = vtanh.f32 %v664_v34 }
  0xf8   :  { %v639_v55 = vpop.f32.mrf.mxu2 }
  0xf9   :  { %v658_v47 = vadd.f32 %v639_v55, %v5462_v16  ;;  %v615_v31 = vpop.f32.mrf.mxu0  ;;  %v628_v2 = vpop.f32.mrf.mxu1 }
  0xfa   :  { %v652_v40 = vpop.f32.mrf.mxu3 }
  0xfb   :  { %v659_v13 = vadd.f32 %v652_v40, %v5466_v49  ;;  %4588 = vtanh.f32 %v658_v47 }
  0xfc   :  { %v4585_v51 = vpop.eup %4584 }
  0xfd   :  { %v669_v56 = vmul.f32 0.5, %v659_v13  ;;  %v4587_v3 = vpop.eup %4586  ;;  %v662_v34 = vmul.f32 0.5, %v4585_v51 }
  0xfe   :  { %v666_v53 = vmul.f32 0.5, %v4587_v3 }
  0xff   :  { %4590 = vtanh.f32 %v669_v56  ;;  %v663_v39 = vadd.f32 0.5, %v662_v34 }
 0x100   :  { %v667_v20 = vadd.f32 0.5, %v666_v53  ;;  %v641_v55 = vpop.f32.mrf.mxu2 }
 0x101   :  { %v4589_v2 = vpop.eup %4588  ;;  %v6714_v55 = vld [vmem:[#allocation77_spill] sm:$0xff] }
 0x102   :  { %v654_v19 = vpop.f32.mrf.mxu3  ;;  %v673_v40 = vmul.f32 0.0, %v667_v20  ;;  %v674_v47 = vmul.f32 %v4589_v2, %v663_v39  ;;  %v6712_v20 = vld [vmem:[#allocation32_spill] sm:$0xff]  ;;  %v6715_v2 = vld [vmem:[#allocation34_spill] sm:$0xff] }
 0x103   :  { %v6711_v19 = vld [vmem:[#allocation30_spill] sm:$0xff]  ;;  %v6713_v39 = vld [vmem:[#allocation76_spill] sm:$0xff] }
 0x104   :  { %v5477_v31 = vadd.f32 %v674_v47, %v673_v40  ;;  %v6716_v40 = vld [vmem:[#allocation36_spill] sm:$0xff]  ;;  %v6717_v47 = vld [vmem:[#allocation81_spill] sm:$0xff] }
 0x105   :  { %v4591_v13 = vpop.eup %4590 }
 0x106   :  { %4592 = vtanh.f32 %v5477_v31  ;;  %v671_v51 = vmul.f32 0.5, %v4591_v13  ;;  %v6718_v13 = vld [vmem:[#allocation38_spill] sm:$0xff] }
 0x108   :  { %v672_v56 = vadd.f32 0.5, %v671_v51  ;;  %v6719_v51 = vld [vmem:[#allocation40_spill] sm:$0xff] }
 0x10c   :  { %v4593_v3 = vpop.eup %4592 }
 0x10d   :  { %v677_v53 = vmul.f32 %v4593_v3, %v672_v56  ;;  %v6720_v56 = vld [vmem:[#allocation42_spill] sm:$0xff]  ;;  %v6721_v3 = vld [vmem:[#allocation44_spill] sm:$0xff] }
 0x10f   :  { %v678_v34 = vpack.c.bf16 %v677_v53, %v677_v53  ;;  %v6722_v53 = vld [vmem:[#allocation48_spill] sm:$0xff] }
 0x111   :  { %1008 = vmatmul.bf16.vlgmr.msra.gmra.mxu0 %v678_v34  ;;  %1034 = vmatmul.bf16.vlgmr.msra.gmra.mxu2 %v678_v34 }
 0x112   :  { %1143 = vmatmul.bf16.vlgmr.msra.gmra.mxu1 %v678_v34  ;;  %1169 = vmatmul.bf16.vlgmr.msra.gmra.mxu3 %v678_v34 }
 0x113   :  { %1122 = vmatpush.bf16.msra.mxu0 %v5115_v8  ;;  %1148 = vmatpush.bf16.msra.mxu2 %v5119_v12 }
 0x114   :  { %1287 = vmatpush.bf16.msra.mxu1 %v5281_v43  ;;  %1313 = vmatpush.bf16.msra.mxu3 %v5283_v44 }
 0x117   :  { %1123 = vmatpush.bf16.msra.mxu0 %v5128_v21  ;;  %1149 = vmatpush.bf16.msra.mxu2 %v5134_v25 }
 0x118   :  { %1288 = vmatpush.bf16.msra.mxu1 %v5289_v4  ;;  %1314 = vmatpush.bf16.msra.mxu3 %v5291_v11 }
 0x11b   :  { %1124 = vmatpush.bf16.msra.mxu0 %v5140_v33  ;;  %1150 = vmatpush.bf16.msra.mxu2 %v5146_v37 }
 0x11c   :  { %1289 = vmatpush.bf16.msra.mxu1 %v5295_v27  ;;  %1315 = vmatpush.bf16.msra.mxu3 %v5297_v28  ;;  %v6731_v28 = vld [vmem:[#allocation79_spill] sm:$0xff]  ;;  %v1048_v27 = vpop.f32.mrf.mxu3 }
 0x11f   :  { %1125 = vmatpush.bf16.msra.mxu0 %v5155_v46  ;;  %1151 = vmatpush.bf16.msra.mxu2 %v5161_v50 }
 0x120   :  { %1290 = vmatpush.bf16.msra.mxu1 %v5301_v29  ;;  %1316 = vmatpush.bf16.msra.mxu3 %v5303_v32  ;;  %v6729_v32 = vld [vmem:[#allocation75_spill] sm:$0xff]  ;;  %v6730_v29 = vld [vmem:[#allocation78_spill] sm:$0xff] }
 0x121   :  { %1060 = vmatmul.bf16.vlgmr.msrb.gmra.mxu0 %v678_v34  ;;  %1086 = vmatmul.bf16.vlgmr.msrb.gmra.mxu2 %v678_v34 }
 0x123   :  { %1126 = vmatpush.bf16.msra.mxu0 %v6711_v19  ;;  %1152 = vmatpush.bf16.msra.mxu2 %v6712_v20 }
 0x124   :  { %1291 = vmatpush.bf16.msra.mxu1 %v6713_v39  ;;  %1317 = vmatpush.bf16.msra.mxu3 %v6714_v55  ;;  %v6723_v55 = vld [vmem:[#allocation51_spill] sm:$0xff]  ;;  %v6728_v39 = vld [vmem:[#allocation74_spill] sm:$0xff] }
 0x127   :  { %1127 = vmatpush.bf16.msra.mxu0 %v6715_v2  ;;  %1153 = vmatpush.bf16.msra.mxu2 %v6716_v40 }
 0x128   :  { %1292 = vmatpush.bf16.msra.mxu1 %v5324_v6  ;;  %1318 = vmatpush.bf16.msra.mxu3 %v6717_v47  ;;  %v6724_v47 = vld [vmem:[#allocation52_spill] sm:$0xff]  ;;  %v6725_v6 = vld [vmem:[#allocation53_spill] sm:$0xff] }
 0x12b   :  { %1128 = vmatpush.bf16.msra.mxu0 %v6718_v13  ;;  %1154 = vmatpush.bf16.msra.mxu2 %v6719_v51 }
 0x12c   :  { %1293 = vmatpush.bf16.msra.mxu1 %v5335_v14  ;;  %1319 = vmatpush.bf16.msra.mxu3 %v5337_v24  ;;  %v6726_v14 = vld [vmem:[#allocation54_spill] sm:$0xff]  ;;  %v6727_v24 = vld [vmem:[#allocation55_spill] sm:$0xff] }
 0x12f   :  { %1129 = vmatpush.bf16.msra.mxu0 %v6720_v56  ;;  %1155 = vmatpush.bf16.msra.mxu2 %v6721_v3 }
 0x130   :  { %1294 = vmatpush.bf16.msra.mxu1 %v5348_v18  ;;  %1320 = vmatpush.bf16.msra.mxu3 %v5350_v15  ;;  %v1022_v18 = vpop.f32.mrf.mxu1  ;;  %v6732_v15 = vld [vmem:[#allocation82_spill] sm:$0xff] }
 0x132   :  { %1130 = vmatmul.bf16.vlgmr.msra.gmra.mxu0 %v678_v34  ;;  %1156 = vmatmul.bf16.vlgmr.msra.gmra.mxu2 %v678_v34  ;;  %v6733_v34 = vld [vmem:[#allocation83_spill] sm:$0xff] }
 0x133   :  { %1222 = vmatpush.bf16.msrb.mxu0 %v6722_v53  ;;  %1248 = vmatpush.bf16.msrb.mxu2 %v6723_v55 }
 0x137   :  { %1223 = vmatpush.bf16.msrb.mxu0 %v6724_v47  ;;  %1249 = vmatpush.bf16.msrb.mxu2 %v6725_v6 }
 0x138   :  { %v1024_v11 = vpop.f32.mrf.mxu1 }
 0x139   :  { %v6736_v11 = vld [vmem:[#allocation99_spill] sm:$0xff] }
 0x13b   :  { %1224 = vmatpush.bf16.msrb.mxu0 %v6726_v14  ;;  %1250 = vmatpush.bf16.msrb.mxu2 %v6727_v24 }
 0x13f   :  { %1225 = vmatpush.bf16.msrb.mxu0 %v6728_v39  ;;  %1251 = vmatpush.bf16.msrb.mxu2 %v6729_v32 }
 0x143   :  { %1226 = vmatpush.bf16.msrb.mxu0 %v6730_v29  ;;  %1252 = vmatpush.bf16.msrb.mxu2 %v6731_v28  ;;  %v1050_v28 = vpop.f32.mrf.mxu3 }
 0x147   :  { %1227 = vmatpush.bf16.msrb.mxu0 %v6732_v15  ;;  %1253 = vmatpush.bf16.msrb.mxu2 %v6733_v34  ;;  %v6734_v15 = vld [vmem:[#allocation95_spill] sm:$0xff]  ;;  %v1074_v34 = vpop.f32.mrf.mxu1 }
 0x14b   :  { %1228 = vmatpush.bf16.msrb.mxu0 %v5343_v45  ;;  %1254 = vmatpush.bf16.msrb.mxu2 %v5345_v17  ;;  %v6735_v45 = vld [vmem:[#allocation97_spill] sm:$0xff] }
 0x14f   :  { %1229 = vmatpush.bf16.msrb.mxu0 %v5359_v48  ;;  %1255 = vmatpush.bf16.msrb.mxu2 %v5363_v30  ;;  %v1100_v48 = vpop.f32.mrf.mxu3  ;;  %v1076_v30 = vpop.f32.mrf.mxu1 }
 0x150   :  { %v266_v30 = vld [vmem:[%s6738_s1] sm:$0xf]  ;;  %s3627_s1 = sshll.u32 %s7137_s25, 4  ;;  %s3628_s1 = int_to_ptr.hbm [resolvable:$true] %s3627_s1 }
 0x151   :  { %v5557_v4 = vperm.slane %v266_v30, 3 }
 0x153   :  { %1274 = vmatpush.bf16.msra.mxu0 %v5365_v9  ;;  %1300 = vmatpush.bf16.msra.mxu2 %v5368_v26  ;;  %v5554_v26 = vperm.slane %v266_v30, 2 }
 0x155   :  { %6741 = vst [vmem:[#allocation36_spill] sm:$0xff] %v5554_v26 }
 0x157   :  { %1275 = vmatpush.bf16.msra.mxu0 %v5374_v52  ;;  %1301 = vmatpush.bf16.msra.mxu2 %v6734_v15  ;;  %v1102_v28 = vpop.f32.mrf.mxu3 }
 0x15b   :  { %1276 = vmatpush.bf16.msra.mxu0 %v5382_v38  ;;  %1302 = vmatpush.bf16.msra.mxu2 %v6735_v45  ;;  %v6737_v38 = vld [vmem:[#allocation108_spill] sm:$0xff] }
 0x15f   :  { %1277 = vmatpush.bf16.msra.mxu0 %v5390_v58  ;;  %1303 = vmatpush.bf16.msra.mxu2 %v6736_v11 }
 0x163   :  { %1278 = vmatpush.bf16.msra.mxu0 %v5398_v59  ;;  %1304 = vmatpush.bf16.msra.mxu2 %v5401_v7  ;;  %v5548_v59 = vperm.slane %v266_v30, 0 }
 0x165   :  { %6739 = vst [vmem:[#allocation32_spill] sm:$0xff] %v5548_v59 }
 0x167   :  { %1279 = vmatpush.bf16.msra.mxu0 %v5410_v62  ;;  %1305 = vmatpush.bf16.msra.mxu2 %v5414_v63  ;;  %v5551_v63 = vperm.slane %v266_v30, 1 }
 0x169   :  { %6740 = vst [vmem:[#allocation34_spill] sm:$0xff] %v5551_v63 }
 0x16b   :  { %1280 = vmatpush.bf16.msra.mxu0 %v5424_v23  ;;  %1306 = vmatpush.bf16.msra.mxu2 %v6737_v38 }
 0x16f   :  { %1281 = vmatpush.bf16.msra.mxu0 %v5438_v5  ;;  %1307 = vmatpush.bf16.msra.mxu2 %v5449_v54 }
 0x18e   :  { %v1009_v7 = vpop.f32.mrf.mxu0 }
 0x18f   :  { %v1010_v62 = vadd.f32 %v1009_v7, %v5548_v59  ;;  %v1144_v11 = vpop.f32.mrf.mxu1 }
 0x191   :  { %v1023_v28 = vadd.f32 %v1022_v18, %v1010_v62 }
 0x193   :  { %v1104_v5 = vmul.f32 0.5, %v1023_v28 }
 0x194   :  { %v1035_v23 = vpop.f32.mrf.mxu2 }
 0x195   :  { %v1036_v38 = vadd.f32 %v1035_v23, %v5551_v63  ;;  %v1170_v58 = vpop.f32.mrf.mxu3  ;;  %4594 = vtanh.f32 %v1104_v5 }
 0x196   :  { %v1011_v45 = vpop.f32.mrf.mxu0 }
 0x197   :  { %v1049_v54 = vadd.f32 %v1048_v27, %v1036_v38  ;;  %v1146_v15 = vpop.f32.mrf.mxu1  ;;  %v1179_v38 = vrot.slane %v1144_v11, 6 }
 0x199   :  { %v1108_v52 = vmul.f32 0.5, %v1049_v54 }
 0x19b   :  { %4596 = vtanh.f32 %v1108_v52  ;;  %v4595_v29 = vpop.eup %4594 }
 0x19c   :  { %v1037_v9 = vpop.f32.mrf.mxu2  ;;  %v1106_v45 = vmul.f32 0.5, %v4595_v29 }
 0x19d   :  { %v1172_v17 = vpop.f32.mrf.mxu3 }
 0x19e   :  { %v1061_v7 = vpop.f32.mrf.mxu0  ;;  %v1107_v9 = vadd.f32 0.5, %v1106_v45  ;;  %v1187_v17 = vadd.f32 %v1179_v38, %v5447_v10 }
 0x19f   :  { %v1062_v59 = vadd.f32 %v1061_v7, %v5554_v26 }
 0x1a1   :  { %v4597_v18 = vpop.eup %4596  ;;  %v1075_v62 = vadd.f32 %v1074_v34, %v1062_v59  ;;  %v1194_v59 = vmul.f32 0.5, %v1187_v17 }
 0x1a2   :  { %v1110_v23 = vmul.f32 0.5, %v4597_v18 }
 0x1a3   :  { %4598 = vtanh.f32 %v1075_v62  ;;  %v1181_v62 = vrot.slane %v1170_v58, 6 }
 0x1a4   :  { %v1087_v27 = vpop.f32.mrf.mxu2  ;;  %v1111_v5 = vadd.f32 0.5, %v1110_v23 }
 0x1a5   :  { %v1088_v54 = vadd.f32 %v1087_v27, %v5557_v4 }
 0x1a6   :  { %v1063_v15 = vpop.f32.mrf.mxu0  ;;  %v1117_v26 = vmul.f32 0.0, %v1111_v5 }
 0x1a7   :  { %v1101_v52 = vadd.f32 %v1100_v48, %v1088_v54  ;;  %v1189_v54 = vadd.f32 %v1181_v62, %v5466_v49  ;;  %v1204_v62 = vrot.slane %v5477_v31, 6  ;;  %v6747_v31 = vld [vmem:[#allocation27_spill] sm:$0xff] }
 0x1a9   :  { %v4599_v28 = vpop.eup %4598  ;;  %v1113_v7 = vmul.f32 0.5, %v1101_v52 }
 0x1aa   :  { %v1118_v63 = vmul.f32 %v4599_v28, %v1107_v9 }
 0x1ab   :  { %4600 = vtanh.f32 %v1113_v7  ;;  %v1199_v7 = vmul.f32 0.5, %v1189_v54 }
 0x1ac   :  { %v5561_v34 = vadd.f32 %v1118_v63, %v1117_v26  ;;  %v1089_v30 = vpop.f32.mrf.mxu2 }
 0x1ae   :  { %4602 = vtanh.f32 %v5561_v34 }
 0x1af   :  { %v1131_v29 = vpop.f32.mrf.mxu0  ;;  %4604 = vtanh.f32 %v1194_v59 }
 0x1b0   :  { %v1178_v11 = vrot.slane %v1131_v29, 6 }
 0x1b1   :  { %v4601_v18 = vpop.eup %4600 }
 0x1b2   :  { %v1115_v48 = vmul.f32 0.5, %v4601_v18  ;;  %v1186_v23 = vadd.f32 %v1178_v11, %v5443_v22 }
 0x1b4   :  { %v4603_v45 = vpop.eup %4602  ;;  %v1116_v38 = vadd.f32 0.5, %v1115_v48  ;;  %v1190_v27 = vmul.f32 0.5, %v1186_v23  ;;  %v6742_v23 = vld [vmem:[#allocation22_spill] sm:$0xff] }
 0x1b5   :  { %v1157_v5 = vpop.f32.mrf.mxu2  ;;  %v4605_v15 = vpop.eup %4604 }
 0x1b6   :  { %v1121_v26 = vmul.f32 %v4603_v45, %v1116_v38  ;;  %4606 = vtanh.f32 %v1190_v27  ;;  %v1180_v63 = vrot.slane %v1157_v5, 6  ;;  %v1196_v28 = vmul.f32 0.5, %v4605_v15  ;;  %v6743_v45 = vld [vmem:[#allocation23_spill] sm:$0xff] }
 0x1b7   :  { %v1133_v52 = vpop.f32.mrf.mxu0 }
 0x1b8   :  { %v1212_v9 = vrot.slane %v1121_v26, 6  ;;  %v1188_v17 = vadd.f32 %v1180_v63, %v5462_v16  ;;  %v1197_v29 = vadd.f32 0.5, %v1196_v28  ;;  %v6744_v26 = vld [vmem:[#allocation24_spill] sm:$0xff]  ;;  %v6745_v63 = vld [vmem:[#allocation25_spill] sm:$0xff] }
 0x1ba   :  { %4608 = vtanh.f32 %v1188_v17  ;;  %v1215_v58 = vpack.c.bf16 %v1212_v9, %v1212_v9  ;;  %v1206_v27 = vmul.f32 %v1204_v62, %v1197_v29  ;;  %v6746_v9 = vld [vmem:[#allocation26_spill] sm:$0xff] }
 0x1bb   :  { %4610 = vtanh.f32 %v1199_v7  ;;  %v6748_v7 = vld [vmem:[#allocation28_spill] sm:$0xff] }
 0x1bc   :  { %v4607_v59 = vpop.eup %4606  ;;  %v1219_v30 = vrot.slane %v1215_v58, 1  ;;  %v6749_v58 = vld [vmem:[#allocation29_spill] sm:$0xff] }
 0x1bd   :  { %v1192_v11 = vmul.f32 0.5, %v4607_v59  ;;  %v1159_v18 = vpop.f32.mrf.mxu2 }
 0x1be   :  { %1243 = vmatmul.bf16.vlgmr.msrb.gmra.mxu1 %v1219_v30  ;;  %1269 = vmatmul.bf16.vlgmr.msrb.gmra.mxu3 %v1219_v30  ;;  %v6751_v18 = vld [vmem:[#allocation33_spill] sm:$0xff] }
 0x1bf   :  { %v1193_v48 = vadd.f32 0.5, %v1192_v11  ;;  %1357 = vmatpush.bf16.msrb.mxu1 %v6742_v23  ;;  %1383 = vmatpush.bf16.msrb.mxu3 %v6743_v45  ;;  %v6750_v11 = vld [vmem:[#allocation31_spill] sm:$0xff] }
 0x1c0   :  { %v4609_v38 = vpop.eup %4608 }
 0x1c1   :  { %v1207_v54 = vmul.f32 %v4609_v38, %v1193_v48  ;;  %v4611_v5 = vpop.eup %4610  ;;  %v6752_v48 = vld [vmem:[#allocation35_spill] sm:$0xff]  ;;  %v6753_v38 = vld [vmem:[#allocation37_spill] sm:$0xff] }
 0x1c2   :  { %v1201_v52 = vmul.f32 0.5, %v4611_v5  ;;  %v6757_v5 = vld [vmem:[#allocation45_spill] sm:$0xff] }
 0x1c3   :  { %v5570_v15 = vadd.f32 %v1207_v54, %v1206_v27  ;;  %1358 = vmatpush.bf16.msrb.mxu1 %v6744_v26  ;;  %1384 = vmatpush.bf16.msrb.mxu3 %v6745_v63  ;;  %v6755_v27 = vld [vmem:[#allocation41_spill] sm:$0xff]  ;;  %v6756_v54 = vld [vmem:[#allocation43_spill] sm:$0xff] }
 0x1c4   :  { %v1202_v17 = vadd.f32 0.5, %v1201_v52  ;;  %v6758_v52 = vld [vmem:[#allocation46_spill] sm:$0xff] }
 0x1c5   :  { %4612 = vtanh.f32 %v5570_v15 }
 0x1c7   :  { %1359 = vmatpush.bf16.msrb.mxu1 %v6746_v9  ;;  %1385 = vmatpush.bf16.msrb.mxu3 %v6747_v31 }
 0x1cb   :  { %v4613_v28 = vpop.eup %4612  ;;  %1360 = vmatpush.bf16.msrb.mxu1 %v6748_v7  ;;  %1386 = vmatpush.bf16.msrb.mxu3 %v6749_v58 }
 0x1cc   :  { %v1210_v59 = vmul.f32 %v4613_v28, %v1202_v17  ;;  %v6759_v17 = vld [vmem:[#allocation47_spill] sm:$0xff]  ;;  %v6760_v28 = vld [vmem:[#allocation49_spill] sm:$0xff] }
 0x1ce   :  { %v1214_v29 = vpack.c.bf16 %v1210_v59, %v1210_v59  ;;  %1295 = vmatmul.bf16.vlgmr.msra.gmra.mxu1 %v1219_v30  ;;  %1321 = vmatmul.bf16.vlgmr.msra.gmra.mxu3 %v1219_v30  ;;  %v6754_v30 = vld [vmem:[#allocation39_spill] sm:$0xff]  ;;  %v6761_v59 = vld [vmem:[#allocation50_spill] sm:$0xff] }
 0x1cf   :  { %1361 = vmatpush.bf16.msrb.mxu1 %v6750_v11  ;;  %1387 = vmatpush.bf16.msrb.mxu3 %v6751_v18 }
 0x1d0   :  { %v1218_v62 = vrot.slane %v1214_v29, 1  ;;  %v6762_v29 = vld [vmem:[#allocation57_spill] sm:$0xff] }
 0x1d2   :  { %1230 = vmatmul.bf16.vlgmr.msrb.gmra.mxu0 %v1218_v62  ;;  %1256 = vmatmul.bf16.vlgmr.msrb.gmra.mxu2 %v1218_v62 }
 0x1d3   :  { %1344 = vmatpush.bf16.msrb.mxu0 %v5115_v8  ;;  %1370 = vmatpush.bf16.msrb.mxu2 %v5119_v12 }
 0x1d4   :  { %1362 = vmatpush.bf16.msrb.mxu1 %v6752_v48  ;;  %1388 = vmatpush.bf16.msrb.mxu3 %v6753_v38 }
 0x1d7   :  { %1345 = vmatpush.bf16.msrb.mxu0 %v5128_v21  ;;  %1371 = vmatpush.bf16.msrb.mxu2 %v5134_v25 }
 0x1d8   :  { %1363 = vmatpush.bf16.msrb.mxu1 %v6754_v30  ;;  %1389 = vmatpush.bf16.msrb.mxu3 %v6755_v27 }
 0x1db   :  { %1346 = vmatpush.bf16.msrb.mxu0 %v5140_v33  ;;  %1372 = vmatpush.bf16.msrb.mxu2 %v5146_v37 }
 0x1dc   :  { %1364 = vmatpush.bf16.msrb.mxu1 %v6756_v54  ;;  %1390 = vmatpush.bf16.msrb.mxu3 %v6757_v5 }
 0x1df   :  { %1347 = vmatpush.bf16.msrb.mxu0 %v5155_v46  ;;  %1365 = vmatmul.bf16.vlgmr.msrb.gmra.mxu1 %v1218_v62 }
 0x1e0   :  { %1457 = vmatpush.bf16.msra.mxu1 %v6758_v52  ;;  %1483 = vmatpush.bf16.msra.mxu3 %v6759_v17 }
 0x1e1   :  { %1373 = vmatpush.bf16.msrb.mxu2 %v5161_v50  ;;  %1391 = vmatmul.bf16.vlgmr.msrb.gmra.mxu3 %v1218_v62 }
 0x1e2   :  { %1282 = vmatmul.bf16.vlgmr.msra.gmra.mxu0 %v1218_v62  ;;  %1308 = vmatmul.bf16.vlgmr.msra.gmra.mxu2 %v1218_v62 }
 0x1e3   :  { %1348 = vmatpush.bf16.msrb.mxu0 %v6711_v19  ;;  %v6764_v19 = vld [vmem:[#allocation59_spill] sm:$0xff] }
 0x1e4   :  { %1458 = vmatpush.bf16.msra.mxu1 %v6760_v28  ;;  %1484 = vmatpush.bf16.msra.mxu3 %v6761_v59  ;;  %v6763_v59 = vld [vmem:[#allocation58_spill] sm:$0xff] }
 0x1e5   :  { %1374 = vmatpush.bf16.msrb.mxu2 %v6712_v20 }
 0x1e7   :  { %1349 = vmatpush.bf16.msrb.mxu0 %v6715_v2 }
 0x1e8   :  { %1459 = vmatpush.bf16.msra.mxu1 %v5239_v35  ;;  %1485 = vmatpush.bf16.msra.mxu3 %v5241_v36 }
 0x1e9   :  { %1375 = vmatpush.bf16.msrb.mxu2 %v6716_v40 }
 0x1eb   :  { %1350 = vmatpush.bf16.msrb.mxu0 %v6718_v13 }
 0x1ec   :  { %1460 = vmatpush.bf16.msra.mxu1 %v5251_v1  ;;  %1486 = vmatpush.bf16.msra.mxu3 %v6762_v29 }
 0x1ed   :  { %1376 = vmatpush.bf16.msrb.mxu2 %v6719_v51 }
 0x1ef   :  { %1351 = vmatpush.bf16.msrb.mxu0 %v6720_v56 }
 0x1f0   :  { %1461 = vmatpush.bf16.msra.mxu1 %v6763_v59  ;;  %1487 = vmatpush.bf16.msra.mxu3 %v6764_v19  ;;  %v6805_v59 = vld [vmem:[#allocation36_spill] sm:$0xff] }
 0x1f1   :  { %1377 = vmatpush.bf16.msrb.mxu2 %v6721_v3 }
 0x1f2   :  { %1352 = vmatmul.bf16.vlgmr.msrb.gmra.mxu0 %v1218_v62 }
 0x1f3   :  { %1444 = vmatpush.bf16.msra.mxu0 %v6722_v53  ;;  %v6804_v53 = vld [vmem:[#allocation34_spill] sm:$0xff] }
 0x1f4   :  { %1462 = vmatpush.bf16.msra.mxu1 %v5265_v41  ;;  %1488 = vmatpush.bf16.msra.mxu3 %v5267_v42  ;;  %v6803_v42 = vld [vmem:[#allocation32_spill] sm:$0xff] }
 0x1f5   :  { %1470 = vmatpush.bf16.msra.mxu2 %v6723_v55 }
 0x1f6   :  { %1378 = vmatmul.bf16.vlgmr.msrb.gmra.mxu2 %v1218_v62  ;;  %v6765_v62 = vld [vmem:[#allocation68_spill] sm:$0xff] }
 0x1f7   :  { %1445 = vmatpush.bf16.msra.mxu0 %v6724_v47 }
 0x1f8   :  { %1463 = vmatpush.bf16.msra.mxu1 %v5271_v57  ;;  %1489 = vmatpush.bf16.msra.mxu3 %v5273_v60  ;;  %v6766_v57 = vld [vmem:[#allocation69_spill] sm:$0xff]  ;;  %v6767_v60 = vld [vmem:[#allocation78_spill] sm:$0xff] }
 0x1f9   :  { %1471 = vmatpush.bf16.msra.mxu2 %v6725_v6 }
 0x1fb   :  { %1446 = vmatpush.bf16.msra.mxu0 %v6726_v14  ;;  %v6768_v14 = vld [vmem:[#allocation79_spill] sm:$0xff] }
 0x1fc   :  { %1464 = vmatpush.bf16.msra.mxu1 %v5277_v0  ;;  %1490 = vmatpush.bf16.msra.mxu3 %v5279_v61  ;;  %v6770_v0 = vld [vmem:[#allocation71_spill] sm:$0xff]  ;;  %v6771_v61 = vld [vmem:[#allocation82_spill] sm:$0xff] }
 0x1fd   :  { %1472 = vmatpush.bf16.msra.mxu2 %v6727_v24  ;;  %v6769_v24 = vld [vmem:[#allocation70_spill] sm:$0xff] }
 0x1ff   :  { %1447 = vmatpush.bf16.msra.mxu0 %v6728_v39  ;;  %v6774_v39 = vld [vmem:[#allocation73_spill] sm:$0xff] }
 0x200   :  { %1509 = vmatpush.bf16.msrb.mxu1 %v5281_v43  ;;  %1535 = vmatpush.bf16.msrb.mxu3 %v5283_v44  ;;  %v6772_v43 = vld [vmem:[#allocation83_spill] sm:$0xff]  ;;  %v6773_v44 = vld [vmem:[#allocation72_spill] sm:$0xff] }
 0x201   :  { %1473 = vmatpush.bf16.msra.mxu2 %v6729_v32  ;;  %v6775_v32 = vld [vmem:[#allocation86_spill] sm:$0xff] }
 0x203   :  { %1448 = vmatpush.bf16.msra.mxu0 %v6767_v60  ;;  %v6778_v60 = vld [vmem:[#allocation77_spill] sm:$0xff] }
 0x204   :  { %1510 = vmatpush.bf16.msrb.mxu1 %v6765_v62  ;;  %1536 = vmatpush.bf16.msrb.mxu3 %v6766_v57  ;;  %v6776_v62 = vld [vmem:[#allocation87_spill] sm:$0xff]  ;;  %v6777_v57 = vld [vmem:[#allocation76_spill] sm:$0xff] }
 0x205   :  { %1474 = vmatpush.bf16.msra.mxu2 %v6768_v14  ;;  %v6779_v14 = vld [vmem:[#allocation90_spill] sm:$0xff] }
 0x207   :  { %1449 = vmatpush.bf16.msra.mxu0 %v6771_v61  ;;  %v6782_v61 = vld [vmem:[#allocation93_spill] sm:$0xff] }
 0x208   :  { %1511 = vmatpush.bf16.msrb.mxu1 %v6769_v24  ;;  %1537 = vmatpush.bf16.msrb.mxu3 %v6770_v0  ;;  %v6780_v24 = vld [vmem:[#allocation91_spill] sm:$0xff]  ;;  %v6781_v0 = vld [vmem:[#allocation92_spill] sm:$0xff] }
 0x209   :  { %1475 = vmatpush.bf16.msra.mxu2 %v6772_v43  ;;  %v6783_v43 = vld [vmem:[#allocation80_spill] sm:$0xff] }
 0x20b   :  { %1450 = vmatpush.bf16.msra.mxu0 %v6775_v32  ;;  %v6786_v32 = vld [vmem:[#allocation95_spill] sm:$0xff] }
 0x20c   :  { %1512 = vmatpush.bf16.msrb.mxu1 %v6773_v44  ;;  %1538 = vmatpush.bf16.msrb.mxu3 %v6774_v39  ;;  %v6784_v44 = vld [vmem:[#allocation81_spill] sm:$0xff]  ;;  %v6785_v39 = vld [vmem:[#allocation94_spill] sm:$0xff] }
 0x20d   :  { %1476 = vmatpush.bf16.msra.mxu2 %v6776_v62  ;;  %v6787_v62 = vld [vmem:[#allocation84_spill] sm:$0xff] }
 0x20f   :  { %1451 = vmatpush.bf16.msra.mxu0 %v6779_v14  ;;  %v6790_v14 = vld [vmem:[#allocation97_spill] sm:$0xff] }
 0x210   :  { %1513 = vmatpush.bf16.msrb.mxu1 %v6777_v57  ;;  %1539 = vmatpush.bf16.msrb.mxu3 %v6778_v60  ;;  %v6788_v57 = vld [vmem:[#allocation85_spill] sm:$0xff]  ;;  %v6789_v60 = vld [vmem:[#allocation96_spill] sm:$0xff] }
 0x211   :  { %1477 = vmatpush.bf16.msra.mxu2 %v6780_v24  ;;  %v6791_v24 = vld [vmem:[#allocation88_spill] sm:$0xff] }
 0x213   :  { %1496 = vmatpush.bf16.msrb.mxu0 %v6781_v0  ;;  %v6792_v0 = vld [vmem:[#allocation89_spill] sm:$0xff] }
 0x214   :  { %1514 = vmatpush.bf16.msrb.mxu1 %v6783_v43  ;;  %1540 = vmatpush.bf16.msrb.mxu3 %v6784_v44  ;;  %v6794_v43 = vld [vmem:[#allocation99_spill] sm:$0xff]  ;;  %v6795_v44 = vld [vmem:[#allocation100_spill] sm:$0xff] }
 0x215   :  { %1522 = vmatpush.bf16.msrb.mxu2 %v6782_v61  ;;  %v6793_v61 = vld [vmem:[#allocation98_spill] sm:$0xff] }
 0x217   :  { %1497 = vmatpush.bf16.msrb.mxu0 %v6785_v39  ;;  %v6796_v39 = vld [vmem:[#allocation101_spill] sm:$0xff] }
 0x218   :  { %1515 = vmatpush.bf16.msrb.mxu1 %v6787_v62  ;;  %1541 = vmatpush.bf16.msrb.mxu3 %v6788_v57  ;;  %v6798_v62 = vld [vmem:[#allocation105_spill] sm:$0xff]  ;;  %v6799_v57 = vld [vmem:[#allocation107_spill] sm:$0xff] }
 0x219   :  { %1523 = vmatpush.bf16.msrb.mxu2 %v6786_v32  ;;  %v6797_v32 = vld [vmem:[#allocation104_spill] sm:$0xff] }
 0x21b   :  { %1498 = vmatpush.bf16.msrb.mxu0 %v6789_v60  ;;  %v6800_v60 = vld [vmem:[#allocation108_spill] sm:$0xff] }
 0x21c   :  { %1516 = vmatpush.bf16.msrb.mxu1 %v6791_v24  ;;  %1542 = vmatpush.bf16.msrb.mxu3 %v6792_v0  ;;  %v6802_v24 = vld [vmem:[#allocation112_spill] sm:$0xff] }
 0x21d   :  { %1524 = vmatpush.bf16.msrb.mxu2 %v6790_v14  ;;  %v6801_v14 = vld [vmem:[#allocation111_spill] sm:$0xff] }
 0x21f   :  { %1499 = vmatpush.bf16.msrb.mxu0 %v6793_v61 }
 0x221   :  { %1525 = vmatpush.bf16.msrb.mxu2 %v6794_v43 }
 0x223   :  { %1500 = vmatpush.bf16.msrb.mxu0 %v6795_v44 }
 0x225   :  { %1526 = vmatpush.bf16.msrb.mxu2 %v6796_v39 }
 0x227   :  { %1501 = vmatpush.bf16.msrb.mxu0 %v6797_v32 }
 0x229   :  { %1527 = vmatpush.bf16.msrb.mxu2 %v6798_v62 }
 0x22b   :  { %1502 = vmatpush.bf16.msrb.mxu0 %v6799_v57 }
 0x22d   :  { %1528 = vmatpush.bf16.msrb.mxu2 %v6800_v60 }
 0x22f   :  { %1503 = vmatpush.bf16.msrb.mxu0 %v6801_v14 }
 0x231   :  { %1529 = vmatpush.bf16.msrb.mxu2 %v6802_v24 }
 0x23b   :  { %v1244_v0 = vpop.f32.mrf.mxu1 }
 0x241   :  { %v1270_v61 = vpop.f32.mrf.mxu3 }
 0x243   :  { %v1246_v6 = vpop.f32.mrf.mxu1 }
 0x249   :  { %v1272_v43 = vpop.f32.mrf.mxu3 }
 0x24b   :  { %v1296_v47 = vpop.f32.mrf.mxu1 }
 0x24f   :  { %v1231_v44 = vpop.f32.mrf.mxu0 }
 0x250   :  { %v1232_v39 = vadd.f32 %v1231_v44, %v6803_v42 }
 0x251   :  { %v1322_v41 = vpop.f32.mrf.mxu3 }
 0x252   :  { %v1245_v32 = vadd.f32 %v1244_v0, %v1232_v39 }
 0x253   :  { %v1298_v55 = vpop.f32.mrf.mxu1 }
 0x254   :  { %v1326_v3 = vmul.f32 0.5, %v1245_v32 }
 0x255   :  { %v1257_v62 = vpop.f32.mrf.mxu2 }
 0x256   :  { %v1258_v57 = vadd.f32 %v1257_v62, %v6804_v53  ;;  %4614 = vtanh.f32 %v1326_v3 }
 0x257   :  { %v1233_v60 = vpop.f32.mrf.mxu0 }
 0x258   :  { %v1271_v56 = vadd.f32 %v1270_v61, %v1258_v57 }
 0x259   :  { %v1324_v14 = vpop.f32.mrf.mxu3 }
 0x25a   :  { %v1330_v19 = vmul.f32 0.5, %v1271_v56 }
 0x25c   :  { %4616 = vtanh.f32 %v1330_v19  ;;  %v1366_v24 = vpop.f32.mrf.mxu1  ;;  %v4615_v13 = vpop.eup %4614 }
 0x25d   :  { %v1259_v6 = vpop.f32.mrf.mxu2  ;;  %v1328_v62 = vmul.f32 0.5, %v4615_v13  ;;  %v1401_v32 = vrot.slane %v1366_v24, 4 }
 0x25f   :  { %v1283_v43 = vpop.f32.mrf.mxu0  ;;  %v1329_v56 = vadd.f32 0.5, %v1328_v62  ;;  %v1409_v3 = vadd.f32 %v1401_v32, %v5447_v10 }
 0x260   :  { %v1284_v51 = vadd.f32 %v1283_v43, %v6805_v59 }
 0x262   :  { %v4617_v44 = vpop.eup %4616  ;;  %v1297_v42 = vadd.f32 %v1296_v47, %v1284_v51 }
 0x263   :  { %v1332_v0 = vmul.f32 0.5, %v4617_v44 }
 0x264   :  { %v1392_v39 = vpop.f32.mrf.mxu3  ;;  %4618 = vtanh.f32 %v1297_v42  ;;  %v1368_v55 = vpop.f32.mrf.mxu1  ;;  %v1416_v42 = vmul.f32 0.5, %v1409_v3 }
 0x265   :  { %v1309_v60 = vpop.f32.mrf.mxu2  ;;  %v1333_v57 = vadd.f32 0.5, %v1332_v0  ;;  %v1403_v55 = vrot.slane %v1392_v39, 4 }
 0x266   :  { %v1310_v61 = vadd.f32 %v1309_v60, %v5557_v4 }
 0x267   :  { %v1285_v14 = vpop.f32.mrf.mxu0  ;;  %v1339_v59 = vmul.f32 %v1333_v57, %v5561_v34  ;;  %v1411_v57 = vadd.f32 %v1403_v55, %v5466_v49 }
 0x268   :  { %v1323_v19 = vadd.f32 %v1322_v41, %v1310_v61 }
 0x26a   :  { %v4619_v6 = vpop.eup %4618  ;;  %v1335_v43 = vmul.f32 0.5, %v1323_v19 }
 0x26b   :  { %v1340_v47 = vmul.f32 %v4619_v6, %v1329_v56 }
 0x26c   :  { %v1394_v51 = vpop.f32.mrf.mxu3  ;;  %4620 = vtanh.f32 %v1335_v43 }
 0x26d   :  { %v5673_v44 = vadd.f32 %v1340_v47, %v1339_v59  ;;  %v1311_v24 = vpop.f32.mrf.mxu2  ;;  %v1421_v51 = vmul.f32 0.5, %v1411_v57 }
 0x26f   :  { %4622 = vtanh.f32 %v5673_v44  ;;  %v1353_v13 = vpop.f32.mrf.mxu0 }
 0x270   :  { %v1400_v0 = vrot.slane %v1353_v13, 4  ;;  %4624 = vtanh.f32 %v1416_v42 }
 0x272   :  { %v4621_v41 = vpop.eup %4620  ;;  %v1408_v62 = vadd.f32 %v1400_v0, %v5443_v22 }
 0x273   :  { %v1337_v32 = vmul.f32 0.5, %v4621_v41 }
 0x274   :  { %v1412_v60 = vmul.f32 0.5, %v1408_v62  ;;  %v1426_v62 = vrot.slane %v5570_v15, 6 }
 0x275   :  { %v4623_v61 = vpop.eup %4622  ;;  %v1338_v34 = vadd.f32 0.5, %v1337_v32 }
 0x276   :  { %4626 = vtanh.f32 %v1412_v60  ;;  %v4625_v59 = vpop.eup %4624 }
 0x277   :  { %v1343_v19 = vmul.f32 %v4623_v61, %v1338_v34  ;;  %v1355_v3 = vpop.f32.mrf.mxu0  ;;  %v1418_v47 = vmul.f32 0.5, %v4625_v59 }
 0x279   :  { %v1379_v14 = vpop.f32.mrf.mxu2  ;;  %v1434_v6 = vrot.slane %v1343_v19, 4  ;;  %v1419_v0 = vadd.f32 0.5, %v1418_v47  ;;  %v6808_v47 = vld [vmem:[#allocation38_spill] sm:$0xff] }
 0x27a   :  { %v1402_v56 = vrot.slane %v1379_v14, 4 }
 0x27b   :  { %v1437_v39 = vpack.c.bf16 %v1434_v6, %v1434_v6  ;;  %v1428_v60 = vmul.f32 %v1426_v62, %v1419_v0  ;;  %v6806_v6 = vld [vmem:[#allocation50_spill] sm:$0xff]  ;;  %v6814_v0 = vld [vmem:[#allocation48_spill] sm:$0xff]  ;;  %v6817_v62 = vld [vmem:[#allocation61_spill] sm:$0xff] }
 0x27c   :  { %v1410_v43 = vadd.f32 %v1402_v56, %v5462_v16  ;;  %v4627_v42 = vpop.eup %4626 }
 0x27d   :  { %v1414_v24 = vmul.f32 0.5, %v4627_v42  ;;  %v1441_v13 = vrot.slane %v1437_v39, 2  ;;  %v6810_v39 = vld [vmem:[#allocation58_spill] sm:$0xff]  ;;  %v6811_v42 = vld [vmem:[#allocation59_spill] sm:$0xff] }
 0x27e   :  { %4628 = vtanh.f32 %v1410_v43  ;;  %v6807_v43 = vld [vmem:[#allocation30_spill] sm:$0xff] }
 0x27f   :  { %4630 = vtanh.f32 %v1421_v51  ;;  %v1415_v55 = vadd.f32 0.5, %v1414_v24  ;;  %1465 = vmatmul.bf16.vlgmr.msra.gmra.mxu1 %v1441_v13  ;;  %1491 = vmatmul.bf16.vlgmr.msra.gmra.mxu3 %v1441_v13  ;;  %v6809_v51 = vld [vmem:[#allocation40_spill] sm:$0xff]  ;;  %v6812_v24 = vld [vmem:[#allocation42_spill] sm:$0xff] }
 0x280   :  { %1579 = vmatpush.bf16.msra.mxu1 %v6742_v23  ;;  %1605 = vmatpush.bf16.msra.mxu3 %v6743_v45 }
 0x281   :  { %v1381_v41 = vpop.f32.mrf.mxu2 }
 0x282   :  { %v6815_v41 = vld [vmem:[#allocation51_spill] sm:$0xff] }
 0x284   :  { %v4629_v32 = vpop.eup %4628  ;;  %1580 = vmatpush.bf16.msra.mxu1 %v6744_v26  ;;  %1606 = vmatpush.bf16.msra.mxu3 %v6745_v63 }
 0x285   :  { %v1429_v61 = vmul.f32 %v4629_v32, %v1415_v55  ;;  %v4631_v34 = vpop.eup %4630  ;;  %v6816_v55 = vld [vmem:[#allocation60_spill] sm:$0xff] }
 0x286   :  { %v1423_v14 = vmul.f32 0.5, %v4631_v34  ;;  %v6818_v32 = vld [vmem:[#allocation52_spill] sm:$0xff]  ;;  %v6821_v34 = vld [vmem:[#allocation63_spill] sm:$0xff] }
 0x287   :  { %v5682_v57 = vadd.f32 %v1429_v61, %v1428_v60  ;;  %v6819_v60 = vld [vmem:[#allocation53_spill] sm:$0xff]  ;;  %v6820_v61 = vld [vmem:[#allocation62_spill] sm:$0xff] }
 0x288   :  { %1581 = vmatpush.bf16.msra.mxu1 %v6746_v9  ;;  %1607 = vmatpush.bf16.msra.mxu3 %v6747_v31  ;;  %v1424_v15 = vadd.f32 0.5, %v1423_v14  ;;  %v6822_v14 = vld [vmem:[#allocation54_spill] sm:$0xff] }
 0x289   :  { %4632 = vtanh.f32 %v5682_v57 }
 0x28c   :  { %1582 = vmatpush.bf16.msra.mxu1 %v6748_v7  ;;  %1608 = vmatpush.bf16.msra.mxu3 %v6749_v58 }
 0x28f   :  { %v4633_v59 = vpop.eup %4632  ;;  %1517 = vmatmul.bf16.vlgmr.msrb.gmra.mxu1 %v1441_v13  ;;  %1543 = vmatmul.bf16.vlgmr.msrb.gmra.mxu3 %v1441_v13  ;;  %v6813_v13 = vld [vmem:[#allocation44_spill] sm:$0xff] }
 0x290   :  { %v1432_v19 = vmul.f32 %v4633_v59, %v1424_v15  ;;  %1583 = vmatpush.bf16.msra.mxu1 %v6750_v11  ;;  %1609 = vmatpush.bf16.msra.mxu3 %v6751_v18  ;;  %v6823_v15 = vld [vmem:[#allocation55_spill] sm:$0xff]  ;;  %v6824_v59 = vld [vmem:[#allocation64_spill] sm:$0xff] }
 0x292   :  { %v1436_v56 = vpack.c.bf16 %v1432_v19, %v1432_v19  ;;  %v6825_v19 = vld [vmem:[#allocation65_spill] sm:$0xff] }
 0x294   :  { %v1440_v3 = vrot.slane %v1436_v56, 2  ;;  %1584 = vmatpush.bf16.msra.mxu1 %v6752_v48  ;;  %1610 = vmatpush.bf16.msra.mxu3 %v6753_v38  ;;  %v6826_v56 = vld [vmem:[#allocation66_spill] sm:$0xff] }
 0x296   :  { %1452 = vmatmul.bf16.vlgmr.msra.gmra.mxu0 %v1440_v3  ;;  %1478 = vmatmul.bf16.vlgmr.msra.gmra.mxu2 %v1440_v3 }
 0x297   :  { %1566 = vmatpush.bf16.msra.mxu0 %v5115_v8  ;;  %1592 = vmatpush.bf16.msra.mxu2 %v5119_v12 }
 0x298   :  { %1585 = vmatpush.bf16.msra.mxu1 %v6754_v30  ;;  %1611 = vmatpush.bf16.msra.mxu3 %v6755_v27 }
 0x29b   :  { %1567 = vmatpush.bf16.msra.mxu0 %v5128_v21  ;;  %1593 = vmatpush.bf16.msra.mxu2 %v5134_v25 }
 0x29c   :  { %1586 = vmatpush.bf16.msra.mxu1 %v6756_v54  ;;  %1612 = vmatpush.bf16.msra.mxu3 %v6757_v5 }
 0x29f   :  { %1568 = vmatpush.bf16.msra.mxu0 %v5140_v33  ;;  %1594 = vmatpush.bf16.msra.mxu2 %v5146_v37 }
 0x2a0   :  { %1679 = vmatpush.bf16.msrb.mxu1 %v6758_v52  ;;  %1705 = vmatpush.bf16.msrb.mxu3 %v6759_v17 }
 0x2a1   :  { %1587 = vmatmul.bf16.vlgmr.msra.gmra.mxu1 %v1440_v3  ;;  %1613 = vmatmul.bf16.vlgmr.msra.gmra.mxu3 %v1440_v3 }
 0x2a3   :  { %1569 = vmatpush.bf16.msra.mxu0 %v5155_v46  ;;  %1595 = vmatpush.bf16.msra.mxu2 %v5161_v50 }
 0x2a4   :  { %1680 = vmatpush.bf16.msrb.mxu1 %v6760_v28  ;;  %1706 = vmatpush.bf16.msrb.mxu3 %v6806_v6 }
 0x2a6   :  { %1504 = vmatmul.bf16.vlgmr.msrb.gmra.mxu0 %v1440_v3  ;;  %1530 = vmatmul.bf16.vlgmr.msrb.gmra.mxu2 %v1440_v3 }
 0x2a7   :  { %1570 = vmatpush.bf16.msra.mxu0 %v6807_v43  ;;  %1596 = vmatpush.bf16.msra.mxu2 %v6712_v20 }
 0x2a8   :  { %1681 = vmatpush.bf16.msrb.mxu1 %v5239_v35  ;;  %1707 = vmatpush.bf16.msrb.mxu3 %v5241_v36 }
 0x2ab   :  { %1571 = vmatpush.bf16.msra.mxu0 %v6715_v2  ;;  %1597 = vmatpush.bf16.msra.mxu2 %v6716_v40 }
 0x2ac   :  { %1682 = vmatpush.bf16.msrb.mxu1 %v5251_v1  ;;  %1708 = vmatpush.bf16.msrb.mxu3 %v6762_v29 }
 0x2af   :  { %1572 = vmatpush.bf16.msra.mxu0 %v6808_v47  ;;  %1598 = vmatpush.bf16.msra.mxu2 %v6809_v51  ;;  %v6869_v47 = vld [vmem:[#allocation36_spill] sm:$0xff] }
 0x2b0   :  { %1683 = vmatpush.bf16.msrb.mxu1 %v6810_v39  ;;  %1709 = vmatpush.bf16.msrb.mxu3 %v6811_v42 }
 0x2b3   :  { %1573 = vmatpush.bf16.msra.mxu0 %v6812_v24  ;;  %1599 = vmatpush.bf16.msra.mxu2 %v6813_v13 }
 0x2b4   :  { %1684 = vmatpush.bf16.msrb.mxu1 %v6816_v55  ;;  %1710 = vmatpush.bf16.msrb.mxu3 %v6817_v62  ;;  %v6827_v62 = vld [vmem:[#allocation67_spill] sm:$0xff] }
 0x2b6   :  { %1574 = vmatmul.bf16.vlgmr.msra.gmra.mxu0 %v1440_v3  ;;  %1600 = vmatmul.bf16.vlgmr.msra.gmra.mxu2 %v1440_v3  ;;  %v6828_v3 = vld [vmem:[#allocation74_spill] sm:$0xff] }
 0x2b7   :  { %1666 = vmatpush.bf16.msrb.mxu0 %v6814_v0  ;;  %1692 = vmatpush.bf16.msrb.mxu2 %v6815_v41  ;;  %v6868_v0 = vld [vmem:[#allocation32_spill] sm:$0xff] }
 0x2b8   :  { %1685 = vmatpush.bf16.msrb.mxu1 %v6820_v61  ;;  %1711 = vmatpush.bf16.msrb.mxu3 %v6821_v34  ;;  %v6831_v61 = vld [vmem:[#allocation69_spill] sm:$0xff]  ;;  %v6832_v34 = vld [vmem:[#allocation78_spill] sm:$0xff] }
 0x2bb   :  { %1667 = vmatpush.bf16.msrb.mxu0 %v6818_v32  ;;  %1693 = vmatpush.bf16.msrb.mxu2 %v6819_v60  ;;  %v6829_v32 = vld [vmem:[#allocation75_spill] sm:$0xff]  ;;  %v6830_v60 = vld [vmem:[#allocation68_spill] sm:$0xff] }
 0x2bc   :  { %1686 = vmatpush.bf16.msrb.mxu1 %v6824_v59  ;;  %1712 = vmatpush.bf16.msrb.mxu3 %v6825_v19  ;;  %v6835_v59 = vld [vmem:[#allocation71_spill] sm:$0xff]  ;;  %v6836_v19 = vld [vmem:[#allocation82_spill] sm:$0xff] }
 0x2bf   :  { %1668 = vmatpush.bf16.msrb.mxu0 %v6822_v14  ;;  %1694 = vmatpush.bf16.msrb.mxu2 %v6823_v15  ;;  %v6833_v14 = vld [vmem:[#allocation79_spill] sm:$0xff]  ;;  %v6834_v15 = vld [vmem:[#allocation70_spill] sm:$0xff] }
 0x2c0   :  { %1731 = vmatpush.bf16.msra.mxu1 %v6826_v56  ;;  %1757 = vmatpush.bf16.msra.mxu3 %v6827_v62  ;;  %v6837_v56 = vld [vmem:[#allocation83_spill] sm:$0xff]  ;;  %v6838_v62 = vld [vmem:[#allocation72_spill] sm:$0xff] }
 0x2c3   :  { %1669 = vmatpush.bf16.msrb.mxu0 %v6828_v3  ;;  %1695 = vmatpush.bf16.msrb.mxu2 %v6829_v32  ;;  %v6839_v3 = vld [vmem:[#allocation73_spill] sm:$0xff]  ;;  %v6840_v32 = vld [vmem:[#allocation86_spill] sm:$0xff] }
 0x2c4   :  { %1732 = vmatpush.bf16.msra.mxu1 %v6830_v60  ;;  %1758 = vmatpush.bf16.msra.mxu3 %v6831_v61  ;;  %v6841_v60 = vld [vmem:[#allocation87_spill] sm:$0xff]  ;;  %v6842_v61 = vld [vmem:[#allocation76_spill] sm:$0xff] }
 0x2c7   :  { %1670 = vmatpush.bf16.msrb.mxu0 %v6832_v34  ;;  %1696 = vmatpush.bf16.msrb.mxu2 %v6833_v14  ;;  %v6843_v34 = vld [vmem:[#allocation77_spill] sm:$0xff]  ;;  %v6844_v14 = vld [vmem:[#allocation90_spill] sm:$0xff] }
 0x2c8   :  { %1733 = vmatpush.bf16.msra.mxu1 %v6834_v15  ;;  %1759 = vmatpush.bf16.msra.mxu3 %v6835_v59  ;;  %v6845_v15 = vld [vmem:[#allocation91_spill] sm:$0xff]  ;;  %v6846_v59 = vld [vmem:[#allocation92_spill] sm:$0xff] }
 0x2cb   :  { %1671 = vmatpush.bf16.msrb.mxu0 %v6836_v19  ;;  %1697 = vmatpush.bf16.msrb.mxu2 %v6837_v56  ;;  %v6847_v19 = vld [vmem:[#allocation93_spill] sm:$0xff]  ;;  %v6848_v56 = vld [vmem:[#allocation80_spill] sm:$0xff] }
 0x2cc   :  { %1734 = vmatpush.bf16.msra.mxu1 %v6838_v62  ;;  %1760 = vmatpush.bf16.msra.mxu3 %v6839_v3  ;;  %v6849_v62 = vld [vmem:[#allocation81_spill] sm:$0xff]  ;;  %v6850_v3 = vld [vmem:[#allocation94_spill] sm:$0xff] }
 0x2cf   :  { %1672 = vmatpush.bf16.msrb.mxu0 %v6840_v32  ;;  %1698 = vmatpush.bf16.msrb.mxu2 %v6841_v60  ;;  %v6851_v32 = vld [vmem:[#allocation95_spill] sm:$0xff]  ;;  %v6852_v60 = vld [vmem:[#allocation84_spill] sm:$0xff] }
 0x2d0   :  { %1735 = vmatpush.bf16.msra.mxu1 %v6842_v61  ;;  %1761 = vmatpush.bf16.msra.mxu3 %v6843_v34  ;;  %v6853_v61 = vld [vmem:[#allocation85_spill] sm:$0xff]  ;;  %v6854_v34 = vld [vmem:[#allocation96_spill] sm:$0xff] }
 0x2d3   :  { %1673 = vmatpush.bf16.msrb.mxu0 %v6844_v14  ;;  %1699 = vmatpush.bf16.msrb.mxu2 %v6845_v15  ;;  %v6855_v14 = vld [vmem:[#allocation97_spill] sm:$0xff]  ;;  %v6856_v15 = vld [vmem:[#allocation88_spill] sm:$0xff] }
 0x2d4   :  { %1736 = vmatpush.bf16.msra.mxu1 %v6848_v56  ;;  %1762 = vmatpush.bf16.msra.mxu3 %v6849_v62  ;;  %v6859_v56 = vld [vmem:[#allocation99_spill] sm:$0xff]  ;;  %v6860_v62 = vld [vmem:[#allocation100_spill] sm:$0xff] }
 0x2d7   :  { %1718 = vmatpush.bf16.msra.mxu0 %v6846_v59  ;;  %1744 = vmatpush.bf16.msra.mxu2 %v6847_v19  ;;  %v6857_v59 = vld [vmem:[#allocation89_spill] sm:$0xff]  ;;  %v6858_v19 = vld [vmem:[#allocation98_spill] sm:$0xff] }
 0x2d8   :  { %1737 = vmatpush.bf16.msra.mxu1 %v6852_v60  ;;  %1763 = vmatpush.bf16.msra.mxu3 %v6853_v61  ;;  %v6863_v60 = vld [vmem:[#allocation105_spill] sm:$0xff]  ;;  %v6864_v61 = vld [vmem:[#allocation107_spill] sm:$0xff] }
 0x2db   :  { %1719 = vmatpush.bf16.msra.mxu0 %v6850_v3  ;;  %1745 = vmatpush.bf16.msra.mxu2 %v6851_v32  ;;  %v6861_v3 = vld [vmem:[#allocation101_spill] sm:$0xff]  ;;  %v6862_v32 = vld [vmem:[#allocation104_spill] sm:$0xff] }
 0x2dc   :  { %1738 = vmatpush.bf16.msra.mxu1 %v6856_v15  ;;  %1764 = vmatpush.bf16.msra.mxu3 %v6857_v59  ;;  %v6867_v15 = vld [vmem:[#allocation112_spill] sm:$0xff] }
 0x2df   :  { %1720 = vmatpush.bf16.msra.mxu0 %v6854_v34  ;;  %1746 = vmatpush.bf16.msra.mxu2 %v6855_v14  ;;  %v6865_v34 = vld [vmem:[#allocation108_spill] sm:$0xff]  ;;  %v6866_v14 = vld [vmem:[#allocation111_spill] sm:$0xff] }
 0x2e3   :  { %1721 = vmatpush.bf16.msra.mxu0 %v6858_v19  ;;  %1747 = vmatpush.bf16.msra.mxu2 %v6859_v56 }
 0x2e7   :  { %1722 = vmatpush.bf16.msra.mxu0 %v6860_v62  ;;  %1748 = vmatpush.bf16.msra.mxu2 %v6861_v3 }
 0x2eb   :  { %1723 = vmatpush.bf16.msra.mxu0 %v6862_v32  ;;  %1749 = vmatpush.bf16.msra.mxu2 %v6863_v60 }
 0x2ef   :  { %1724 = vmatpush.bf16.msra.mxu0 %v6864_v61  ;;  %1750 = vmatpush.bf16.msra.mxu2 %v6865_v34 }
 0x2f3   :  { %1725 = vmatpush.bf16.msra.mxu0 %v6866_v14  ;;  %1751 = vmatpush.bf16.msra.mxu2 %v6867_v15 }
 0x2fc   :  { %v1466_v59 = vpop.f32.mrf.mxu1 }
 0x302   :  { %v1492_v19 = vpop.f32.mrf.mxu3 }
 0x304   :  { %v1468_v55 = vpop.f32.mrf.mxu1 }
 0x30a   :  { %v1494_v56 = vpop.f32.mrf.mxu3 }
 0x30c   :  { %v1518_v41 = vpop.f32.mrf.mxu1 }
 0x312   :  { %v1544_v13 = vpop.f32.mrf.mxu3 }
 0x313   :  { %v1453_v62 = vpop.f32.mrf.mxu0 }
 0x314   :  { %v1454_v3 = vadd.f32 %v1453_v62, %v6868_v0  ;;  %v1520_v24 = vpop.f32.mrf.mxu1 }
 0x316   :  { %v1467_v32 = vadd.f32 %v1466_v59, %v1454_v3 }
 0x318   :  { %v1548_v42 = vmul.f32 0.5, %v1467_v32 }
 0x319   :  { %v1479_v60 = vpop.f32.mrf.mxu2 }
 0x31a   :  { %v1480_v61 = vadd.f32 %v1479_v60, %v6804_v53  ;;  %v1546_v14 = vpop.f32.mrf.mxu3  ;;  %4634 = vtanh.f32 %v1548_v42 }
 0x31b   :  { %v1455_v34 = vpop.f32.mrf.mxu0 }
 0x31c   :  { %v1493_v39 = vadd.f32 %v1492_v19, %v1480_v61 }
 0x31e   :  { %v1552_v51 = vmul.f32 0.5, %v1493_v39  ;;  %v1588_v15 = vpop.f32.mrf.mxu1 }
 0x31f   :  { %v1623_v32 = vrot.slane %v1588_v15, 2 }
 0x320   :  { %4636 = vtanh.f32 %v1552_v51  ;;  %v4635_v1 = vpop.eup %4634 }
 0x321   :  { %v1481_v55 = vpop.f32.mrf.mxu2  ;;  %v1550_v60 = vmul.f32 0.5, %v4635_v1  ;;  %v1631_v19 = vadd.f32 %v1623_v32, %v5447_v10 }
 0x323   :  { %v1505_v56 = vpop.f32.mrf.mxu0  ;;  %v1551_v14 = vadd.f32 0.5, %v1550_v60 }
 0x324   :  { %v1506_v29 = vadd.f32 %v1505_v56, %v6869_v47  ;;  %v1614_v24 = vpop.f32.mrf.mxu3 }
 0x326   :  { %v4637_v62 = vpop.eup %4636  ;;  %v1519_v0 = vadd.f32 %v1518_v41, %v1506_v29  ;;  %v1590_v3 = vpop.f32.mrf.mxu1 }
 0x327   :  { %v1554_v59 = vmul.f32 0.5, %v4637_v62  ;;  %v1625_v3 = vrot.slane %v1614_v24, 2 }
 0x328   :  { %4638 = vtanh.f32 %v1519_v0  ;;  %v1638_v0 = vmul.f32 0.5, %v1631_v19 }
 0x329   :  { %v1531_v34 = vpop.f32.mrf.mxu2  ;;  %v1555_v39 = vadd.f32 0.5, %v1554_v59 }
 0x32a   :  { %v1532_v61 = vadd.f32 %v1531_v34, %v5557_v4 }
 0x32b   :  { %v1507_v42 = vpop.f32.mrf.mxu0  ;;  %v1561_v47 = vmul.f32 %v1555_v39, %v5673_v44 }
 0x32c   :  { %v1545_v51 = vadd.f32 %v1544_v13, %v1532_v61  ;;  %v1616_v41 = vpop.f32.mrf.mxu3  ;;  %v1633_v61 = vadd.f32 %v1625_v3, %v5466_v49 }
 0x32e   :  { %v4639_v55 = vpop.eup %4638  ;;  %v1557_v56 = vmul.f32 0.5, %v1545_v51 }
 0x32f   :  { %v1562_v29 = vmul.f32 %v4639_v55, %v1551_v14 }
 0x330   :  { %4640 = vtanh.f32 %v1557_v56 }
 0x331   :  { %v5785_v62 = vadd.f32 %v1562_v29, %v1561_v47  ;;  %v1533_v1 = vpop.f32.mrf.mxu2  ;;  %v1643_v29 = vmul.f32 0.5, %v1633_v61 }
 0x333   :  { %4642 = vtanh.f32 %v5785_v62  ;;  %v1575_v15 = vpop.f32.mrf.mxu0 }
 0x334   :  { %v1622_v59 = vrot.slane %v1575_v15, 2  ;;  %4644 = vtanh.f32 %v1638_v0 }
 0x336   :  { %v4641_v13 = vpop.eup %4640  ;;  %v1630_v10 = vadd.f32 %v1622_v59, %v5443_v22  ;;  %v1648_v59 = vrot.slane %v5682_v57, 6 }
 0x337   :  { %v1559_v60 = vmul.f32 0.5, %v4641_v13 }
 0x338   :  { %v1634_v32 = vmul.f32 0.5, %v1630_v10 }
 0x339   :  { %v4643_v34 = vpop.eup %4642  ;;  %v1560_v44 = vadd.f32 0.5, %v1559_v60  ;;  %v1601_v39 = vpop.f32.mrf.mxu2 }
 0x33a   :  { %4646 = vtanh.f32 %v1634_v32  ;;  %v4645_v47 = vpop.eup %4644  ;;  %v1624_v51 = vrot.slane %v1601_v39, 2 }
 0x33b   :  { %v1565_v42 = vmul.f32 %v4643_v34, %v1560_v44  ;;  %v1577_v14 = vpop.f32.mrf.mxu0  ;;  %v1640_v56 = vmul.f32 0.5, %v4645_v47  ;;  %v6870_v47 = vld [vmem:[#allocation56_spill] sm:$0xff] }
 0x33c   :  { %v1632_v55 = vadd.f32 %v1624_v51, %v5462_v16  ;;  %v6872_v51 = vld [vmem:[#allocation38_spill] sm:$0xff]  ;;  %v6873_v14 = vld [vmem:[#allocation40_spill] sm:$0xff] }
 0x33d   :  { %v1656_v19 = vrot.slane %v1565_v42, 2  ;;  %v1641_v1 = vadd.f32 0.5, %v1640_v56  ;;  %v6871_v42 = vld [vmem:[#allocation57_spill] sm:$0xff]  ;;  %v6876_v56 = vld [vmem:[#allocation42_spill] sm:$0xff] }
 0x33e   :  { %4648 = vtanh.f32 %v1632_v55  ;;  %v6875_v55 = vld [vmem:[#allocation59_spill] sm:$0xff] }
 0x33f   :  { %v1659_v24 = vpack.c.bf16 %v1656_v19, %v1656_v19  ;;  %4650 = vtanh.f32 %v1643_v29  ;;  %v1650_v13 = vmul.f32 %v1648_v59, %v1641_v1  ;;  %v6874_v19 = vld [vmem:[#allocation58_spill] sm:$0xff]  ;;  %v6877_v29 = vld [vmem:[#allocation44_spill] sm:$0xff]  ;;  %v6885_v59 = vld [vmem:[#allocation63_spill] sm:$0xff] }
 0x340   :  { %v4647_v22 = vpop.eup %4646  ;;  %v6882_v1 = vld [vmem:[#allocation52_spill] sm:$0xff] }
 0x341   :  { %v1636_v41 = vmul.f32 0.5, %v4647_v22  ;;  %v1663_v0 = vrot.slane %v1659_v24, 3  ;;  %v1603_v15 = vpop.f32.mrf.mxu2  ;;  %v6878_v24 = vld [vmem:[#allocation48_spill] sm:$0xff]  ;;  %v6879_v22 = vld [vmem:[#allocation51_spill] sm:$0xff] }
 0x342   :  { %v6883_v15 = vld [vmem:[#allocation53_spill] sm:$0xff] }
 0x343   :  { %v1637_v49 = vadd.f32 0.5, %v1636_v41  ;;  %1687 = vmatmul.bf16.vlgmr.msrb.gmra.mxu1 %v1663_v0  ;;  %1713 = vmatmul.bf16.vlgmr.msrb.gmra.mxu3 %v1663_v0  ;;  %v6880_v41 = vld [vmem:[#allocation60_spill] sm:$0xff] }
 0x344   :  { %1801 = vmatpush.bf16.msrb.mxu1 %v6742_v23  ;;  %1827 = vmatpush.bf16.msrb.mxu3 %v6743_v45  ;;  %v4649_v16 = vpop.eup %4648 }
 0x345   :  { %v1651_v3 = vmul.f32 %v4649_v16, %v1637_v49  ;;  %v4651_v10 = vpop.eup %4650  ;;  %v6884_v49 = vld [vmem:[#allocation62_spill] sm:$0xff] }
 0x346   :  { %v1645_v32 = vmul.f32 0.5, %v4651_v10  ;;  %v6886_v16 = vld [vmem:[#allocation54_spill] sm:$0xff]  ;;  %v6889_v10 = vld [vmem:[#allocation65_spill] sm:$0xff] }
 0x347   :  { %v5794_v60 = vadd.f32 %v1651_v3, %v1650_v13  ;;  %v6887_v13 = vld [vmem:[#allocation55_spill] sm:$0xff]  ;;  %v6888_v3 = vld [vmem:[#allocation64_spill] sm:$0xff] }
 0x348   :  { %1802 = vmatpush.bf16.msrb.mxu1 %v6744_v26  ;;  %1828 = vmatpush.bf16.msrb.mxu3 %v6745_v63  ;;  %v1646_v57 = vadd.f32 0.5, %v1645_v32  ;;  %v6890_v32 = vld [vmem:[#allocation66_spill] sm:$0xff] }
 0x349   :  { %4652 = vtanh.f32 %v5794_v60 }
 0x34c   :  { %1803 = vmatpush.bf16.msrb.mxu1 %v6746_v9  ;;  %1829 = vmatpush.bf16.msrb.mxu3 %v6747_v31 }
 0x34f   :  { %v4653_v34 = vpop.eup %4652 }
 0x350   :  { %1804 = vmatpush.bf16.msrb.mxu1 %v6748_v7  ;;  %1830 = vmatpush.bf16.msrb.mxu3 %v6749_v58  ;;  %v1654_v44 = vmul.f32 %v4653_v34, %v1646_v57  ;;  %v6891_v57 = vld [vmem:[#allocation67_spill] sm:$0xff]  ;;  %v6892_v34 = vld [vmem:[#allocation74_spill] sm:$0xff] }
 0x352   :  { %v1658_v61 = vpack.c.bf16 %v1654_v44, %v1654_v44  ;;  %v6893_v44 = vld [vmem:[#allocation75_spill] sm:$0xff] }
 0x353   :  { %1739 = vmatmul.bf16.vlgmr.msra.gmra.mxu1 %v1663_v0  ;;  %1765 = vmatmul.bf16.vlgmr.msra.gmra.mxu3 %v1663_v0  ;;  %v6881_v0 = vld [vmem:[#allocation61_spill] sm:$0xff] }
 0x354   :  { %1805 = vmatpush.bf16.msrb.mxu1 %v6750_v11  ;;  %1831 = vmatpush.bf16.msrb.mxu3 %v6751_v18  ;;  %v1662_v39 = vrot.slane %v1658_v61, 3  ;;  %v6894_v61 = vld [vmem:[#allocation68_spill] sm:$0xff] }
 0x356   :  { %1674 = vmatmul.bf16.vlgmr.msrb.gmra.mxu0 %v1662_v39  ;;  %1700 = vmatmul.bf16.vlgmr.msrb.gmra.mxu2 %v1662_v39 }
 0x357   :  { %1788 = vmatpush.bf16.msrb.mxu0 %v5115_v8  ;;  %1814 = vmatpush.bf16.msrb.mxu2 %v5119_v12 }
 0x358   :  { %1806 = vmatpush.bf16.msrb.mxu1 %v6752_v48  ;;  %1832 = vmatpush.bf16.msrb.mxu3 %v6753_v38 }
 0x35b   :  { %1789 = vmatpush.bf16.msrb.mxu0 %v5128_v21  ;;  %1815 = vmatpush.bf16.msrb.mxu2 %v5134_v25 }
 0x35c   :  { %1807 = vmatpush.bf16.msrb.mxu1 %v6754_v30  ;;  %1833 = vmatpush.bf16.msrb.mxu3 %v6755_v27 }
 0x35f   :  { %1790 = vmatpush.bf16.msrb.mxu0 %v5140_v33  ;;  %1816 = vmatpush.bf16.msrb.mxu2 %v5146_v37 }
 0x360   :  { %1808 = vmatpush.bf16.msrb.mxu1 %v6756_v54  ;;  %1834 = vmatpush.bf16.msrb.mxu3 %v6757_v5 }
 0x363   :  { %1791 = vmatpush.bf16.msrb.mxu0 %v5155_v46  ;;  %1809 = vmatmul.bf16.vlgmr.msrb.gmra.mxu1 %v1662_v39 }
 0x364   :  { %1880 = vmatpush.bf16.msra.mxu1 %v6758_v52  ;;  %1906 = vmatpush.bf16.msra.mxu3 %v6759_v17 }
 0x365   :  { %1817 = vmatpush.bf16.msrb.mxu2 %v5161_v50  ;;  %1835 = vmatmul.bf16.vlgmr.msrb.gmra.mxu3 %v1662_v39 }
 0x366   :  { %1726 = vmatmul.bf16.vlgmr.msra.gmra.mxu0 %v1662_v39  ;;  %1752 = vmatmul.bf16.vlgmr.msra.gmra.mxu2 %v1662_v39 }
 0x367   :  { %1792 = vmatpush.bf16.msrb.mxu0 %v6807_v43 }
 0x368   :  { %1881 = vmatpush.bf16.msra.mxu1 %v6760_v28  ;;  %1907 = vmatpush.bf16.msra.mxu3 %v6806_v6 }
 0x369   :  { %1818 = vmatpush.bf16.msrb.mxu2 %v6712_v20 }
 0x36b   :  { %1793 = vmatpush.bf16.msrb.mxu0 %v6715_v2 }
 0x36c   :  { %1882 = vmatpush.bf16.msra.mxu1 %v5239_v35  ;;  %1908 = vmatpush.bf16.msra.mxu3 %v5241_v36 }
 0x36d   :  { %1819 = vmatpush.bf16.msrb.mxu2 %v6716_v40 }
 0x36f   :  { %1794 = vmatpush.bf16.msrb.mxu0 %v6872_v51 }
 0x370   :  { %1883 = vmatpush.bf16.msra.mxu1 %v6870_v47  ;;  %1909 = vmatpush.bf16.msra.mxu3 %v6871_v42 }
 0x371   :  { %1820 = vmatpush.bf16.msrb.mxu2 %v6873_v14 }
 0x373   :  { %1795 = vmatpush.bf16.msrb.mxu0 %v6876_v56  ;;  %v6933_v56 = vld [vmem:[#allocation36_spill] sm:$0xff] }
 0x374   :  { %1884 = vmatpush.bf16.msra.mxu1 %v6874_v19  ;;  %1910 = vmatpush.bf16.msra.mxu3 %v6875_v55 }
 0x375   :  { %1821 = vmatpush.bf16.msrb.mxu2 %v6877_v29 }
 0x376   :  { %1796 = vmatmul.bf16.vlgmr.msrb.gmra.mxu0 %v1662_v39 }
 0x377   :  { %1867 = vmatpush.bf16.msra.mxu0 %v6878_v24 }
 0x378   :  { %1885 = vmatpush.bf16.msra.mxu1 %v6880_v41  ;;  %1911 = vmatpush.bf16.msra.mxu3 %v6881_v0 }
 0x379   :  { %1893 = vmatpush.bf16.msra.mxu2 %v6879_v22 }
 0x37a   :  { %1822 = vmatmul.bf16.vlgmr.msrb.gmra.mxu2 %v1662_v39  ;;  %v6895_v39 = vld [vmem:[#allocation69_spill] sm:$0xff] }
 0x37b   :  { %1868 = vmatpush.bf16.msra.mxu0 %v6882_v1  ;;  %v6932_v1 = vld [vmem:[#allocation32_spill] sm:$0xff] }
 0x37c   :  { %1886 = vmatpush.bf16.msra.mxu1 %v6884_v49  ;;  %1912 = vmatpush.bf16.msra.mxu3 %v6885_v59  ;;  %v6896_v59 = vld [vmem:[#allocation78_spill] sm:$0xff] }
 0x37d   :  { %1894 = vmatpush.bf16.msra.mxu2 %v6883_v15 }
 0x37f   :  { %1869 = vmatpush.bf16.msra.mxu0 %v6886_v16  ;;  %v6897_v16 = vld [vmem:[#allocation79_spill] sm:$0xff] }
 0x380   :  { %1887 = vmatpush.bf16.msra.mxu1 %v6888_v3  ;;  %1913 = vmatpush.bf16.msra.mxu3 %v6889_v10  ;;  %v6899_v3 = vld [vmem:[#allocation71_spill] sm:$0xff]  ;;  %v6900_v10 = vld [vmem:[#allocation82_spill] sm:$0xff] }
 0x381   :  { %1895 = vmatpush.bf16.msra.mxu2 %v6887_v13  ;;  %v6898_v13 = vld [vmem:[#allocation70_spill] sm:$0xff] }
 0x383   :  { %1870 = vmatpush.bf16.msra.mxu0 %v6892_v34  ;;  %v6903_v34 = vld [vmem:[#allocation73_spill] sm:$0xff] }
 0x384   :  { %1932 = vmatpush.bf16.msrb.mxu1 %v6890_v32  ;;  %1958 = vmatpush.bf16.msrb.mxu3 %v6891_v57  ;;  %v6901_v32 = vld [vmem:[#allocation83_spill] sm:$0xff]  ;;  %v6902_v57 = vld [vmem:[#allocation72_spill] sm:$0xff] }
 0x385   :  { %1896 = vmatpush.bf16.msra.mxu2 %v6893_v44  ;;  %v6904_v44 = vld [vmem:[#allocation86_spill] sm:$0xff] }
 0x387   :  { %1871 = vmatpush.bf16.msra.mxu0 %v6896_v59  ;;  %v6907_v59 = vld [vmem:[#allocation77_spill] sm:$0xff] }
 0x388   :  { %1933 = vmatpush.bf16.msrb.mxu1 %v6894_v61  ;;  %1959 = vmatpush.bf16.msrb.mxu3 %v6895_v39  ;;  %v6905_v61 = vld [vmem:[#allocation87_spill] sm:$0xff]  ;;  %v6906_v39 = vld [vmem:[#allocation76_spill] sm:$0xff] }
 0x389   :  { %1897 = vmatpush.bf16.msra.mxu2 %v6897_v16  ;;  %v6908_v16 = vld [vmem:[#allocation90_spill] sm:$0xff] }
 0x38b   :  { %1872 = vmatpush.bf16.msra.mxu0 %v6900_v10  ;;  %v6911_v10 = vld [vmem:[#allocation93_spill] sm:$0xff] }
 0x38c   :  { %1934 = vmatpush.bf16.msrb.mxu1 %v6898_v13  ;;  %1960 = vmatpush.bf16.msrb.mxu3 %v6899_v3  ;;  %v6909_v13 = vld [vmem:[#allocation91_spill] sm:$0xff]  ;;  %v6910_v3 = vld [vmem:[#allocation92_spill] sm:$0xff] }
 0x38d   :  { %1898 = vmatpush.bf16.msra.mxu2 %v6901_v32  ;;  %v6912_v32 = vld [vmem:[#allocation80_spill] sm:$0xff] }
 0x38f   :  { %1873 = vmatpush.bf16.msra.mxu0 %v6904_v44  ;;  %v6915_v44 = vld [vmem:[#allocation95_spill] sm:$0xff] }
 0x390   :  { %1935 = vmatpush.bf16.msrb.mxu1 %v6902_v57  ;;  %1961 = vmatpush.bf16.msrb.mxu3 %v6903_v34  ;;  %v6913_v57 = vld [vmem:[#allocation81_spill] sm:$0xff]  ;;  %v6914_v34 = vld [vmem:[#allocation94_spill] sm:$0xff] }
 0x391   :  { %1899 = vmatpush.bf16.msra.mxu2 %v6905_v61  ;;  %v6916_v61 = vld [vmem:[#allocation84_spill] sm:$0xff] }
 0x393   :  { %1874 = vmatpush.bf16.msra.mxu0 %v6908_v16  ;;  %v6919_v16 = vld [vmem:[#allocation97_spill] sm:$0xff] }
 0x394   :  { %1936 = vmatpush.bf16.msrb.mxu1 %v6906_v39  ;;  %1962 = vmatpush.bf16.msrb.mxu3 %v6907_v59  ;;  %v6917_v39 = vld [vmem:[#allocation85_spill] sm:$0xff]  ;;  %v6918_v59 = vld [vmem:[#allocation96_spill] sm:$0xff] }
 0x395   :  { %1900 = vmatpush.bf16.msra.mxu2 %v6909_v13  ;;  %v6920_v13 = vld [vmem:[#allocation88_spill] sm:$0xff] }
 0x397   :  { %1919 = vmatpush.bf16.msrb.mxu0 %v6910_v3  ;;  %v6921_v3 = vld [vmem:[#allocation89_spill] sm:$0xff] }
 0x398   :  { %1937 = vmatpush.bf16.msrb.mxu1 %v6912_v32  ;;  %1963 = vmatpush.bf16.msrb.mxu3 %v6913_v57  ;;  %v6923_v32 = vld [vmem:[#allocation99_spill] sm:$0xff]  ;;  %v6924_v57 = vld [vmem:[#allocation100_spill] sm:$0xff] }
 0x399   :  { %1945 = vmatpush.bf16.msrb.mxu2 %v6911_v10  ;;  %v6922_v10 = vld [vmem:[#allocation98_spill] sm:$0xff] }
 0x39b   :  { %1920 = vmatpush.bf16.msrb.mxu0 %v6914_v34  ;;  %v6925_v34 = vld [vmem:[#allocation101_spill] sm:$0xff] }
 0x39c   :  { %1938 = vmatpush.bf16.msrb.mxu1 %v6916_v61  ;;  %1964 = vmatpush.bf16.msrb.mxu3 %v6917_v39  ;;  %v6927_v61 = vld [vmem:[#allocation105_spill] sm:$0xff]  ;;  %v6928_v39 = vld [vmem:[#allocation107_spill] sm:$0xff] }
 0x39d   :  { %1946 = vmatpush.bf16.msrb.mxu2 %v6915_v44  ;;  %v6926_v44 = vld [vmem:[#allocation104_spill] sm:$0xff] }
 0x39f   :  { %1921 = vmatpush.bf16.msrb.mxu0 %v6918_v59  ;;  %v6929_v59 = vld [vmem:[#allocation108_spill] sm:$0xff] }
 0x3a0   :  { %1939 = vmatpush.bf16.msrb.mxu1 %v6920_v13  ;;  %1965 = vmatpush.bf16.msrb.mxu3 %v6921_v3  ;;  %v6931_v13 = vld [vmem:[#allocation112_spill] sm:$0xff] }
 0x3a1   :  { %1947 = vmatpush.bf16.msrb.mxu2 %v6919_v16  ;;  %v6930_v16 = vld [vmem:[#allocation111_spill] sm:$0xff] }
 0x3a3   :  { %1922 = vmatpush.bf16.msrb.mxu0 %v6922_v10 }
 0x3a5   :  { %1948 = vmatpush.bf16.msrb.mxu2 %v6923_v32 }
 0x3a7   :  { %1923 = vmatpush.bf16.msrb.mxu0 %v6924_v57 }
 0x3a9   :  { %1949 = vmatpush.bf16.msrb.mxu2 %v6925_v34 }
 0x3ab   :  { %1924 = vmatpush.bf16.msrb.mxu0 %v6926_v44 }
 0x3ad   :  { %1950 = vmatpush.bf16.msrb.mxu2 %v6927_v61 }
 0x3af   :  { %1925 = vmatpush.bf16.msrb.mxu0 %v6928_v39 }
 0x3b1   :  { %1951 = vmatpush.bf16.msrb.mxu2 %v6929_v59 }
 0x3b3   :  { %1926 = vmatpush.bf16.msrb.mxu0 %v6930_v16 }
 0x3b5   :  { %1952 = vmatpush.bf16.msrb.mxu2 %v6931_v13 }
 0x3c0   :  { %v1688_v3 = vpop.f32.mrf.mxu1 }
 0x3c6   :  { %v1714_v10 = vpop.f32.mrf.mxu3 }
 0x3c8   :  { %v1690_v49 = vpop.f32.mrf.mxu1 }
 0x3ce   :  { %v1716_v32 = vpop.f32.mrf.mxu3 }
 0x3d0   :  { %v1740_v15 = vpop.f32.mrf.mxu1 }
 0x3d3   :  { %v1675_v57 = vpop.f32.mrf.mxu0 }
 0x3d4   :  { %v1676_v34 = vadd.f32 %v1675_v57, %v6932_v1 }
 0x3d6   :  { %v1766_v0 = vpop.f32.mrf.mxu3  ;;  %v1689_v44 = vadd.f32 %v1688_v3, %v1676_v34  ;;  %v6934_v34 = vld [vmem:[#allocation106_spill] sm:$0xff] }
 0x3d7   :  { %v6935_v14 = vperm.slane %v6934_v34, 1 }
 0x3d8   :  { %v1742_v41 = vpop.f32.mrf.mxu1  ;;  %v1770_v22 = vmul.f32 0.5, %v1689_v44 }
 0x3d9   :  { %v1701_v61 = vpop.f32.mrf.mxu2 }
 0x3da   :  { %v1702_v39 = vadd.f32 %v1701_v61, %v6804_v53  ;;  %4654 = vtanh.f32 %v1770_v22  ;;  %v6936_v61 = vld [vmem:[#allocation103_spill] sm:$0xff] }
 0x3db   :  { %v1677_v59 = vpop.f32.mrf.mxu0  ;;  %v5897_v44 = vadd.f32 %v6936_v61, %v6935_v14  ;;  %v6937_v61 = vperm.slane %v6934_v34, 0 }
 0x3dc   :  { %v1715_v24 = vadd.f32 %v1714_v10, %v1702_v39 }
 0x3de   :  { %v1768_v16 = vpop.f32.mrf.mxu3  ;;  %v1774_v29 = vmul.f32 0.5, %v1715_v24 }
 0x3e0   :  { %4656 = vtanh.f32 %v1774_v29  ;;  %v1810_v13 = vpop.f32.mrf.mxu1  ;;  %v4655_v19 = vpop.eup %4654 }
 0x3e1   :  { %v1703_v49 = vpop.f32.mrf.mxu2  ;;  %v1772_v24 = vmul.f32 0.5, %v4655_v19  ;;  %v1841_v29 = vadd.f32 %v1810_v13, %v5897_v44  ;;  %v6938_v13 = vld [vmem:[#allocation102_spill] sm:$0xff] }
 0x3e3   :  { %v1727_v32 = vpop.f32.mrf.mxu0 }
 0x3e4   :  { %v1728_v55 = vadd.f32 %v1727_v32, %v6933_v56  ;;  %v1773_v32 = vadd.f32 0.5, %v1772_v24 }
 0x3e6   :  { %v4657_v57 = vpop.eup %4656  ;;  %v1741_v1 = vadd.f32 %v1740_v15, %v1728_v55  ;;  %v1848_v15 = vmul.f32 0.5, %v1841_v29 }
 0x3e7   :  { %v1776_v3 = vmul.f32 0.5, %v4657_v57 }
 0x3e8   :  { %v1836_v41 = vpop.f32.mrf.mxu3  ;;  %4658 = vtanh.f32 %v1741_v1  ;;  %v1812_v59 = vpop.f32.mrf.mxu1 }
 0x3e9   :  { %v1753_v22 = vpop.f32.mrf.mxu2  ;;  %v1777_v10 = vadd.f32 0.5, %v1776_v3  ;;  %v5907_v59 = vadd.f32 %v6938_v13, %v6937_v61 }
 0x3ea   :  { %v1754_v16 = vadd.f32 %v1753_v22, %v5557_v4  ;;  %v6940_v22 = vld [vmem:[#allocation110_spill] sm:$0xff] }
 0x3eb   :  { %v1729_v39 = vpop.f32.mrf.mxu0  ;;  %v1783_v56 = vmul.f32 %v1777_v10, %v5785_v62  ;;  %v6939_v62 = vperm.slane %v6934_v34, 3 }
 0x3ec   :  { %v1767_v49 = vadd.f32 %v1766_v0, %v1754_v16 }
 0x3ed   :  { %v5914_v29 = vadd.f32 %v6940_v22, %v6939_v62  ;;  %v1858_v22 = vrot.slane %v5794_v60, 6 }
 0x3ee   :  { %v4659_v55 = vpop.eup %4658  ;;  %v1779_v57 = vmul.f32 0.5, %v1767_v49  ;;  %v6941_v49 = vperm.slane %v6934_v34, 2 }
 0x3ef   :  { %v1784_v53 = vmul.f32 %v4659_v55, %v1773_v32  ;;  %v1843_v10 = vadd.f32 %v1836_v41, %v5914_v29  ;;  %v6942_v32 = vld [vmem:[#allocation109_spill] sm:$0xff] }
 0x3f0   :  { %v1838_v14 = vpop.f32.mrf.mxu3  ;;  %4660 = vtanh.f32 %v1779_v57  ;;  %v5920_v55 = vadd.f32 %v6942_v32, %v6941_v49 }
 0x3f1   :  { %v5902_v1 = vadd.f32 %v1784_v53, %v1783_v56  ;;  %v1755_v19 = vpop.f32.mrf.mxu2  ;;  %4662 = vtanh.f32 %v1848_v15 }
 0x3f3   :  { %4664 = vtanh.f32 %v5902_v1  ;;  %v1797_v0 = vpop.f32.mrf.mxu0 }
 0x3f4   :  { %v1840_v3 = vadd.f32 %v1797_v0, %v5907_v59  ;;  %v1853_v0 = vmul.f32 0.5, %v1843_v10 }
 0x3f6   :  { %v4661_v24 = vpop.eup %4660  ;;  %v1844_v53 = vmul.f32 0.5, %v1840_v3 }
 0x3f7   :  { %v1781_v56 = vmul.f32 0.5, %v4661_v24  ;;  %v4663_v16 = vpop.eup %4662 }
 0x3f8   :  { %4666 = vtanh.f32 %v1844_v53  ;;  %v1850_v13 = vmul.f32 0.5, %v4663_v16 }
 0x3f9   :  { %v4665_v39 = vpop.eup %4664  ;;  %v1782_v15 = vadd.f32 0.5, %v1781_v56 }
 0x3fa   :  { %v1851_v41 = vadd.f32 0.5, %v1850_v13  ;;  %v6945_v13 = vld [vmem:[#allocation59_spill] sm:$0xff] }
 0x3fb   :  { %v1787_v14 = vmul.f32 %v4665_v39, %v1782_v15  ;;  %v1799_v61 = vpop.f32.mrf.mxu0 }
 0x3fc   :  { %v1860_v39 = vmul.f32 %v1858_v22, %v1851_v41  ;;  %v6944_v61 = vld [vmem:[#allocation58_spill] sm:$0xff]  ;;  %v6950_v41 = vld [vmem:[#allocation60_spill] sm:$0xff] }
 0x3fd   :  { %v1823_v57 = vpop.f32.mrf.mxu2  ;;  %v1866_v3 = vpack.c.bf16 %v1787_v14, %v1787_v14  ;;  %v6952_v22 = vld [vmem:[#allocation52_spill] sm:$0xff] }
 0x3fe   :  { %v1842_v19 = vadd.f32 %v1823_v57, %v5920_v55  ;;  %v4667_v24 = vpop.eup %4666 }
 0x3ff   :  { %v1846_v62 = vmul.f32 0.5, %v4667_v24  ;;  %1888 = vmatmul.bf16.vlgmr.msra.gmra.mxu1 %v1866_v3  ;;  %1914 = vmatmul.bf16.vlgmr.msra.gmra.mxu3 %v1866_v3  ;;  %v6948_v24 = vld [vmem:[#allocation48_spill] sm:$0xff] }
 0x400   :  { %4668 = vtanh.f32 %v1842_v19  ;;  %2002 = vmatpush.bf16.msra.mxu1 %v6742_v23  ;;  %2028 = vmatpush.bf16.msra.mxu3 %v6743_v45  ;;  %v6943_v19 = vld [vmem:[#allocation40_spill] sm:$0xff] }
 0x401   :  { %4670 = vtanh.f32 %v1853_v0  ;;  %v1847_v34 = vadd.f32 0.5, %v1846_v62  ;;  %v6946_v0 = vld [vmem:[#allocation42_spill] sm:$0xff]  ;;  %v6949_v62 = vld [vmem:[#allocation51_spill] sm:$0xff] }
 0x404   :  { %2003 = vmatpush.bf16.msra.mxu1 %v6744_v26  ;;  %2029 = vmatpush.bf16.msra.mxu3 %v6745_v63 }
 0x405   :  { %v1825_v53 = vpop.f32.mrf.mxu2 }
 0x406   :  { %v4669_v56 = vpop.eup %4668  ;;  %v6953_v53 = vld [vmem:[#allocation53_spill] sm:$0xff] }
 0x407   :  { %v1861_v16 = vmul.f32 %v4669_v56, %v1847_v34  ;;  %v4671_v10 = vpop.eup %4670  ;;  %v6951_v34 = vld [vmem:[#allocation61_spill] sm:$0xff]  ;;  %v6954_v56 = vld [vmem:[#allocation62_spill] sm:$0xff] }
 0x408   :  { %2004 = vmatpush.bf16.msra.mxu1 %v6746_v9  ;;  %2030 = vmatpush.bf16.msra.mxu3 %v6747_v31  ;;  %v1855_v32 = vmul.f32 0.5, %v4671_v10  ;;  %v6957_v10 = vld [vmem:[#allocation55_spill] sm:$0xff] }
 0x409   :  { %v5928_v49 = vadd.f32 %v1861_v16, %v1860_v39  ;;  %v6955_v39 = vld [vmem:[#allocation63_spill] sm:$0xff]  ;;  %v6956_v16 = vld [vmem:[#allocation54_spill] sm:$0xff] }
 0x40a   :  { %v1856_v60 = vadd.f32 0.5, %v1855_v32  ;;  %v6958_v32 = vld [vmem:[#allocation64_spill] sm:$0xff] }
 0x40b   :  { %4672 = vtanh.f32 %v5928_v49 }
 0x40c   :  { %2005 = vmatpush.bf16.msra.mxu1 %v6748_v7  ;;  %2031 = vmatpush.bf16.msra.mxu3 %v6749_v58 }
 0x40f   :  { %1940 = vmatmul.bf16.vlgmr.msrb.gmra.mxu1 %v1866_v3  ;;  %1966 = vmatmul.bf16.vlgmr.msrb.gmra.mxu3 %v1866_v3  ;;  %v6947_v3 = vld [vmem:[#allocation44_spill] sm:$0xff] }
 0x410   :  { %2006 = vmatpush.bf16.msra.mxu1 %v6750_v11  ;;  %2032 = vmatpush.bf16.msra.mxu3 %v6751_v18 }
 0x411   :  { %v4673_v15 = vpop.eup %4672 }
 0x412   :  { %v1864_v57 = vmul.f32 %v4673_v15, %v1856_v60  ;;  %v6959_v60 = vld [vmem:[#allocation65_spill] sm:$0xff]  ;;  %v6960_v15 = vld [vmem:[#allocation66_spill] sm:$0xff] }
 0x414   :  { %v1865_v14 = vpack.c.bf16 %v1864_v57, %v1864_v57  ;;  %2007 = vmatpush.bf16.msra.mxu1 %v6752_v48  ;;  %2033 = vmatpush.bf16.msra.mxu3 %v6753_v38  ;;  %v6961_v57 = vld [vmem:[#allocation67_spill] sm:$0xff] }
 0x416   :  { %1875 = vmatmul.bf16.vlgmr.msra.gmra.mxu0 %v1865_v14  ;;  %1901 = vmatmul.bf16.vlgmr.msra.gmra.mxu2 %v1865_v14 }
 0x417   :  { %1989 = vmatpush.bf16.msra.mxu0 %v5115_v8  ;;  %2015 = vmatpush.bf16.msra.mxu2 %v5119_v12 }
 0x418   :  { %2008 = vmatpush.bf16.msra.mxu1 %v6754_v30  ;;  %2034 = vmatpush.bf16.msra.mxu3 %v6755_v27 }
 0x41b   :  { %1990 = vmatpush.bf16.msra.mxu0 %v5128_v21  ;;  %2016 = vmatpush.bf16.msra.mxu2 %v5134_v25 }
 0x41c   :  { %2009 = vmatpush.bf16.msra.mxu1 %v6756_v54  ;;  %2035 = vmatpush.bf16.msra.mxu3 %v6757_v5 }
 0x41f   :  { %1991 = vmatpush.bf16.msra.mxu0 %v5140_v33  ;;  %2017 = vmatpush.bf16.msra.mxu2 %v5146_v37 }
 0x420   :  { %2102 = vmatpush.bf16.msrb.mxu1 %v6758_v52  ;;  %2128 = vmatpush.bf16.msrb.mxu3 %v6759_v17 }
 0x421   :  { %2010 = vmatmul.bf16.vlgmr.msra.gmra.mxu1 %v1865_v14  ;;  %2036 = vmatmul.bf16.vlgmr.msra.gmra.mxu3 %v1865_v14 }
 0x423   :  { %1992 = vmatpush.bf16.msra.mxu0 %v5155_v46  ;;  %2018 = vmatpush.bf16.msra.mxu2 %v5161_v50 }
 0x424   :  { %2103 = vmatpush.bf16.msrb.mxu1 %v6760_v28  ;;  %2129 = vmatpush.bf16.msrb.mxu3 %v6806_v6 }
 0x426   :  { %1927 = vmatmul.bf16.vlgmr.msrb.gmra.mxu0 %v1865_v14  ;;  %1953 = vmatmul.bf16.vlgmr.msrb.gmra.mxu2 %v1865_v14 }
 0x427   :  { %1993 = vmatpush.bf16.msra.mxu0 %v6807_v43  ;;  %2019 = vmatpush.bf16.msra.mxu2 %v6712_v20 }
 0x428   :  { %2104 = vmatpush.bf16.msrb.mxu1 %v5239_v35  ;;  %2130 = vmatpush.bf16.msrb.mxu3 %v5241_v36 }
 0x42b   :  { %1994 = vmatpush.bf16.msra.mxu0 %v6715_v2  ;;  %2020 = vmatpush.bf16.msra.mxu2 %v6716_v40 }
 0x42c   :  { %2105 = vmatpush.bf16.msrb.mxu1 %v6870_v47  ;;  %2131 = vmatpush.bf16.msrb.mxu3 %v6871_v42 }
 0x42f   :  { %1995 = vmatpush.bf16.msra.mxu0 %v6872_v51  ;;  %2021 = vmatpush.bf16.msra.mxu2 %v6943_v19  ;;  %v7004_v51 = vld [vmem:[#allocation36_spill] sm:$0xff] }
 0x430   :  { %2106 = vmatpush.bf16.msrb.mxu1 %v6944_v61  ;;  %2132 = vmatpush.bf16.msrb.mxu3 %v6945_v13 }
 0x433   :  { %1996 = vmatpush.bf16.msra.mxu0 %v6946_v0  ;;  %2022 = vmatpush.bf16.msra.mxu2 %v6947_v3  ;;  %v7003_v0 = vld [vmem:[#allocation34_spill] sm:$0xff] }
 0x434   :  { %2107 = vmatpush.bf16.msrb.mxu1 %v6950_v41  ;;  %2133 = vmatpush.bf16.msrb.mxu3 %v6951_v34 }
 0x436   :  { %1997 = vmatmul.bf16.vlgmr.msra.gmra.mxu0 %v1865_v14  ;;  %2023 = vmatmul.bf16.vlgmr.msra.gmra.mxu2 %v1865_v14  ;;  %v6962_v14 = vld [vmem:[#allocation74_spill] sm:$0xff] }
 0x437   :  { %2089 = vmatpush.bf16.msrb.mxu0 %v6948_v24  ;;  %2115 = vmatpush.bf16.msrb.mxu2 %v6949_v62  ;;  %v7002_v62 = vld [vmem:[#allocation32_spill] sm:$0xff] }
 0x438   :  { %2108 = vmatpush.bf16.msrb.mxu1 %v6954_v56  ;;  %2134 = vmatpush.bf16.msrb.mxu3 %v6955_v39  ;;  %v6965_v56 = vld [vmem:[#allocation69_spill] sm:$0xff]  ;;  %v6966_v39 = vld [vmem:[#allocation78_spill] sm:$0xff] }
 0x43b   :  { %2090 = vmatpush.bf16.msrb.mxu0 %v6952_v22  ;;  %2116 = vmatpush.bf16.msrb.mxu2 %v6953_v53  ;;  %v6963_v22 = vld [vmem:[#allocation75_spill] sm:$0xff]  ;;  %v6964_v53 = vld [vmem:[#allocation68_spill] sm:$0xff] }
 0x43c   :  { %2109 = vmatpush.bf16.msrb.mxu1 %v6958_v32  ;;  %2135 = vmatpush.bf16.msrb.mxu3 %v6959_v60  ;;  %v6969_v32 = vld [vmem:[#allocation71_spill] sm:$0xff]  ;;  %v6970_v60 = vld [vmem:[#allocation82_spill] sm:$0xff] }
 0x43f   :  { %2091 = vmatpush.bf16.msrb.mxu0 %v6956_v16  ;;  %2117 = vmatpush.bf16.msrb.mxu2 %v6957_v10  ;;  %v6967_v16 = vld [vmem:[#allocation79_spill] sm:$0xff]  ;;  %v6968_v10 = vld [vmem:[#allocation70_spill] sm:$0xff] }
 0x440   :  { %2154 = vmatpush.bf16.msra.mxu1 %v6960_v15  ;;  %2180 = vmatpush.bf16.msra.mxu3 %v6961_v57  ;;  %v6971_v15 = vld [vmem:[#allocation83_spill] sm:$0xff]  ;;  %v6972_v57 = vld [vmem:[#allocation72_spill] sm:$0xff] }
 0x443   :  { %2092 = vmatpush.bf16.msrb.mxu0 %v6962_v14  ;;  %2118 = vmatpush.bf16.msrb.mxu2 %v6963_v22  ;;  %v6973_v14 = vld [vmem:[#allocation73_spill] sm:$0xff]  ;;  %v6974_v22 = vld [vmem:[#allocation86_spill] sm:$0xff] }
 0x444   :  { %2155 = vmatpush.bf16.msra.mxu1 %v6964_v53  ;;  %2181 = vmatpush.bf16.msra.mxu3 %v6965_v56  ;;  %v6975_v53 = vld [vmem:[#allocation87_spill] sm:$0xff]  ;;  %v6976_v56 = vld [vmem:[#allocation76_spill] sm:$0xff] }
 0x447   :  { %2093 = vmatpush.bf16.msrb.mxu0 %v6966_v39  ;;  %2119 = vmatpush.bf16.msrb.mxu2 %v6967_v16  ;;  %v6977_v39 = vld [vmem:[#allocation77_spill] sm:$0xff]  ;;  %v6978_v16 = vld [vmem:[#allocation90_spill] sm:$0xff] }
 0x448   :  { %2156 = vmatpush.bf16.msra.mxu1 %v6968_v10  ;;  %2182 = vmatpush.bf16.msra.mxu3 %v6969_v32  ;;  %v6979_v10 = vld [vmem:[#allocation91_spill] sm:$0xff]  ;;  %v6980_v32 = vld [vmem:[#allocation92_spill] sm:$0xff] }
 0x44b   :  { %2094 = vmatpush.bf16.msrb.mxu0 %v6970_v60  ;;  %2120 = vmatpush.bf16.msrb.mxu2 %v6971_v15  ;;  %v6981_v60 = vld [vmem:[#allocation93_spill] sm:$0xff]  ;;  %v6982_v15 = vld [vmem:[#allocation80_spill] sm:$0xff] }
 0x44c   :  { %2157 = vmatpush.bf16.msra.mxu1 %v6972_v57  ;;  %2183 = vmatpush.bf16.msra.mxu3 %v6973_v14  ;;  %v6983_v57 = vld [vmem:[#allocation81_spill] sm:$0xff]  ;;  %v6984_v14 = vld [vmem:[#allocation94_spill] sm:$0xff] }
 0x44f   :  { %2095 = vmatpush.bf16.msrb.mxu0 %v6974_v22  ;;  %2121 = vmatpush.bf16.msrb.mxu2 %v6975_v53  ;;  %v6985_v22 = vld [vmem:[#allocation95_spill] sm:$0xff]  ;;  %v6986_v53 = vld [vmem:[#allocation84_spill] sm:$0xff] }
 0x450   :  { %2158 = vmatpush.bf16.msra.mxu1 %v6976_v56  ;;  %2184 = vmatpush.bf16.msra.mxu3 %v6977_v39  ;;  %v6987_v56 = vld [vmem:[#allocation85_spill] sm:$0xff]  ;;  %v6988_v39 = vld [vmem:[#allocation96_spill] sm:$0xff] }
 0x453   :  { %2096 = vmatpush.bf16.msrb.mxu0 %v6978_v16  ;;  %2122 = vmatpush.bf16.msrb.mxu2 %v6979_v10  ;;  %v6989_v16 = vld [vmem:[#allocation97_spill] sm:$0xff]  ;;  %v6990_v10 = vld [vmem:[#allocation88_spill] sm:$0xff] }
 0x454   :  { %2159 = vmatpush.bf16.msra.mxu1 %v6982_v15  ;;  %2185 = vmatpush.bf16.msra.mxu3 %v6983_v57  ;;  %v6993_v15 = vld [vmem:[#allocation99_spill] sm:$0xff]  ;;  %v6994_v57 = vld [vmem:[#allocation100_spill] sm:$0xff] }
 0x457   :  { %2141 = vmatpush.bf16.msra.mxu0 %v6980_v32  ;;  %2167 = vmatpush.bf16.msra.mxu2 %v6981_v60  ;;  %v6991_v32 = vld [vmem:[#allocation89_spill] sm:$0xff]  ;;  %v6992_v60 = vld [vmem:[#allocation98_spill] sm:$0xff] }
 0x458   :  { %2160 = vmatpush.bf16.msra.mxu1 %v6986_v53  ;;  %2186 = vmatpush.bf16.msra.mxu3 %v6987_v56  ;;  %v6997_v53 = vld [vmem:[#allocation105_spill] sm:$0xff]  ;;  %v6998_v56 = vld [vmem:[#allocation107_spill] sm:$0xff] }
 0x45b   :  { %2142 = vmatpush.bf16.msra.mxu0 %v6984_v14  ;;  %2168 = vmatpush.bf16.msra.mxu2 %v6985_v22  ;;  %v6995_v14 = vld [vmem:[#allocation101_spill] sm:$0xff]  ;;  %v6996_v22 = vld [vmem:[#allocation104_spill] sm:$0xff] }
 0x45c   :  { %2161 = vmatpush.bf16.msra.mxu1 %v6990_v10  ;;  %2187 = vmatpush.bf16.msra.mxu3 %v6991_v32  ;;  %v7001_v10 = vld [vmem:[#allocation112_spill] sm:$0xff] }
 0x45f   :  { %2143 = vmatpush.bf16.msra.mxu0 %v6988_v39  ;;  %2169 = vmatpush.bf16.msra.mxu2 %v6989_v16  ;;  %v6999_v39 = vld [vmem:[#allocation108_spill] sm:$0xff]  ;;  %v7000_v16 = vld [vmem:[#allocation111_spill] sm:$0xff] }
 0x463   :  { %2144 = vmatpush.bf16.msra.mxu0 %v6992_v60  ;;  %2170 = vmatpush.bf16.msra.mxu2 %v6993_v15 }
 0x467   :  { %2145 = vmatpush.bf16.msra.mxu0 %v6994_v57  ;;  %2171 = vmatpush.bf16.msra.mxu2 %v6995_v14 }
 0x46b   :  { %2146 = vmatpush.bf16.msra.mxu0 %v6996_v22  ;;  %2172 = vmatpush.bf16.msra.mxu2 %v6997_v53 }
 0x46f   :  { %2147 = vmatpush.bf16.msra.mxu0 %v6998_v56  ;;  %2173 = vmatpush.bf16.msra.mxu2 %v6999_v39 }
 0x473   :  { %2148 = vmatpush.bf16.msra.mxu0 %v7000_v16  ;;  %2174 = vmatpush.bf16.msra.mxu2 %v7001_v10 }
 0x47c   :  { %v1889_v32 = vpop.f32.mrf.mxu1 }
 0x482   :  { %v1915_v60 = vpop.f32.mrf.mxu3 }
 0x484   :  { %v1891_v34 = vpop.f32.mrf.mxu1 }
 0x48a   :  { %v1917_v15 = vpop.f32.mrf.mxu3 }
 0x48c   :  { %v1941_v41 = vpop.f32.mrf.mxu1 }
 0x492   :  { %v1967_v24 = vpop.f32.mrf.mxu3 }
 0x493   :  { %v1876_v57 = vpop.f32.mrf.mxu0 }
 0x494   :  { %v1877_v14 = vadd.f32 %v1876_v57, %v7002_v62  ;;  %v1943_v3 = vpop.f32.mrf.mxu1 }
 0x496   :  { %v1890_v22 = vadd.f32 %v1889_v32, %v1877_v14 }
 0x498   :  { %v1971_v13 = vmul.f32 0.5, %v1890_v22 }
 0x499   :  { %v1902_v53 = vpop.f32.mrf.mxu2 }
 0x49a   :  { %v1903_v56 = vadd.f32 %v1902_v53, %v7003_v0  ;;  %v1969_v16 = vpop.f32.mrf.mxu3  ;;  %4674 = vtanh.f32 %v1971_v13 }
 0x49b   :  { %v1878_v39 = vpop.f32.mrf.mxu0 }
 0x49c   :  { %v1916_v61 = vadd.f32 %v1915_v60, %v1903_v56 }
 0x49e   :  { %v1975_v19 = vmul.f32 0.5, %v1916_v61  ;;  %v2011_v10 = vpop.f32.mrf.mxu1 }
 0x49f   :  { %v2046_v22 = vrot.slane %v2011_v10, 6 }
 0x4a0   :  { %4676 = vtanh.f32 %v1975_v19  ;;  %v4675_v47 = vpop.eup %4674 }
 0x4a1   :  { %v1904_v34 = vpop.f32.mrf.mxu2  ;;  %v1973_v53 = vmul.f32 0.5, %v4675_v47  ;;  %v2054_v60 = vadd.f32 %v2046_v22, %v5897_v44 }
 0x4a3   :  { %v1928_v15 = vpop.f32.mrf.mxu0  ;;  %v1974_v16 = vadd.f32 0.5, %v1973_v53 }
 0x4a4   :  { %v1929_v42 = vadd.f32 %v1928_v15, %v7004_v51  ;;  %v2037_v3 = vpop.f32.mrf.mxu3 }
 0x4a6   :  { %v4677_v57 = vpop.eup %4676  ;;  %v1942_v62 = vadd.f32 %v1941_v41, %v1929_v42  ;;  %v2013_v14 = vpop.f32.mrf.mxu1 }
 0x4a7   :  { %v1977_v32 = vmul.f32 0.5, %v4677_v57  ;;  %v2048_v14 = vrot.slane %v2037_v3, 6 }
 0x4a8   :  { %4678 = vtanh.f32 %v1942_v62  ;;  %v2061_v62 = vmul.f32 0.5, %v2054_v60 }
 0x4a9   :  { %v1954_v39 = vpop.f32.mrf.mxu2  ;;  %v1978_v61 = vadd.f32 0.5, %v1977_v32 }
 0x4aa   :  { %v1955_v56 = vadd.f32 %v1954_v39, %v5557_v4 }
 0x4ab   :  { %v1930_v13 = vpop.f32.mrf.mxu0  ;;  %v1984_v51 = vmul.f32 %v1978_v61, %v5902_v1  ;;  %v2056_v61 = vadd.f32 %v2048_v14, %v5914_v29 }
 0x4ac   :  { %v1968_v19 = vadd.f32 %v1967_v24, %v1955_v56  ;;  %v2039_v41 = vpop.f32.mrf.mxu3 }
 0x4ad   :  { %v2066_v41 = vmul.f32 0.5, %v2056_v61 }
 0x4ae   :  { %v4679_v34 = vpop.eup %4678  ;;  %v1980_v15 = vmul.f32 0.5, %v1968_v19 }
 0x4af   :  { %v1985_v42 = vmul.f32 %v4679_v34, %v1974_v16 }
 0x4b0   :  { %4680 = vtanh.f32 %v1980_v15 }
 0x4b1   :  { %v6029_v57 = vadd.f32 %v1985_v42, %v1984_v51  ;;  %v1956_v47 = vpop.f32.mrf.mxu2 }
 0x4b3   :  { %4682 = vtanh.f32 %v6029_v57  ;;  %v1998_v10 = vpop.f32.mrf.mxu0 }
 0x4b4   :  { %v2045_v32 = vrot.slane %v1998_v10, 6  ;;  %4684 = vtanh.f32 %v2061_v62 }
 0x4b6   :  { %v4681_v24 = vpop.eup %4680  ;;  %v2053_v53 = vadd.f32 %v2045_v32, %v5907_v59 }
 0x4b7   :  { %v1982_v22 = vmul.f32 0.5, %v4681_v24 }
 0x4b8   :  { %v2057_v39 = vmul.f32 0.5, %v2053_v53  ;;  %v2071_v53 = vrot.slane %v5928_v49, 6 }
 0x4b9   :  { %v4683_v56 = vpop.eup %4682  ;;  %v1983_v1 = vadd.f32 0.5, %v1982_v22  ;;  %v2024_v13 = vpop.f32.mrf.mxu2 }
 0x4ba   :  { %4686 = vtanh.f32 %v2057_v39  ;;  %v4685_v51 = vpop.eup %4684  ;;  %v2047_v16 = vrot.slane %v2024_v13, 6 }
 0x4bb   :  { %v1988_v19 = vmul.f32 %v4683_v56, %v1983_v1  ;;  %v2000_v60 = vpop.f32.mrf.mxu0  ;;  %v2063_v42 = vmul.f32 0.5, %v4685_v51 }
 0x4bc   :  { %v2055_v15 = vadd.f32 %v2047_v16, %v5920_v55 }
 0x4bd   :  { %v2079_v34 = vrot.slane %v1988_v19, 6  ;;  %v2064_v32 = vadd.f32 0.5, %v2063_v42  ;;  %v7007_v42 = vld [vmem:[#allocation38_spill] sm:$0xff] }
 0x4be   :  { %4688 = vtanh.f32 %v2055_v15  ;;  %v7006_v15 = vld [vmem:[#allocation57_spill] sm:$0xff] }
 0x4bf   :  { %v2082_v3 = vpack.c.bf16 %v2079_v34, %v2079_v34  ;;  %4690 = vtanh.f32 %v2066_v41  ;;  %v2073_v39 = vmul.f32 %v2071_v53, %v2064_v32  ;;  %v7005_v34 = vld [vmem:[#allocation56_spill] sm:$0xff]  ;;  %v7016_v53 = vld [vmem:[#allocation61_spill] sm:$0xff] }
 0x4c0   :  { %v4687_v62 = vpop.eup %4686  ;;  %v7008_v41 = vld [vmem:[#allocation40_spill] sm:$0xff] }
 0x4c1   :  { %v2086_v47 = vrot.slane %v2082_v3, 1  ;;  %v2059_v10 = vmul.f32 0.5, %v4687_v62  ;;  %v2026_v24 = vpop.f32.mrf.mxu2  ;;  %v7009_v3 = vld [vmem:[#allocation58_spill] sm:$0xff]  ;;  %v7010_v62 = vld [vmem:[#allocation59_spill] sm:$0xff]  ;;  %v7013_v32 = vld [vmem:[#allocation48_spill] sm:$0xff] }
 0x4c2   :  { %v7014_v24 = vld [vmem:[#allocation51_spill] sm:$0xff] }
 0x4c3   :  { %v2060_v14 = vadd.f32 0.5, %v2059_v10  ;;  %2110 = vmatmul.bf16.vlgmr.msrb.gmra.mxu1 %v2086_v47  ;;  %2136 = vmatmul.bf16.vlgmr.msrb.gmra.mxu3 %v2086_v47  ;;  %v7012_v10 = vld [vmem:[#allocation44_spill] sm:$0xff] }
 0x4c4   :  { %2224 = vmatpush.bf16.msrb.mxu1 %v6742_v23  ;;  %2250 = vmatpush.bf16.msrb.mxu3 %v6743_v45  ;;  %v4689_v22 = vpop.eup %4688 }
 0x4c5   :  { %v2074_v56 = vmul.f32 %v4689_v22, %v2060_v14  ;;  %v4691_v1 = vpop.eup %4690  ;;  %v7015_v14 = vld [vmem:[#allocation60_spill] sm:$0xff] }
 0x4c6   :  { %v2068_v13 = vmul.f32 0.5, %v4691_v1  ;;  %v7017_v22 = vld [vmem:[#allocation52_spill] sm:$0xff]  ;;  %v7020_v1 = vld [vmem:[#allocation63_spill] sm:$0xff] }
 0x4c7   :  { %v6038_v61 = vadd.f32 %v2074_v56, %v2073_v39  ;;  %v7018_v39 = vld [vmem:[#allocation53_spill] sm:$0xff]  ;;  %v7019_v56 = vld [vmem:[#allocation62_spill] sm:$0xff] }
 0x4c8   :  { %2225 = vmatpush.bf16.msrb.mxu1 %v6744_v26  ;;  %2251 = vmatpush.bf16.msrb.mxu3 %v6745_v63  ;;  %v2069_v49 = vadd.f32 0.5, %v2068_v13  ;;  %v7021_v13 = vld [vmem:[#allocation54_spill] sm:$0xff] }
 0x4c9   :  { %4692 = vtanh.f32 %v6038_v61 }
 0x4cc   :  { %2226 = vmatpush.bf16.msrb.mxu1 %v6746_v9  ;;  %2252 = vmatpush.bf16.msrb.mxu3 %v6747_v31 }
 0x4cf   :  { %v4693_v51 = vpop.eup %4692 }
 0x4d0   :  { %2227 = vmatpush.bf16.msrb.mxu1 %v6748_v7  ;;  %2253 = vmatpush.bf16.msrb.mxu3 %v6749_v58  ;;  %v2077_v19 = vmul.f32 %v4693_v51, %v2069_v49  ;;  %v7022_v49 = vld [vmem:[#allocation55_spill] sm:$0xff]  ;;  %v7023_v51 = vld [vmem:[#allocation64_spill] sm:$0xff] }
 0x4d2   :  { %v2081_v16 = vpack.c.bf16 %v2077_v19, %v2077_v19  ;;  %v7024_v19 = vld [vmem:[#allocation65_spill] sm:$0xff] }
 0x4d3   :  { %2162 = vmatmul.bf16.vlgmr.msra.gmra.mxu1 %v2086_v47  ;;  %2188 = vmatmul.bf16.vlgmr.msra.gmra.mxu3 %v2086_v47  ;;  %v7011_v47 = vld [vmem:[#allocation42_spill] sm:$0xff] }
 0x4d4   :  { %2228 = vmatpush.bf16.msrb.mxu1 %v6750_v11  ;;  %2254 = vmatpush.bf16.msrb.mxu3 %v6751_v18  ;;  %v2085_v60 = vrot.slane %v2081_v16, 1  ;;  %v7025_v16 = vld [vmem:[#allocation66_spill] sm:$0xff] }
 0x4d6   :  { %2097 = vmatmul.bf16.vlgmr.msrb.gmra.mxu0 %v2085_v60  ;;  %2123 = vmatmul.bf16.vlgmr.msrb.gmra.mxu2 %v2085_v60 }
 0x4d7   :  { %2211 = vmatpush.bf16.msrb.mxu0 %v5115_v8  ;;  %2237 = vmatpush.bf16.msrb.mxu2 %v5119_v12 }
 0x4d8   :  { %2229 = vmatpush.bf16.msrb.mxu1 %v6752_v48  ;;  %2255 = vmatpush.bf16.msrb.mxu3 %v6753_v38 }
 0x4db   :  { %2212 = vmatpush.bf16.msrb.mxu0 %v5128_v21  ;;  %2238 = vmatpush.bf16.msrb.mxu2 %v5134_v25 }
 0x4dc   :  { %2230 = vmatpush.bf16.msrb.mxu1 %v6754_v30  ;;  %2256 = vmatpush.bf16.msrb.mxu3 %v6755_v27 }
 0x4df   :  { %2213 = vmatpush.bf16.msrb.mxu0 %v5140_v33  ;;  %2239 = vmatpush.bf16.msrb.mxu2 %v5146_v37 }
 0x4e0   :  { %2231 = vmatpush.bf16.msrb.mxu1 %v6756_v54  ;;  %2257 = vmatpush.bf16.msrb.mxu3 %v6757_v5 }
 0x4e3   :  { %2214 = vmatpush.bf16.msrb.mxu0 %v5155_v46  ;;  %2232 = vmatmul.bf16.vlgmr.msrb.gmra.mxu1 %v2085_v60 }
 0x4e4   :  { %2324 = vmatpush.bf16.msra.mxu1 %v6758_v52  ;;  %2350 = vmatpush.bf16.msra.mxu3 %v6759_v17 }
 0x4e5   :  { %2240 = vmatpush.bf16.msrb.mxu2 %v5161_v50  ;;  %2258 = vmatmul.bf16.vlgmr.msrb.gmra.mxu3 %v2085_v60 }
 0x4e6   :  { %2149 = vmatmul.bf16.vlgmr.msra.gmra.mxu0 %v2085_v60  ;;  %2175 = vmatmul.bf16.vlgmr.msra.gmra.mxu2 %v2085_v60 }
 0x4e7   :  { %2215 = vmatpush.bf16.msrb.mxu0 %v6807_v43 }
 0x4e8   :  { %2325 = vmatpush.bf16.msra.mxu1 %v6760_v28  ;;  %2351 = vmatpush.bf16.msra.mxu3 %v6806_v6 }
 0x4e9   :  { %2241 = vmatpush.bf16.msrb.mxu2 %v6712_v20 }
 0x4eb   :  { %2216 = vmatpush.bf16.msrb.mxu0 %v6715_v2 }
 0x4ec   :  { %2326 = vmatpush.bf16.msra.mxu1 %v5239_v35  ;;  %2352 = vmatpush.bf16.msra.mxu3 %v5241_v36 }
 0x4ed   :  { %2242 = vmatpush.bf16.msrb.mxu2 %v6716_v40 }
 0x4ef   :  { %2217 = vmatpush.bf16.msrb.mxu0 %v7007_v42  ;;  %v7068_v42 = vld [vmem:[#allocation36_spill] sm:$0xff] }
 0x4f0   :  { %2327 = vmatpush.bf16.msra.mxu1 %v7005_v34  ;;  %2353 = vmatpush.bf16.msra.mxu3 %v7006_v15 }
 0x4f1   :  { %2243 = vmatpush.bf16.msrb.mxu2 %v7008_v41 }
 0x4f3   :  { %2218 = vmatpush.bf16.msrb.mxu0 %v7011_v47 }
 0x4f4   :  { %2328 = vmatpush.bf16.msra.mxu1 %v7009_v3  ;;  %2354 = vmatpush.bf16.msra.mxu3 %v7010_v62 }
 0x4f5   :  { %2244 = vmatpush.bf16.msrb.mxu2 %v7012_v10 }
 0x4f6   :  { %2219 = vmatmul.bf16.vlgmr.msrb.gmra.mxu0 %v2085_v60 }
 0x4f7   :  { %2311 = vmatpush.bf16.msra.mxu0 %v7013_v32  ;;  %v7067_v32 = vld [vmem:[#allocation32_spill] sm:$0xff] }
 0x4f8   :  { %2329 = vmatpush.bf16.msra.mxu1 %v7015_v14  ;;  %2355 = vmatpush.bf16.msra.mxu3 %v7016_v53  ;;  %v7026_v53 = vld [vmem:[#allocation67_spill] sm:$0xff] }
 0x4f9   :  { %2337 = vmatpush.bf16.msra.mxu2 %v7014_v24 }
 0x4fa   :  { %2245 = vmatmul.bf16.vlgmr.msrb.gmra.mxu2 %v2085_v60  ;;  %v7027_v60 = vld [vmem:[#allocation74_spill] sm:$0xff] }
 0x4fb   :  { %2312 = vmatpush.bf16.msra.mxu0 %v7017_v22  ;;  %v7028_v22 = vld [vmem:[#allocation75_spill] sm:$0xff] }
 0x4fc   :  { %2330 = vmatpush.bf16.msra.mxu1 %v7019_v56  ;;  %2356 = vmatpush.bf16.msra.mxu3 %v7020_v1  ;;  %v7030_v56 = vld [vmem:[#allocation69_spill] sm:$0xff]  ;;  %v7031_v1 = vld [vmem:[#allocation78_spill] sm:$0xff] }
 0x4fd   :  { %2338 = vmatpush.bf16.msra.mxu2 %v7018_v39  ;;  %v7029_v39 = vld [vmem:[#allocation68_spill] sm:$0xff] }
 0x4ff   :  { %2313 = vmatpush.bf16.msra.mxu0 %v7021_v13  ;;  %v7032_v13 = vld [vmem:[#allocation79_spill] sm:$0xff] }
 0x500   :  { %2331 = vmatpush.bf16.msra.mxu1 %v7023_v51  ;;  %2357 = vmatpush.bf16.msra.mxu3 %v7024_v19  ;;  %v7034_v51 = vld [vmem:[#allocation71_spill] sm:$0xff]  ;;  %v7035_v19 = vld [vmem:[#allocation82_spill] sm:$0xff] }
 0x501   :  { %2339 = vmatpush.bf16.msra.mxu2 %v7022_v49  ;;  %v7033_v49 = vld [vmem:[#allocation70_spill] sm:$0xff] }
 0x503   :  { %2314 = vmatpush.bf16.msra.mxu0 %v7027_v60  ;;  %v7038_v60 = vld [vmem:[#allocation73_spill] sm:$0xff] }
 0x504   :  { %2376 = vmatpush.bf16.msrb.mxu1 %v7025_v16  ;;  %2402 = vmatpush.bf16.msrb.mxu3 %v7026_v53  ;;  %v7036_v16 = vld [vmem:[#allocation83_spill] sm:$0xff]  ;;  %v7037_v53 = vld [vmem:[#allocation72_spill] sm:$0xff] }
 0x505   :  { %2340 = vmatpush.bf16.msra.mxu2 %v7028_v22  ;;  %v7039_v22 = vld [vmem:[#allocation86_spill] sm:$0xff] }
 0x507   :  { %2315 = vmatpush.bf16.msra.mxu0 %v7031_v1  ;;  %v7042_v1 = vld [vmem:[#allocation77_spill] sm:$0xff] }
 0x508   :  { %2377 = vmatpush.bf16.msrb.mxu1 %v7029_v39  ;;  %2403 = vmatpush.bf16.msrb.mxu3 %v7030_v56  ;;  %v7040_v39 = vld [vmem:[#allocation87_spill] sm:$0xff]  ;;  %v7041_v56 = vld [vmem:[#allocation76_spill] sm:$0xff] }
 0x509   :  { %2341 = vmatpush.bf16.msra.mxu2 %v7032_v13  ;;  %v7043_v13 = vld [vmem:[#allocation90_spill] sm:$0xff] }
 0x50b   :  { %2316 = vmatpush.bf16.msra.mxu0 %v7035_v19  ;;  %v7046_v19 = vld [vmem:[#allocation93_spill] sm:$0xff] }
 0x50c   :  { %2378 = vmatpush.bf16.msrb.mxu1 %v7033_v49  ;;  %2404 = vmatpush.bf16.msrb.mxu3 %v7034_v51  ;;  %v7044_v49 = vld [vmem:[#allocation91_spill] sm:$0xff]  ;;  %v7045_v51 = vld [vmem:[#allocation92_spill] sm:$0xff] }
 0x50d   :  { %2342 = vmatpush.bf16.msra.mxu2 %v7036_v16  ;;  %v7047_v16 = vld [vmem:[#allocation80_spill] sm:$0xff] }
 0x50f   :  { %2317 = vmatpush.bf16.msra.mxu0 %v7039_v22  ;;  %v7050_v22 = vld [vmem:[#allocation95_spill] sm:$0xff] }
 0x510   :  { %2379 = vmatpush.bf16.msrb.mxu1 %v7037_v53  ;;  %2405 = vmatpush.bf16.msrb.mxu3 %v7038_v60  ;;  %v7048_v53 = vld [vmem:[#allocation81_spill] sm:$0xff]  ;;  %v7049_v60 = vld [vmem:[#allocation94_spill] sm:$0xff] }
 0x511   :  { %2343 = vmatpush.bf16.msra.mxu2 %v7040_v39  ;;  %v7051_v39 = vld [vmem:[#allocation84_spill] sm:$0xff] }
 0x513   :  { %2318 = vmatpush.bf16.msra.mxu0 %v7043_v13  ;;  %v7054_v13 = vld [vmem:[#allocation97_spill] sm:$0xff] }
 0x514   :  { %2380 = vmatpush.bf16.msrb.mxu1 %v7041_v56  ;;  %2406 = vmatpush.bf16.msrb.mxu3 %v7042_v1  ;;  %v7052_v56 = vld [vmem:[#allocation85_spill] sm:$0xff]  ;;  %v7053_v1 = vld [vmem:[#allocation96_spill] sm:$0xff] }
 0x515   :  { %2344 = vmatpush.bf16.msra.mxu2 %v7044_v49  ;;  %v7055_v49 = vld [vmem:[#allocation88_spill] sm:$0xff] }
 0x517   :  { %2363 = vmatpush.bf16.msrb.mxu0 %v7045_v51  ;;  %v7056_v51 = vld [vmem:[#allocation89_spill] sm:$0xff] }
 0x518   :  { %2381 = vmatpush.bf16.msrb.mxu1 %v7047_v16  ;;  %2407 = vmatpush.bf16.msrb.mxu3 %v7048_v53  ;;  %v7058_v16 = vld [vmem:[#allocation99_spill] sm:$0xff]  ;;  %v7059_v53 = vld [vmem:[#allocation100_spill] sm:$0xff] }
 0x519   :  { %2389 = vmatpush.bf16.msrb.mxu2 %v7046_v19  ;;  %v7057_v19 = vld [vmem:[#allocation98_spill] sm:$0xff] }
 0x51b   :  { %2364 = vmatpush.bf16.msrb.mxu0 %v7049_v60  ;;  %v7060_v60 = vld [vmem:[#allocation101_spill] sm:$0xff] }
 0x51c   :  { %2382 = vmatpush.bf16.msrb.mxu1 %v7051_v39  ;;  %2408 = vmatpush.bf16.msrb.mxu3 %v7052_v56  ;;  %v7062_v39 = vld [vmem:[#allocation105_spill] sm:$0xff]  ;;  %v7063_v56 = vld [vmem:[#allocation107_spill] sm:$0xff] }
 0x51d   :  { %2390 = vmatpush.bf16.msrb.mxu2 %v7050_v22  ;;  %v7061_v22 = vld [vmem:[#allocation104_spill] sm:$0xff] }
 0x51f   :  { %2365 = vmatpush.bf16.msrb.mxu0 %v7053_v1  ;;  %v7064_v1 = vld [vmem:[#allocation108_spill] sm:$0xff] }
 0x520   :  { %2383 = vmatpush.bf16.msrb.mxu1 %v7055_v49  ;;  %2409 = vmatpush.bf16.msrb.mxu3 %v7056_v51  ;;  %v7066_v49 = vld [vmem:[#allocation112_spill] sm:$0xff] }
 0x521   :  { %2391 = vmatpush.bf16.msrb.mxu2 %v7054_v13  ;;  %v7065_v13 = vld [vmem:[#allocation111_spill] sm:$0xff] }
 0x523   :  { %2366 = vmatpush.bf16.msrb.mxu0 %v7057_v19 }
 0x525   :  { %2392 = vmatpush.bf16.msrb.mxu2 %v7058_v16 }
 0x527   :  { %2367 = vmatpush.bf16.msrb.mxu0 %v7059_v53 }
 0x529   :  { %2393 = vmatpush.bf16.msrb.mxu2 %v7060_v60 }
 0x52b   :  { %2368 = vmatpush.bf16.msrb.mxu0 %v7061_v22 }
 0x52d   :  { %2394 = vmatpush.bf16.msrb.mxu2 %v7062_v39 }
 0x52f   :  { %2369 = vmatpush.bf16.msrb.mxu0 %v7063_v56 }
 0x531   :  { %2395 = vmatpush.bf16.msrb.mxu2 %v7064_v1 }
 0x533   :  { %2370 = vmatpush.bf16.msrb.mxu0 %v7065_v13 }
 0x535   :  { %2396 = vmatpush.bf16.msrb.mxu2 %v7066_v49 }
 0x540   :  { %v2111_v51 = vpop.f32.mrf.mxu1 }
 0x546   :  { %v2137_v19 = vpop.f32.mrf.mxu3 }
 0x548   :  { %v2113_v14 = vpop.f32.mrf.mxu1 }
 0x54e   :  { %v2139_v16 = vpop.f32.mrf.mxu3 }
 0x550   :  { %v2163_v24 = vpop.f32.mrf.mxu1 }
 0x553   :  { %v2098_v53 = vpop.f32.mrf.mxu0 }
 0x554   :  { %v2099_v60 = vadd.f32 %v2098_v53, %v7067_v32 }
 0x556   :  { %v2189_v10 = vpop.f32.mrf.mxu3  ;;  %v2112_v22 = vadd.f32 %v2111_v51, %v2099_v60 }
 0x558   :  { %v2165_v47 = vpop.f32.mrf.mxu1  ;;  %v2193_v62 = vmul.f32 0.5, %v2112_v22 }
 0x559   :  { %v2124_v39 = vpop.f32.mrf.mxu2 }
 0x55a   :  { %v2125_v56 = vadd.f32 %v2124_v39, %v7003_v0  ;;  %4694 = vtanh.f32 %v2193_v62 }
 0x55b   :  { %v2100_v1 = vpop.f32.mrf.mxu0 }
 0x55c   :  { %v2138_v3 = vadd.f32 %v2137_v19, %v2125_v56 }
 0x55e   :  { %v2191_v13 = vpop.f32.mrf.mxu3  ;;  %v2197_v41 = vmul.f32 0.5, %v2138_v3 }
 0x560   :  { %4696 = vtanh.f32 %v2197_v41  ;;  %v2233_v49 = vpop.f32.mrf.mxu1  ;;  %v4695_v34 = vpop.eup %4694 }
 0x561   :  { %v2126_v14 = vpop.f32.mrf.mxu2  ;;  %v2195_v39 = vmul.f32 0.5, %v4695_v34  ;;  %v2268_v22 = vrot.slane %v2233_v49, 4 }
 0x563   :  { %v2150_v16 = vpop.f32.mrf.mxu0  ;;  %v2196_v13 = vadd.f32 0.5, %v2195_v39  ;;  %v2276_v19 = vadd.f32 %v2268_v22, %v5897_v44 }
 0x564   :  { %v2151_v15 = vadd.f32 %v2150_v16, %v7068_v42 }
 0x566   :  { %v4697_v53 = vpop.eup %4696  ;;  %v2164_v32 = vadd.f32 %v2163_v24, %v2151_v15 }
 0x567   :  { %v2199_v51 = vmul.f32 0.5, %v4697_v53 }
 0x568   :  { %v2259_v47 = vpop.f32.mrf.mxu3  ;;  %4698 = vtanh.f32 %v2164_v32  ;;  %v2235_v60 = vpop.f32.mrf.mxu1  ;;  %v2283_v32 = vmul.f32 0.5, %v2276_v19 }
 0x569   :  { %v2176_v1 = vpop.f32.mrf.mxu2  ;;  %v2200_v3 = vadd.f32 0.5, %v2199_v51  ;;  %v2270_v60 = vrot.slane %v2259_v47, 4 }
 0x56a   :  { %v2177_v56 = vadd.f32 %v2176_v1, %v5557_v4 }
 0x56b   :  { %v2152_v62 = vpop.f32.mrf.mxu0  ;;  %v2206_v42 = vmul.f32 %v2200_v3, %v6029_v57  ;;  %v2278_v3 = vadd.f32 %v2270_v60, %v5914_v29 }
 0x56c   :  { %v2190_v41 = vadd.f32 %v2189_v10, %v2177_v56 }
 0x56e   :  { %v4699_v14 = vpop.eup %4698  ;;  %v2202_v16 = vmul.f32 0.5, %v2190_v41 }
 0x56f   :  { %v2207_v15 = vmul.f32 %v4699_v14, %v2196_v13 }
 0x570   :  { %v2261_v24 = vpop.f32.mrf.mxu3  ;;  %4700 = vtanh.f32 %v2202_v16 }
 0x571   :  { %v6141_v53 = vadd.f32 %v2207_v15, %v2206_v42  ;;  %v2178_v34 = vpop.f32.mrf.mxu2  ;;  %v2288_v24 = vmul.f32 0.5, %v2278_v3 }
 0x573   :  { %4702 = vtanh.f32 %v6141_v53  ;;  %v2220_v49 = vpop.f32.mrf.mxu0 }
 0x574   :  { %v2267_v51 = vrot.slane %v2220_v49, 4  ;;  %4704 = vtanh.f32 %v2283_v32 }
 0x576   :  { %v4701_v10 = vpop.eup %4700  ;;  %v2275_v39 = vadd.f32 %v2267_v51, %v5907_v59 }
 0x577   :  { %v2204_v22 = vmul.f32 0.5, %v4701_v10 }
 0x578   :  { %v2279_v1 = vmul.f32 0.5, %v2275_v39  ;;  %v2293_v39 = vrot.slane %v6038_v61, 6 }
 0x579   :  { %v4703_v56 = vpop.eup %4702  ;;  %v2205_v57 = vadd.f32 0.5, %v2204_v22 }
 0x57a   :  { %4706 = vtanh.f32 %v2279_v1  ;;  %v4705_v42 = vpop.eup %4704 }
 0x57b   :  { %v2210_v41 = vmul.f32 %v4703_v56, %v2205_v57  ;;  %v2222_v19 = vpop.f32.mrf.mxu0  ;;  %v2285_v15 = vmul.f32 0.5, %v4705_v42 }
 0x57c   :  { %v7102_v19 = vld [vmem:[#allocation73_spill] sm:$0xff] }
 0x57d   :  { %v2246_v62 = vpop.f32.mrf.mxu2  ;;  %v2301_v14 = vrot.slane %v2210_v41, 4  ;;  %v2286_v51 = vadd.f32 0.5, %v2285_v15  ;;  %v7100_v41 = vld [vmem:[#allocation83_spill] sm:$0xff]  ;;  %v7105_v15 = vld [vmem:[#allocation76_spill] sm:$0xff] }
 0x57e   :  { %v2269_v13 = vrot.slane %v2246_v62, 4 }
 0x57f   :  { %v2304_v47 = vpack.c.bf16 %v2301_v14, %v2301_v14  ;;  %v2295_v1 = vmul.f32 %v2293_v39, %v2286_v51  ;;  %v7103_v14 = vld [vmem:[#allocation86_spill] sm:$0xff]  ;;  %v7111_v51 = vld [vmem:[#allocation80_spill] sm:$0xff]  ;;  %v7114_v39 = vld [vmem:[#allocation95_spill] sm:$0xff] }
 0x580   :  { %v2277_v16 = vadd.f32 %v2269_v13, %v5920_v55  ;;  %v4707_v32 = vpop.eup %4706  ;;  %v7101_v13 = vld [vmem:[#allocation72_spill] sm:$0xff] }
 0x581   :  { %v2308_v34 = vrot.slane %v2304_v47, 2  ;;  %v2281_v49 = vmul.f32 0.5, %v4707_v32  ;;  %v7107_v47 = vld [vmem:[#allocation90_spill] sm:$0xff]  ;;  %v7108_v32 = vld [vmem:[#allocation91_spill] sm:$0xff] }
 0x582   :  { %4708 = vtanh.f32 %v2277_v16  ;;  %v7104_v16 = vld [vmem:[#allocation87_spill] sm:$0xff] }
 0x583   :  { %4710 = vtanh.f32 %v2288_v24  ;;  %v2282_v60 = vadd.f32 0.5, %v2281_v49  ;;  %2332 = vmatmul.bf16.vlgmr.msra.gmra.mxu1 %v2308_v34  ;;  %2358 = vmatmul.bf16.vlgmr.msra.gmra.mxu3 %v2308_v34  ;;  %v7106_v24 = vld [vmem:[#allocation77_spill] sm:$0xff] }
 0x584   :  { %2446 = vmatpush.bf16.msra.mxu1 %v6742_v23  ;;  %2472 = vmatpush.bf16.msra.mxu3 %v6743_v45  ;;  %v7110_v49 = vld [vmem:[#allocation93_spill] sm:$0xff] }
 0x585   :  { %v2248_v10 = vpop.f32.mrf.mxu2 }
 0x586   :  { %v7112_v10 = vld [vmem:[#allocation81_spill] sm:$0xff] }
 0x588   :  { %v4709_v22 = vpop.eup %4708  ;;  %2447 = vmatpush.bf16.msra.mxu1 %v6744_v26  ;;  %2473 = vmatpush.bf16.msra.mxu3 %v6745_v63  ;;  %v7082_v63 = vld [vmem:[#allocation53_spill] sm:$0xff] }
 0x589   :  { %v2296_v56 = vmul.f32 %v4709_v22, %v2282_v60  ;;  %v4711_v57 = vpop.eup %4710  ;;  %v7113_v60 = vld [vmem:[#allocation94_spill] sm:$0xff]  ;;  %v7115_v22 = vld [vmem:[#allocation84_spill] sm:$0xff] }
 0x58a   :  { %v2290_v62 = vmul.f32 0.5, %v4711_v57  ;;  %v7118_v57 = vld [vmem:[#allocation97_spill] sm:$0xff] }
 0x58b   :  { %v6150_v3 = vadd.f32 %v2296_v56, %v2295_v1  ;;  %v7116_v1 = vld [vmem:[#allocation85_spill] sm:$0xff]  ;;  %v7117_v56 = vld [vmem:[#allocation96_spill] sm:$0xff] }
 0x58c   :  { %2448 = vmatpush.bf16.msra.mxu1 %v6746_v9  ;;  %2474 = vmatpush.bf16.msra.mxu3 %v6747_v31  ;;  %v2291_v23 = vadd.f32 0.5, %v2290_v62  ;;  %v7083_v9 = vld [vmem:[#allocation62_spill] sm:$0xff]  ;;  %v7084_v31 = vld [vmem:[#allocation63_spill] sm:$0xff]  ;;  %v7119_v62 = vld [vmem:[#allocation88_spill] sm:$0xff] }
 0x58d   :  { %4712 = vtanh.f32 %v6150_v3 }
 0x590   :  { %2449 = vmatpush.bf16.msra.mxu1 %v6748_v7  ;;  %2475 = vmatpush.bf16.msra.mxu3 %v6749_v58  ;;  %v7085_v7 = vld [vmem:[#allocation54_spill] sm:$0xff]  ;;  %v7086_v58 = vld [vmem:[#allocation55_spill] sm:$0xff] }
 0x593   :  { %v4713_v61 = vpop.eup %4712  ;;  %2384 = vmatmul.bf16.vlgmr.msrb.gmra.mxu1 %v2308_v34  ;;  %2410 = vmatmul.bf16.vlgmr.msrb.gmra.mxu3 %v2308_v34  ;;  %v7109_v34 = vld [vmem:[#allocation92_spill] sm:$0xff] }
 0x594   :  { %v2299_v45 = vmul.f32 %v4713_v61, %v2291_v23  ;;  %2450 = vmatpush.bf16.msra.mxu1 %v6750_v11  ;;  %2476 = vmatpush.bf16.msra.mxu3 %v6751_v18  ;;  %v7087_v11 = vld [vmem:[#allocation64_spill] sm:$0xff]  ;;  %v7088_v18 = vld [vmem:[#allocation65_spill] sm:$0xff]  ;;  %v7121_v61 = vld [vmem:[#allocation98_spill] sm:$0xff] }
 0x595   :  { %v7120_v23 = vld [vmem:[#allocation89_spill] sm:$0xff] }
 0x596   :  { %v2303_v42 = vpack.c.bf16 %v2299_v45, %v2299_v45  ;;  %v7122_v45 = vld [vmem:[#allocation99_spill] sm:$0xff] }
 0x598   :  { %v2307_v26 = vrot.slane %v2303_v42, 2  ;;  %2451 = vmatpush.bf16.msra.mxu1 %v6752_v48  ;;  %2477 = vmatpush.bf16.msra.mxu3 %v6753_v38  ;;  %v7089_v48 = vld [vmem:[#allocation66_spill] sm:$0xff]  ;;  %v7090_v38 = vld [vmem:[#allocation67_spill] sm:$0xff]  ;;  %v7123_v42 = vld [vmem:[#allocation100_spill] sm:$0xff] }
 0x59a   :  { %2319 = vmatmul.bf16.vlgmr.msra.gmra.mxu0 %v2307_v26  ;;  %2345 = vmatmul.bf16.vlgmr.msra.gmra.mxu2 %v2307_v26 }
 0x59b   :  { %2433 = vmatpush.bf16.msra.mxu0 %v5115_v8  ;;  %2459 = vmatpush.bf16.msra.mxu2 %v5119_v12  ;;  %v7069_v8 = vld [vmem:[#allocation56_spill] sm:$0xff]  ;;  %v7070_v12 = vld [vmem:[#allocation57_spill] sm:$0xff] }
 0x59c   :  { %2452 = vmatpush.bf16.msra.mxu1 %v6754_v30  ;;  %2478 = vmatpush.bf16.msra.mxu3 %v6755_v27  ;;  %v7091_v30 = vld [vmem:[#allocation74_spill] sm:$0xff]  ;;  %v7092_v27 = vld [vmem:[#allocation75_spill] sm:$0xff] }
 0x59f   :  { %2434 = vmatpush.bf16.msra.mxu0 %v5128_v21  ;;  %2460 = vmatpush.bf16.msra.mxu2 %v5134_v25  ;;  %v7071_v21 = vld [vmem:[#allocation38_spill] sm:$0xff]  ;;  %v7072_v25 = vld [vmem:[#allocation40_spill] sm:$0xff] }
 0x5a0   :  { %2453 = vmatpush.bf16.msra.mxu1 %v6756_v54  ;;  %2479 = vmatpush.bf16.msra.mxu3 %v6757_v5  ;;  %v7093_v54 = vld [vmem:[#allocation68_spill] sm:$0xff]  ;;  %v7094_v5 = vld [vmem:[#allocation69_spill] sm:$0xff] }
 0x5a3   :  { %2435 = vmatpush.bf16.msra.mxu0 %v5140_v33  ;;  %2461 = vmatpush.bf16.msra.mxu2 %v5146_v37  ;;  %v7073_v33 = vld [vmem:[#allocation58_spill] sm:$0xff]  ;;  %v7074_v37 = vld [vmem:[#allocation59_spill] sm:$0xff] }
 0x5a4   :  { %2546 = vmatpush.bf16.msrb.mxu1 %v6758_v52  ;;  %2572 = vmatpush.bf16.msrb.mxu3 %v6759_v17  ;;  %v7095_v52 = vld [vmem:[#allocation78_spill] sm:$0xff]  ;;  %v7096_v17 = vld [vmem:[#allocation79_spill] sm:$0xff] }
 0x5a5   :  { %2454 = vmatmul.bf16.vlgmr.msra.gmra.mxu1 %v2307_v26  ;;  %2480 = vmatmul.bf16.vlgmr.msra.gmra.mxu3 %v2307_v26 }
 0x5a7   :  { %2436 = vmatpush.bf16.msra.mxu0 %v5155_v46  ;;  %2462 = vmatpush.bf16.msra.mxu2 %v5161_v50  ;;  %v7075_v46 = vld [vmem:[#allocation42_spill] sm:$0xff]  ;;  %v7076_v50 = vld [vmem:[#allocation44_spill] sm:$0xff] }
 0x5a8   :  { %2547 = vmatpush.bf16.msrb.mxu1 %v6760_v28  ;;  %2573 = vmatpush.bf16.msrb.mxu3 %v6806_v6  ;;  %v7097_v28 = vld [vmem:[#allocation70_spill] sm:$0xff]  ;;  %v7098_v6 = vld [vmem:[#allocation71_spill] sm:$0xff] }
 0x5aa   :  { %2371 = vmatmul.bf16.vlgmr.msrb.gmra.mxu0 %v2307_v26  ;;  %2397 = vmatmul.bf16.vlgmr.msrb.gmra.mxu2 %v2307_v26 }
 0x5ab   :  { %2437 = vmatpush.bf16.msra.mxu0 %v6807_v43  ;;  %2463 = vmatpush.bf16.msra.mxu2 %v6712_v20  ;;  %v7079_v20 = vld [vmem:[#allocation60_spill] sm:$0xff]  ;;  %v7099_v43 = vld [vmem:[#allocation82_spill] sm:$0xff] }
 0x5ac   :  { %2548 = vmatpush.bf16.msrb.mxu1 %v5239_v35  ;;  %2574 = vmatpush.bf16.msrb.mxu3 %v5241_v36  ;;  %v7077_v35 = vld [vmem:[#allocation48_spill] sm:$0xff]  ;;  %v7078_v36 = vld [vmem:[#allocation51_spill] sm:$0xff] }
 0x5af   :  { %2438 = vmatpush.bf16.msra.mxu0 %v6715_v2  ;;  %2464 = vmatpush.bf16.msra.mxu2 %v6716_v40  ;;  %v7080_v2 = vld [vmem:[#allocation61_spill] sm:$0xff]  ;;  %v7081_v40 = vld [vmem:[#allocation52_spill] sm:$0xff] }
 0x5b0   :  { %2549 = vmatpush.bf16.msrb.mxu1 %v7069_v8  ;;  %2575 = vmatpush.bf16.msrb.mxu3 %v7070_v12  ;;  %v7125_v8 = vld [vmem:[#allocation104_spill] sm:$0xff]  ;;  %v7126_v12 = vld [vmem:[#allocation105_spill] sm:$0xff] }
 0x5b3   :  { %2439 = vmatpush.bf16.msra.mxu0 %v7071_v21  ;;  %2465 = vmatpush.bf16.msra.mxu2 %v7072_v25  ;;  %v7127_v21 = vld [vmem:[#allocation107_spill] sm:$0xff]  ;;  %v7128_v25 = vld [vmem:[#allocation108_spill] sm:$0xff] }
 0x5b4   :  { %2550 = vmatpush.bf16.msrb.mxu1 %v7073_v33  ;;  %2576 = vmatpush.bf16.msrb.mxu3 %v7074_v37  ;;  %v7129_v33 = vld [vmem:[#allocation111_spill] sm:$0xff]  ;;  %v7130_v37 = vld [vmem:[#allocation112_spill] sm:$0xff] }
 0x5b7   :  { %2440 = vmatpush.bf16.msra.mxu0 %v7075_v46  ;;  %2466 = vmatpush.bf16.msra.mxu2 %v7076_v50 }
 0x5b8   :  { %2551 = vmatpush.bf16.msrb.mxu1 %v7079_v20  ;;  %2577 = vmatpush.bf16.msrb.mxu3 %v7080_v2 }
 0x5ba   :  { %2441 = vmatmul.bf16.vlgmr.msra.gmra.mxu0 %v2307_v26  ;;  %2467 = vmatmul.bf16.vlgmr.msra.gmra.mxu2 %v2307_v26  ;;  %v7124_v26 = vld [vmem:[#allocation101_spill] sm:$0xff] }
 0x5bb   :  { %2533 = vmatpush.bf16.msrb.mxu0 %v7077_v35  ;;  %2559 = vmatpush.bf16.msrb.mxu2 %v7078_v36 }
 0x5bc   :  { %2552 = vmatpush.bf16.msrb.mxu1 %v7083_v9  ;;  %2578 = vmatpush.bf16.msrb.mxu3 %v7084_v31 }
 0x5bf   :  { %2534 = vmatpush.bf16.msrb.mxu0 %v7081_v40  ;;  %2560 = vmatpush.bf16.msrb.mxu2 %v7082_v63  ;;  %v7131_v40 = vld [vmem:[#allocation32_spill] sm:$0xff] }
 0x5c0   :  { %2553 = vmatpush.bf16.msrb.mxu1 %v7087_v11  ;;  %2579 = vmatpush.bf16.msrb.mxu3 %v7088_v18 }
 0x5c3   :  { %2535 = vmatpush.bf16.msrb.mxu0 %v7085_v7  ;;  %2561 = vmatpush.bf16.msrb.mxu2 %v7086_v58 }
 0x5c4   :  { %2598 = vmatpush.bf16.msra.mxu1 %v7089_v48  ;;  %2624 = vmatpush.bf16.msra.mxu3 %v7090_v38 }
 0x5c7   :  { %2536 = vmatpush.bf16.msrb.mxu0 %v7091_v30  ;;  %2562 = vmatpush.bf16.msrb.mxu2 %v7092_v27 }
 0x5c8   :  { %2599 = vmatpush.bf16.msra.mxu1 %v7093_v54  ;;  %2625 = vmatpush.bf16.msra.mxu3 %v7094_v5 }
 0x5cb   :  { %2537 = vmatpush.bf16.msrb.mxu0 %v7095_v52  ;;  %2563 = vmatpush.bf16.msrb.mxu2 %v7096_v17  ;;  %v7132_v17 = vld [vmem:[#allocation36_spill] sm:$0xff] }
 0x5cc   :  { %2600 = vmatpush.bf16.msra.mxu1 %v7097_v28  ;;  %2626 = vmatpush.bf16.msra.mxu3 %v7098_v6 }
 0x5cf   :  { %2538 = vmatpush.bf16.msrb.mxu0 %v7099_v43  ;;  %2564 = vmatpush.bf16.msrb.mxu2 %v7100_v41 }
 0x5d0   :  { %2601 = vmatpush.bf16.msra.mxu1 %v7101_v13  ;;  %2627 = vmatpush.bf16.msra.mxu3 %v7102_v19 }
 0x5d3   :  { %2539 = vmatpush.bf16.msrb.mxu0 %v7103_v14  ;;  %2565 = vmatpush.bf16.msrb.mxu2 %v7104_v16 }
 0x5d4   :  { %2602 = vmatpush.bf16.msra.mxu1 %v7105_v15  ;;  %2628 = vmatpush.bf16.msra.mxu3 %v7106_v24 }
 0x5d7   :  { %2540 = vmatpush.bf16.msrb.mxu0 %v7107_v47  ;;  %2566 = vmatpush.bf16.msrb.mxu2 %v7108_v32 }
 0x5d8   :  { %2603 = vmatpush.bf16.msra.mxu1 %v7111_v51  ;;  %2629 = vmatpush.bf16.msra.mxu3 %v7112_v10 }
 0x5db   :  { %2585 = vmatpush.bf16.msra.mxu0 %v7109_v34  ;;  %2611 = vmatpush.bf16.msra.mxu2 %v7110_v49 }
 0x5dc   :  { %2604 = vmatpush.bf16.msra.mxu1 %v7115_v22  ;;  %2630 = vmatpush.bf16.msra.mxu3 %v7116_v1 }
 0x5df   :  { %2586 = vmatpush.bf16.msra.mxu0 %v7113_v60  ;;  %2612 = vmatpush.bf16.msra.mxu2 %v7114_v39 }
 0x5e0   :  { %2605 = vmatpush.bf16.msra.mxu1 %v7119_v62  ;;  %2631 = vmatpush.bf16.msra.mxu3 %v7120_v23 }
 0x5e3   :  { %2587 = vmatpush.bf16.msra.mxu0 %v7117_v56  ;;  %2613 = vmatpush.bf16.msra.mxu2 %v7118_v57 }
 0x5e7   :  { %2588 = vmatpush.bf16.msra.mxu0 %v7121_v61  ;;  %2614 = vmatpush.bf16.msra.mxu2 %v7122_v45 }
 0x5eb   :  { %2589 = vmatpush.bf16.msra.mxu0 %v7123_v42  ;;  %2615 = vmatpush.bf16.msra.mxu2 %v7124_v26 }
 0x5ef   :  { %2590 = vmatpush.bf16.msra.mxu0 %v7125_v8  ;;  %2616 = vmatpush.bf16.msra.mxu2 %v7126_v12 }
 0x5f3   :  { %2591 = vmatpush.bf16.msra.mxu0 %v7127_v21  ;;  %2617 = vmatpush.bf16.msra.mxu2 %v7128_v25 }
 0x5f7   :  { %2592 = vmatpush.bf16.msra.mxu0 %v7129_v33  ;;  %2618 = vmatpush.bf16.msra.mxu2 %v7130_v37 }
 0x600   :  { %v2333_v46 = vpop.f32.mrf.mxu1 }
 0x606   :  { %v2359_v50 = vpop.f32.mrf.mxu3 }
 0x608   :  { %v2335_v35 = vpop.f32.mrf.mxu1 }
 0x60e   :  { %v2361_v36 = vpop.f32.mrf.mxu3 }
 0x610   :  { %v2385_v20 = vpop.f32.mrf.mxu1 }
 0x616   :  { %v2411_v9 = vpop.f32.mrf.mxu3 }
 0x617   :  { %v2320_v2 = vpop.f32.mrf.mxu0 }
 0x618   :  { %v2321_v63 = vadd.f32 %v2320_v2, %v7131_v40  ;;  %v2387_v7 = vpop.f32.mrf.mxu1 }
 0x61a   :  { %v2334_v31 = vadd.f32 %v2333_v46, %v2321_v63 }
 0x61c   :  { %v2415_v18 = vmul.f32 0.5, %v2334_v31 }
 0x61d   :  { %v2346_v58 = vpop.f32.mrf.mxu2 }
 0x61e   :  { %v2347_v11 = vadd.f32 %v2346_v58, %v7003_v0  ;;  %v2413_v30 = vpop.f32.mrf.mxu3  ;;  %4714 = vtanh.f32 %v2415_v18  ;;  %v2515_v18 = vrot.slane %v6150_v3, 6  ;;  %v4503_v3 = vld [vmem:[#allocation8 + $0xec] sm:$0xf0] }
 0x61f   :  { %v2322_v48 = vpop.f32.mrf.mxu0 }
 0x620   :  { %v2360_v38 = vadd.f32 %v2359_v50, %v2347_v11 }
 0x622   :  { %v2419_v27 = vmul.f32 0.5, %v2360_v38  ;;  %v2455_v54 = vpop.f32.mrf.mxu1 }
 0x623   :  { %v2490_v15 = vrot.slane %v2455_v54, 2 }
 0x624   :  { %4716 = vtanh.f32 %v2419_v27  ;;  %v4715_v6 = vpop.eup %4714 }
 0x625   :  { %v2348_v5 = vpop.f32.mrf.mxu2  ;;  %v2417_v16 = vmul.f32 0.5, %v4715_v6  ;;  %v2498_v10 = vadd.f32 %v2490_v15, %v5897_v44  ;;  %v4504_v15 = vld [vmem:[#allocation8 + $0xf4] sm:$0xf0] }
 0x627   :  { %v2372_v52 = vpop.f32.mrf.mxu0  ;;  %v2418_v51 = vadd.f32 0.5, %v2417_v16  ;;  %v2505_v57 = vmul.f32 0.5, %v2498_v10  ;;  %v4162_v16 = vld [vmem:[#allocation8 + $0xe8] sm:$0xf]  ;;  %v4138_v10 = vld [vmem:[#allocation8 + $0xc0] sm:$0xf] }
 0x628   :  { %v2373_v28 = vadd.f32 %v2372_v52, %v7132_v17  ;;  %v2481_v19 = vpop.f32.mrf.mxu3 }
 0x629   :  { %v2492_v26 = vrot.slane %v2481_v19, 2 }
 0x62a   :  { %v4717_v43 = vpop.eup %4716  ;;  %v2386_v41 = vadd.f32 %v2385_v20, %v2373_v28  ;;  %v2457_v14 = vpop.f32.mrf.mxu1 }
 0x62b   :  { %v2421_v13 = vmul.f32 0.5, %v4717_v43  ;;  %v2500_v25 = vadd.f32 %v2492_v26, %v5914_v29  ;;  %v4156_v14 = vld [vmem:[#allocation8 + $0xf0] sm:$0xf0] }
 0x62c   :  { %4718 = vtanh.f32 %v2386_v41  ;;  %v4154_v41 = vld [vmem:[#allocation8 + $0xe0] sm:$0xf] }
 0x62d   :  { %v2398_v24 = vpop.f32.mrf.mxu2  ;;  %v2422_v32 = vadd.f32 0.5, %v2421_v13  ;;  %v2510_v63 = vmul.f32 0.5, %v2500_v25  ;;  %v4501_v13 = vld [vmem:[#allocation8 + $0xe4] sm:$0xf]  ;;  %v4155_v19 = vor.u32 %v4503_v3, %v4154_v41  ;;  %v4124_v25 = vld [vmem:[#allocation8 + $0xb0] sm:$0xf0] }
 0x62e   :  { %v2399_v47 = vadd.f32 %v2398_v24, %v5557_v4 }
 0x62f   :  { %v2374_v34 = vpop.f32.mrf.mxu0  ;;  %v2428_v22 = vmul.f32 %v2422_v32, %v6141_v53  ;;  %v4163_v32 = vor.u32 %v4504_v15, %v4162_v16  ;;  %v4074_v15 = vld [vmem:[#allocation8 + $0x40] sm:$0xf] }
 0x630   :  { %v2412_v49 = vadd.f32 %v2411_v9, %v2399_v47  ;;  %v2483_v56 = vpop.f32.mrf.mxu3  ;;  %v4159_v47 = vor.u32 %v4501_v13, %v4156_v14  ;;  %v4502_v34 = vld [vmem:[#allocation8 + $0xec] sm:$0xf]  ;;  %v4100_v14 = vld [vmem:[#allocation8 + $0x78] sm:$0xf0] }
 0x631   :  { %v4146_v56 = vld [vmem:[#allocation8 + $0xc8] sm:$0xf] }
 0x632   :  { %v4719_v60 = vpop.eup %4718  ;;  %v2424_v39 = vmul.f32 0.5, %v2412_v49  ;;  %v4164_v49 = vld [vmem:[#allocation8 + $0xf8] sm:$0xf0] }
 0x633   :  { %v2429_v1 = vmul.f32 %v4719_v60, %v2418_v51  ;;  %v4167_v51 = vor.u32 %v4502_v34, %v4164_v49  ;;  %v4499_v60 = vld [vmem:[#allocation8 + $0xcc] sm:$0xf0]  ;;  %v4076_v49 = vld [vmem:[#allocation8 + $0x50] sm:$0xf0] }
 0x634   :  { %4720 = vtanh.f32 %v2424_v39  ;;  %v4497_v39 = vld [vmem:[#allocation8 + $0xc4] sm:$0xf] }
 0x635   :  { %v6253_v62 = vadd.f32 %v2429_v1, %v2428_v22  ;;  %v2400_v23 = vpop.f32.mrf.mxu2  ;;  %v4139_v22 = vor.u32 %v4499_v60, %v4138_v10  ;;  %v4140_v1 = vld [vmem:[#allocation8 + $0xd0] sm:$0xf0]  ;;  %v4484_v10 = vld [vmem:[#allocation8 + $0x54] sm:$0xf0] }
 0x636   :  { %v4143_v23 = vor.u32 %v4497_v39, %v4140_v1  ;;  %v4482_v1 = vld [vmem:[#allocation8 + $0x4c] sm:$0xf] }
 0x637   :  { %4722 = vtanh.f32 %v6253_v62  ;;  %v2442_v61 = vpop.f32.mrf.mxu0 }
 0x638   :  { %v2489_v45 = vrot.slane %v2442_v61, 2  ;;  %4724 = vtanh.f32 %v2505_v57  ;;  %v4500_v57 = vld [vmem:[#allocation8 + $0xd4] sm:$0xf0] }
 0x639   :  { %v4147_v61 = vor.u32 %v4500_v57, %v4146_v56  ;;  %v4084_v56 = vld [vmem:[#allocation8 + $0x58] sm:$0xf0] }
 0x63a   :  { %v4721_v42 = vpop.eup %4720  ;;  %v2497_v44 = vadd.f32 %v2489_v45, %v5907_v59  ;;  %v4498_v45 = vld [vmem:[#allocation8 + $0xcc] sm:$0xf] }
 0x63b   :  { %v2426_v8 = vmul.f32 0.5, %v4721_v42  ;;  %v4148_v42 = vld [vmem:[#allocation8 + $0xd8] sm:$0xf0] }
 0x63c   :  { %v2501_v12 = vmul.f32 0.5, %v2497_v44  ;;  %v4151_v26 = vor.u32 %v4498_v45, %v4148_v42  ;;  %v4058_v45 = vld [vmem:[#allocation8 + $0x20] sm:$0xf]  ;;  %v4479_v42 = vld [vmem:[#allocation8 + $0x2c] sm:$0xf0] }
 0x63d   :  { %v4723_v21 = vpop.eup %4722  ;;  %v2427_v53 = vadd.f32 0.5, %v2426_v8  ;;  %v2468_v33 = vpop.f32.mrf.mxu2  ;;  %v4122_v8 = vld [vmem:[#allocation8 + $0xa0] sm:$0xf] }
 0x63e   :  { %4726 = vtanh.f32 %v2501_v12  ;;  %v4725_v37 = vpop.eup %4724  ;;  %v2491_v50 = vrot.slane %v2468_v33, 2  ;;  %v4495_v12 = vld [vmem:[#allocation8 + $0xac] sm:$0xf0]  ;;  %v4130_v33 = vld [vmem:[#allocation8 + $0xa8] sm:$0xf] }
 0x63f   :  { %v2432_v46 = vmul.f32 %v4723_v21, %v2427_v53  ;;  %v2444_v35 = vpop.f32.mrf.mxu0  ;;  %v2507_v2 = vmul.f32 0.5, %v4725_v37  ;;  %v4493_v21 = vld [vmem:[#allocation8 + $0xa4] sm:$0xf]  ;;  %v4123_v53 = vor.u32 %v4495_v12, %v4122_v8  ;;  %v4496_v37 = vld [vmem:[#allocation8 + $0xb4] sm:$0xf0]  ;;  %v4059_v8 = vor.u32 %v4479_v42, %v4058_v45 }
 0x640   :  { %v2499_v20 = vadd.f32 %v2491_v50, %v5920_v55  ;;  %v4127_v50 = vor.u32 %v4493_v21, %v4124_v25  ;;  %v4131_v35 = vor.u32 %v4496_v37, %v4130_v33  ;;  %v4060_v12 = vld [vmem:[#allocation8 + $0x30] sm:$0xf0]  ;;  %v4066_v21 = vld [vmem:[#allocation8 + $0x28] sm:$0xf]  ;;  %v4533_v45 = vld [vmem:[#allocation10 + $0xe0] sm:$0xff] }
 0x641   :  { %v2523_v36 = vrot.slane %v2432_v46, 2  ;;  %v2508_v58 = vadd.f32 0.5, %v2507_v2 }
 0x642   :  { %4728 = vtanh.f32 %v2499_v20  ;;  %v4132_v20 = vld [vmem:[#allocation8 + $0xb8] sm:$0xf0] }
 0x643   :  { %v2526_v9 = vpack.c.bf16 %v2523_v36, %v2523_v36  ;;  %4730 = vtanh.f32 %v2510_v63  ;;  %v2517_v38 = vmul.f32 %v2515_v18, %v2508_v58  ;;  %v4494_v36 = vld [vmem:[#allocation8 + $0xac] sm:$0xf]  ;;  %v4106_v63 = vld [vmem:[#allocation8 + $0x80] sm:$0xf]  ;;  %v4114_v58 = vld [vmem:[#allocation8 + $0x88] sm:$0xf] }
 0x644   :  { %v4727_v59 = vpop.eup %4726  ;;  %v4135_v2 = vor.u32 %v4494_v36, %v4132_v20  ;;  %v4042_v20 = vld [vmem:[#allocation8] sm:$0xf] }
 0x645   :  { %v2530_v31 = vrot.slane %v2526_v9, 3  ;;  %v2503_v7 = vmul.f32 0.5, %v4727_v59  ;;  %v2470_v11 = vpop.f32.mrf.mxu2  ;;  %v4491_v9 = vld [vmem:[#allocation8 + $0x8c] sm:$0xf0]  ;;  %v4489_v59 = vld [vmem:[#allocation8 + $0x84] sm:$0xf] }
 0x646   :  { %v4492_v11 = vld [vmem:[#allocation8 + $0x94] sm:$0xf0] }
 0x647   :  { %v2504_v29 = vadd.f32 0.5, %v2503_v7  ;;  %2554 = vmatmul.bf16.vlgmr.msrb.gmra.mxu1 %v2530_v31  ;;  %2580 = vmatmul.bf16.vlgmr.msrb.gmra.mxu3 %v2530_v31  ;;  %v4108_v7 = vld [vmem:[#allocation8 + $0x90] sm:$0xf0]  ;;  %v4115_v18 = vor.u32 %v4492_v11, %v4114_v58 }
 0x648   :  { %v4729_v48 = vpop.eup %4728  ;;  %2871 = vmatpush.bf16.msrb.mxu1 %v4159_v47  ;;  %2897 = vmatpush.bf16.msrb.mxu3 %v4167_v51  ;;  %v4483_v47 = vld [vmem:[#allocation8 + $0x4c] sm:$0xf0]  ;;  %v4082_v51 = vld [vmem:[#allocation8 + $0x48] sm:$0xf] }
 0x649   :  { %v2518_v30 = vmul.f32 %v4729_v48, %v2504_v29  ;;  %v4731_v27 = vpop.eup %4730  ;;  %v4111_v29 = vor.u32 %v4489_v59, %v4108_v7  ;;  %v4490_v48 = vld [vmem:[#allocation8 + $0x8c] sm:$0xf]  ;;  %v4075_v34 = vor.u32 %v4483_v47, %v4074_v15  ;;  %v4050_v7 = vld [vmem:[#allocation8 + $0x8] sm:$0xf] }
 0x64a   :  { %v2512_v54 = vmul.f32 0.5, %v4731_v27 }
 0x64b   :  { %v2519_v55 = vadd.f32 %v2518_v30, %v2517_v38  ;;  %v4116_v38 = vld [vmem:[#allocation8 + $0x98] sm:$0xf0] }
 0x64c   :  { %v2513_v5 = vadd.f32 0.5, %v2512_v54  ;;  %2872 = vmatpush.bf16.msrb.mxu1 %v4143_v23  ;;  %2898 = vmatpush.bf16.msrb.mxu3 %v4151_v26  ;;  %v4119_v30 = vor.u32 %v4490_v48, %v4116_v38  ;;  %v4487_v54 = vld [vmem:[#allocation8 + $0x6c] sm:$0xf0]  ;;  %v4087_v23 = vor.u32 %v4482_v1, %v4084_v56  ;;  %v4477_v26 = vld [vmem:[#allocation8 + $0x24] sm:$0xf] }
 0x64d   :  { %4732 = vtanh.f32 %v2519_v55  ;;  %v4090_v55 = vld [vmem:[#allocation8 + $0x60] sm:$0xf]  ;;  %v4063_v37 = vor.u32 %v4477_v26, %v4060_v12  ;;  %v4474_v48 = vld [vmem:[#allocation8 + $0xc] sm:$0xf]  ;;  %v4052_v38 = vld [vmem:[#allocation8 + $0x18] sm:$0xf0] }
 0x64e   :  { %v4508_v12 = vld [vmem:[#allocation10 + $0x18] sm:$0xff] }
 0x650   :  { %2873 = vmatpush.bf16.msrb.mxu1 %v4127_v50  ;;  %2899 = vmatpush.bf16.msrb.mxu3 %v4135_v2  ;;  %v4068_v50 = vld [vmem:[#allocation8 + $0x38] sm:$0xf0]  ;;  %v4475_v2 = vld [vmem:[#allocation8 + $0xc] sm:$0xf0] }
 0x651   :  { %v4043_v59 = vor.u32 %v4475_v2, %v4042_v20  ;;  %v4505_v2 = vld [vmem:[#allocation10] sm:$0xff] }
 0x653   :  { %v4733_v52 = vpop.eup %4732 }
 0x654   :  { %v2521_v28 = vmul.f32 %v4733_v52, %v2513_v5  ;;  %2874 = vmatpush.bf16.msrb.mxu1 %v4111_v29  ;;  %v4485_v5 = vld [vmem:[#allocation8 + $0x64] sm:$0xf]  ;;  %2900 = vmatpush.bf16.msrb.mxu3 %v4119_v30  ;;  %v4091_v52 = vor.u32 %v4487_v54, %v4090_v55 }
 0x656   :  { %v2525_v6 = vpack.c.bf16 %v2521_v28, %v2521_v28  ;;  %v4092_v28 = vld [vmem:[#allocation8 + $0x70] sm:$0xf0] }
 0x657   :  { %2606 = vmatmul.bf16.vlgmr.msra.gmra.mxu1 %v2530_v31  ;;  %2632 = vmatmul.bf16.vlgmr.msra.gmra.mxu3 %v2530_v31  ;;  %v4107_v31 = vor.u32 %v4491_v9, %v4106_v63  ;;  %v4095_v3 = vor.u32 %v4485_v5, %v4092_v28  ;;  %v4473_v63 = vld [vmem:[#allocation8 + $0x4] sm:$0xf]  ;;  %v4511_v28 = vld [vmem:[#allocation10 + $0x30] sm:$0xff] }
 0x658   :  { %v2529_v43 = vrot.slane %v2525_v6, 3  ;;  %v4098_v6 = vld [vmem:[#allocation8 + $0x68] sm:$0xf] }
 0x659   :  { %2875 = vmatpush.bf16.msrb.mxu1 %v4095_v3 }
 0x65a   :  { %2541 = vmatmul.bf16.vlgmr.msrb.gmra.mxu0 %v2529_v43  ;;  %2567 = vmatmul.bf16.vlgmr.msrb.gmra.mxu2 %v2529_v43 }
 0x65b   :  { %2858 = vmatpush.bf16.msrb.mxu0 %v4155_v19  ;;  %2884 = vmatpush.bf16.msrb.mxu2 %v4163_v32  ;;  %v4486_v19 = vld [vmem:[#allocation8 + $0x6c] sm:$0xf]  ;;  %v4481_v32 = vld [vmem:[#allocation8 + $0x44] sm:$0xf] }
 0x65c   :  { %v4103_v16 = vor.u32 %v4486_v19, %v4100_v14  ;;  %v4079_v39 = vor.u32 %v4481_v32, %v4076_v49  ;;  %v4527_v19 = vld [vmem:[#allocation10 + $0xb0] sm:$0xff]  ;;  %v4510_v32 = vld [vmem:[#allocation10 + $0x28] sm:$0xff] }
 0x65d   :  { %v4535_v14 = vld [vmem:[#allocation10 + $0xf0] sm:$0xff]  ;;  %v4518_v49 = vld [vmem:[#allocation10 + $0x68] sm:$0xff] }
 0x65e   :  { %2901 = vmatpush.bf16.msrb.mxu3 %v4103_v16  ;;  %2876 = vmatpush.bf16.msrb.mxu1 %v4079_v39 }
 0x65f   :  { %2859 = vmatpush.bf16.msrb.mxu0 %v4139_v22  ;;  %2885 = vmatpush.bf16.msrb.mxu2 %v4147_v61  ;;  %v4083_v22 = vor.u32 %v4484_v10, %v4082_v51  ;;  %v4526_v51 = vld [vmem:[#allocation10 + $0xa8] sm:$0xff] }
 0x660   :  { %v4534_v10 = vld [vmem:[#allocation10 + $0xe8] sm:$0xff] }
 0x662   :  { %2902 = vmatpush.bf16.msrb.mxu3 %v4087_v23  ;;  %2877 = vmatpush.bf16.msrb.mxu1 %v4063_v37  ;;  %v4525_v23 = vld [vmem:[#allocation10 + $0xa0] sm:$0xff] }
 0x663   :  { %2860 = vmatpush.bf16.msrb.mxu0 %v4123_v53  ;;  %2886 = vmatpush.bf16.msrb.mxu2 %v4131_v35  ;;  %v4480_v53 = vld [vmem:[#allocation8 + $0x34] sm:$0xf0] }
 0x667   :  { %2861 = vmatpush.bf16.msrb.mxu0 %v4107_v31  ;;  %2887 = vmatpush.bf16.msrb.mxu2 %v4115_v18  ;;  %v4044_v31 = vld [vmem:[#allocation8 + $0x10] sm:$0xf0] }
 0x668   :  { %v4047_v29 = vor.u32 %v4473_v63, %v4044_v31  ;;  %v4543_v31 = vld [vmem:[%s6384_s10 + $0x30] sm:$0xff] }
 0x66a   :  { %2593 = vmatmul.bf16.vlgmr.msra.gmra.mxu0 %v2529_v43  ;;  %2619 = vmatmul.bf16.vlgmr.msra.gmra.mxu2 %v2529_v43  ;;  %v4488_v43 = vld [vmem:[#allocation8 + $0x74] sm:$0xf0] }
 0x66b   :  { %v4099_v13 = vor.u32 %v4488_v43, %v4098_v6  ;;  %2862 = vmatpush.bf16.msrb.mxu0 %v4091_v52  ;;  %2878 = vmatpush.bf16.msrb.mxu1 %v4047_v29  ;;  %v4520_v52 = vld [vmem:[#allocation10 + $0x78] sm:$0xff]  ;;  %v4513_v29 = vld [vmem:[#allocation10 + $0x40] sm:$0xff] }
 0x66c   :  { %v4528_v6 = vld [vmem:[#allocation10 + $0xb8] sm:$0xff] }
 0x66d   :  { %2888 = vmatpush.bf16.msrb.mxu2 %v4099_v13  ;;  %v4536_v43 = vld [vmem:[#allocation10 + $0xf8] sm:$0xff]  ;;  %v4519_v13 = vld [vmem:[#allocation10 + $0x70] sm:$0xff] }
 0x66f   :  { %2863 = vmatpush.bf16.msrb.mxu0 %v4075_v34  ;;  %3199 = vmatpush.bf16.msra.mxu1 %v4520_v52  ;;  %v2688_v52 = vld [vmem:[%s7133_s2] sm:$0xf]  ;;  %s7136_s2 = sld [smem:[#allocation123_spill]] }
 0x671   :  { %2889 = vmatpush.bf16.msrb.mxu2 %v4083_v22  ;;  %v4509_v22 = vld [vmem:[#allocation10 + $0x20] sm:$0xff] }
 0x673   :  { %2864 = vmatpush.bf16.msrb.mxu0 %v4059_v8  ;;  %3200 = vmatpush.bf16.msra.mxu1 %v4519_v13 }
 0x677   :  { %2865 = vmatpush.bf16.msrb.mxu0 %v4043_v59  ;;  %3201 = vmatpush.bf16.msra.mxu1 %v4518_v49  ;;  %v4544_v59 = vld [vmem:[%s6384_s10 + $0x38] sm:$0xff] }
 0x6c4   :  { %v6260_v24 = vpop.f32.mrf.mxu1 }
 0x6ca   :  { %v6262_v44 = vpop.f32.mrf.mxu3 }
 0x6cc   :  { %v2557_v46 = vpop.f32.mrf.mxu1 }
 0x6cd   :  { %v4067_v46 = vor.u32 %v4480_v53, %v4066_v21  ;;  %v4516_v53 = vld [vmem:[#allocation10 + $0x58] sm:$0xff] }
 0x6cf   :  { %2890 = vmatpush.bf16.msrb.mxu2 %v4067_v46  ;;  %v4507_v46 = vld [vmem:[#allocation10 + $0x10] sm:$0xff] }
 0x6d2   :  { %v2583_v27 = vpop.f32.mrf.mxu3 }
 0x6d3   :  { %v4055_v27 = vor.u32 %v4474_v48, %v4052_v38  ;;  %v4522_v48 = vld [vmem:[#allocation10 + $0x88] sm:$0xff] }
 0x6d4   :  { %v6264_v41 = vpop.f32.mrf.mxu1  ;;  %v4530_v38 = vld [vmem:[#allocation10 + $0xc8] sm:$0xff] }
 0x6d7   :  { %v2542_v60 = vpop.f32.mrf.mxu0 }
 0x6d8   :  { %v2543_v57 = vadd.f32 %v2542_v60, %v7131_v40  ;;  %v4478_v40 = vld [vmem:[#allocation8 + $0x2c] sm:$0xf] }
 0x6d9   :  { %v4071_v35 = vor.u32 %v4478_v40, %v4068_v50  ;;  %v4515_v40 = vld [vmem:[#allocation10 + $0x50] sm:$0xff] }
 0x6da   :  { %v6267_v61 = vpop.f32.mrf.mxu3  ;;  %v2556_v25 = vadd.f32 %v6260_v24, %v2543_v57  ;;  %v4476_v24 = vld [vmem:[#allocation8 + $0x14] sm:$0xf0] }
 0x6db   :  { %2903 = vmatpush.bf16.msrb.mxu3 %v4071_v35  ;;  %v4051_v18 = vor.u32 %v4476_v24, %v4050_v7  ;;  %v4514_v7 = vld [vmem:[#allocation10 + $0x48] sm:$0xff] }
 0x6dc   :  { %v2609_v33 = vpop.f32.mrf.mxu1  ;;  %v2637_v58 = vmul.f32 0.5, %v2556_v25  ;;  %v4524_v25 = vld [vmem:[#allocation10 + $0x98] sm:$0xff]  ;;  %v4542_v24 = vld [vmem:[%s6384_s10 + $0x28] sm:$0xff] }
 0x6dd   :  { %v2568_v36 = vpop.f32.mrf.mxu2  ;;  %2891 = vmatpush.bf16.msrb.mxu2 %v4051_v18  ;;  %v4532_v33 = vld [vmem:[#allocation10 + $0xd8] sm:$0xff]  ;;  %v4541_v18 = vld [vmem:[%s6384_s10 + $0x20] sm:$0xff] }
 0x6de   :  { %v2569_v9 = vadd.f32 %v2568_v36, %v7003_v0  ;;  %4734 = vtanh.f32 %v2637_v58  ;;  %v4512_v0 = vld [vmem:[#allocation10 + $0x38] sm:$0xff]  ;;  %v4523_v58 = vld [vmem:[#allocation10 + $0x90] sm:$0xff] }
 0x6df   :  { %v2544_v11 = vpop.f32.mrf.mxu0  ;;  %2904 = vmatpush.bf16.msrb.mxu3 %v4055_v27  ;;  %3186 = vmatpush.bf16.msra.mxu0 %v4512_v0  ;;  %v4521_v27 = vld [vmem:[#allocation10 + $0x80] sm:$0xff]  ;;  %v4538_v0 = vld [vmem:[%s6384_s10 + $0x8] sm:$0xff] }
 0x6e0   :  { %v2582_v30 = vadd.f32 %v6262_v44, %v2569_v9  ;;  %v4531_v11 = vld [vmem:[#allocation10 + $0xd0] sm:$0xff] }
 0x6e1   :  { %3212 = vmatpush.bf16.msra.mxu2 %v4528_v6  ;;  %v2691_v6 = vperm.slane %v2688_v52, 1 }
 0x6e2   :  { %v2635_v55 = vpop.f32.mrf.mxu3  ;;  %v2641_v54 = vmul.f32 0.5, %v2582_v30  ;;  %v4540_v30 = vld [vmem:[%s6384_s10 + $0x18] sm:$0xff] }
 0x6e3   :  { %3225 = vmatpush.bf16.msra.mxu3 %v4536_v43  ;;  %3187 = vmatpush.bf16.msra.mxu0 %v4511_v28  ;;  %v4529_v55 = vld [vmem:[#allocation10 + $0xc0] sm:$0xff]  ;;  %v2690_v28 = vperm.slane %v2688_v52, 0 }
 0x6e4   :  { %4736 = vtanh.f32 %v2641_v54  ;;  %v4735_v16 = vpop.eup %4734  ;;  %v4539_v54 = vld [vmem:[%s6384_s10 + $0x10] sm:$0xff] }
 0x6e5   :  { %v2570_v5 = vpop.f32.mrf.mxu2  ;;  %3213 = vmatpush.bf16.msra.mxu2 %v4527_v19  ;;  %v2639_v60 = vmul.f32 0.5, %v4735_v16  ;;  %v2692_v16 = vperm.slane %v2688_v52, 2 }
 0x6e6   :  { %v4537_v5 = vld [vmem:[%s6384_s10] sm:$0xff] }
 0x6e7   :  { %v2594_v3 = vpop.f32.mrf.mxu0  ;;  %3226 = vmatpush.bf16.msra.mxu3 %v4535_v14  ;;  %3188 = vmatpush.bf16.msra.mxu0 %v4510_v32  ;;  %v2640_v42 = vadd.f32 0.5, %v2639_v60 }
 0x6e8   :  { %v2595_v44 = vadd.f32 %v2594_v3, %v7132_v17 }
 0x6e9   :  { %3214 = vmatpush.bf16.msra.mxu2 %v4526_v51 }
 0x6ea   :  { %v4737_v15 = vpop.eup %4736  ;;  %v2608_v47 = vadd.f32 %v6264_v41, %v2595_v44  ;;  %v4517_v41 = vld [vmem:[#allocation10 + $0x60] sm:$0xff] }
 0x6eb   :  { %v2643_v34 = vmul.f32 0.5, %v4737_v15  ;;  %3227 = vmatpush.bf16.msra.mxu3 %v4534_v10  ;;  %3189 = vmatpush.bf16.msra.mxu0 %v4509_v22  ;;  %v2693_v15 = vperm.slane %v2688_v52, 3  ;;  %v4549_v52 = vld [vmem:[#allocation11 + $0x20] sm:$0xff] }
 0x6ec   :  { %4738 = vtanh.f32 %v2608_v47  ;;  %3202 = vmatpush.bf16.msra.mxu1 %v4517_v41 }
 0x6ed   :  { %v2620_v17 = vpop.f32.mrf.mxu2  ;;  %v2644_v1 = vadd.f32 0.5, %v2643_v34  ;;  %3215 = vmatpush.bf16.msra.mxu2 %v4525_v23 }
 0x6ee   :  { %v2621_v39 = vadd.f32 %v2620_v17, %v5557_v4 }
 0x6ef   :  { %v2596_v56 = vpop.f32.mrf.mxu0  ;;  %v2650_v21 = vmul.f32 %v2644_v1, %v6253_v62  ;;  %3228 = vmatpush.bf16.msra.mxu3 %v4533_v45  ;;  %3190 = vmatpush.bf16.msra.mxu0 %v4508_v12  ;;  %v4506_v62 = vld [vmem:[#allocation10 + $0x8] sm:$0xff] }
 0x6f0   :  { %v2634_v57 = vadd.f32 %v6267_v61, %v2621_v39  ;;  %3203 = vmatpush.bf16.msra.mxu1 %v4516_v53 }
 0x6f1   :  { %3216 = vmatpush.bf16.msra.mxu2 %v4524_v25 }
 0x6f2   :  { %v4739_v26 = vpop.eup %4738  ;;  %v2646_v8 = vmul.f32 0.5, %v2634_v57 }
 0x6f3   :  { %v2651_v4 = vmul.f32 %v4739_v26, %v2640_v42  ;;  %3229 = vmatpush.bf16.msra.mxu3 %v4532_v33  ;;  %3191 = vmatpush.bf16.msra.mxu0 %v4507_v46 }
 0x6f4   :  { %4740 = vtanh.f32 %v2646_v8  ;;  %3204 = vmatpush.bf16.msra.mxu1 %v4515_v40 }
 0x6f5   :  { %v2652_v61 = vadd.f32 %v2651_v4, %v2650_v21  ;;  %v2622_v37 = vpop.f32.mrf.mxu2  ;;  %3217 = vmatpush.bf16.msra.mxu2 %v4523_v58  ;;  %v4574_v21 = vld [vmem:[%s6383_s9] ss:$0 sm:$0xff]  ;;  %v4974_v4 = vmov 2.0   ;;  %s4975_s9 = smov [#allocation13]  }
 0x6f7   :  { %4742 = vtanh.f32 %v2652_v61  ;;  %3192 = vmatpush.bf16.msra.mxu0 %v4506_v62  ;;  %3230 = vmatpush.bf16.msra.mxu3 %v4531_v11 }
 0x6f8   :  { %3205 = vmatpush.bf16.msra.mxu1 %v4514_v7  ;;  %4744 = vrcp.f32 %v4974_v4 }
 0x6f9   :  { %3218 = vmatpush.bf16.msra.mxu2 %v4522_v48  ;;  %v4551_v48 = vld [vmem:[#allocation11 + $0x30] sm:$0xff] }
 0x6fa   :  { %v4741_v50 = vpop.eup %4740 }
 0x6fb   :  { %v2648_v35 = vmul.f32 0.5, %v4741_v50  ;;  %3193 = vmatpush.bf16.msra.mxu0 %v4505_v2  ;;  %3231 = vmatpush.bf16.msra.mxu3 %v4530_v38  ;;  %v4575_v50 = vld [vmem:[%s6385_s11] ss:$0 sm:$0xff]  ;;  %s3625_s11 = sshll.u32 %s4975_s9, 4  ;;  %s3626_s11 = int_to_ptr.vmem [resolvable:$true] %s3625_s11 }
 0x6fc   :  { %3206 = vmatpush.bf16.msra.mxu1 %v4513_v29 }
 0x6fd   :  { %v4743_v36 = vpop.eup %4742  ;;  %v2649_v20 = vadd.f32 0.5, %v2648_v35  ;;  %3219 = vmatpush.bf16.msra.mxu2 %v4521_v27 }
 0x6fe   :  { %v4745_v61 = vpop.eup %4744 }
 0x6ff   :  { %v2654_v63 = vmul.f32 %v4743_v36, %v2649_v20  ;;  %3232 = vmatpush.bf16.msra.mxu3 %v4529_v55  ;;  %v3331_v62 = vmul.f32 2.0, %v4745_v61  ;;  %vm3335_vm5 = vweird.f32 %v4745_v61  ;;  %v4550_v55 = vld [vmem:[#allocation11 + $0x28] sm:$0xff] }
 0x701   :  { %v6277_v9 = vpack.c.bf16 %v2654_v63, %v2654_v63  ;;  %v3332_v63 = vsub.f32 1.0, %v3331_v62 }
 0x703   :  { %2866 = vmatmul.bf16.vlgmr.msrb.gmra.mxu0 %v6277_v9  ;;  %2879 = vmatmul.bf16.vlgmr.msrb.gmra.mxu1 %v6277_v9  ;;  %v3333_v7 = vmul.f32 %v4745_v61, %v3332_v63 }
 0x704   :  { %2892 = vmatmul.bf16.vlgmr.msrb.gmra.mxu2 %v6277_v9  ;;  %2905 = vmatmul.bf16.vlgmr.msrb.gmra.mxu3 %v6277_v9 }
 0x705   :  { %3307 = vmatpush.bf16.msrb.mxu0 %v4544_v59  ;;  %v3334_v38 = vadd.f32 %v4745_v61, %v3333_v7 }
 0x709   :  { %3308 = vmatpush.bf16.msrb.mxu0 %v4543_v31  ;;  %v4552_v31 = vld [vmem:[#allocation11 + $0x38] sm:$0xff] }
 0x70a   :  { %3440 = vmatpush.bf16.msrb.mxu1 %v4552_v31 }
 0x70d   :  { %3309 = vmatpush.bf16.msrb.mxu0 %v4542_v24 }
 0x70e   :  { %3441 = vmatpush.bf16.msrb.mxu1 %v4551_v48 }
 0x711   :  { %3310 = vmatpush.bf16.msrb.mxu0 %v4541_v18 }
 0x712   :  { %3442 = vmatpush.bf16.msrb.mxu1 %v4550_v55 }
 0x715   :  { %3311 = vmatpush.bf16.msrb.mxu0 %v4540_v30 }
 0x716   :  { %3443 = vmatpush.bf16.msrb.mxu1 %v4549_v52 }
 0x719   :  { %3312 = vmatpush.bf16.msrb.mxu0 %v4539_v54  ;;  %v6318_v54 = vsel %vm3335_vm5, %v4745_v61, %v3334_v38 }
 0x71d   :  { %3313 = vmatpush.bf16.msrb.mxu0 %v4538_v0 }
 0x721   :  { %3314 = vmatpush.bf16.msrb.mxu0 %v4537_v5 }
 0x780   :  { %v2867_v43 = vpop.f32.mrf.mxu0  ;;  %v2880_v3 = vpop.f32.mrf.mxu1 }
 0x781   :  { %v2868_v13 = vadd.f32 %v2867_v43, %v2690_v28  ;;  %v2881_v44 = vadd.f32 %v2880_v3, %v2691_v6  ;;  %v4548_v43 = vld [vmem:[#allocation11 + $0x18] sm:$0xff] }
 0x782   :  { %3444 = vmatpush.bf16.msrb.mxu1 %v4548_v43 }
 0x783   :  { %vm2910_vm0 = vcmp.gt.f32.partialorder %v2868_v13, 0.0  ;;  %v2914_v19 = vmul.f32 0.01, %v2868_v13  ;;  %vm2911_vm1 = vcmp.gt.f32.partialorder %v2881_v44, 0.0  ;;  %v2915_v14 = vmul.f32 0.01, %v2881_v44 }
 0x785   :  { %v2918_v47 = vsel %vm2910_vm0, %v2868_v13, %v2914_v19  ;;  %v2919_v32 = vsel %vm2911_vm1, %v2881_v44, %v2915_v14  ;;  %v4547_v44 = vld [vmem:[#allocation11 + $0x10] sm:$0xff]  ;;  %vm3553_vm0 = vcmask 9216  }
 0x786   :  { %v2986_v34 = vpack.c.bf16 %v2918_v47, %v2918_v47  ;;  %v2987_v49 = vpack.c.bf16 %v2919_v32, %v2919_v32  ;;  %3445 = vmatpush.bf16.msrb.mxu1 %v4547_v44  ;;  %v4545_v32 = vld [vmem:[#allocation11] sm:$0xff] }
 0x787   :  { %v2893_v51 = vpop.f32.mrf.mxu2  ;;  %v2906_v10 = vpop.f32.mrf.mxu3 }
 0x788   :  { %v2894_v60 = vadd.f32 %v2893_v51, %v2692_v16  ;;  %v2907_v17 = vadd.f32 %v2906_v10, %v2693_v15  ;;  %v2869_v39 = vpop.f32.mrf.mxu0  ;;  %v2882_v22 = vpop.f32.mrf.mxu1  ;;  %3194 = vmatmul.bf16.vlgmr.msra.gmra.mxu0 %v2986_v34  ;;  %3207 = vmatmul.bf16.vlgmr.msra.gmra.mxu1 %v2987_v49  ;;  %v4546_v16 = vld [vmem:[#allocation11 + $0x8] sm:$0xff] }
 0x78a   :  { %vm2912_vm2 = vcmp.gt.f32.partialorder %v2894_v60, 0.0  ;;  %v2916_v1 = vmul.f32 0.01, %v2894_v60  ;;  %vm2913_vm3 = vcmp.gt.f32.partialorder %v2907_v17, 0.0  ;;  %v2917_v56 = vmul.f32 0.01, %v2907_v17  ;;  %3446 = vmatpush.bf16.msrb.mxu1 %v4546_v16 }
 0x78c   :  { %v2920_v41 = vsel %vm2912_vm2, %v2894_v60, %v2916_v1  ;;  %v2921_v57 = vsel %vm2913_vm3, %v2907_v17, %v2917_v56  ;;  %v4576_v56 = vld [vmem:[%s6386_s12] ss:$0 sm:$0xff]  ;;  %s7138_s12 = sld [smem:[#allocation125_spill]] }
 0x78d   :  { %v2988_v23 = vpack.c.bf16 %v2920_v41, %v2920_v41  ;;  %v2989_v45 = vpack.c.bf16 %v2921_v57, %v2921_v57 }
 0x78e   :  { %3447 = vmatpush.bf16.msrb.mxu1 %v4545_v32 }
 0x78f   :  { %v2895_v42 = vpop.f32.mrf.mxu2  ;;  %v2908_v26 = vpop.f32.mrf.mxu3  ;;  %3220 = vmatmul.bf16.vlgmr.msra.gmra.mxu2 %v2988_v23  ;;  %3233 = vmatmul.bf16.vlgmr.msra.gmra.mxu3 %v2989_v45  ;;  %v4577_v23 = vld [vmem:[%s6387_s13] ss:$0 sm:$0xff] }
 0x792   :  { %s3638_s13 = sshll.u32 %s7138_s12, 4  ;;  %s3639_s13 = int_to_ptr.hbm [resolvable:$true] %s3638_s13 }
 0x798   :  { %3315 = vmatmul.bf16.vlgmr.msrb.gmra.mxu0 %v6277_v9 }
 0x805   :  { %v3195_v8 = vpop.f32.mrf.mxu0  ;;  %v3208_v12 = vpop.f32.mrf.mxu1 }
 0x806   :  { %v3196_v53 = vadd.f32 %v4574_v21, %v3195_v8  ;;  %v4578_v21 = vld [vmem:[%s6389_s15] ss:$0 sm:$0xff] }
 0x808   :  { %v3209_v37 = vadd.f32 %v3208_v12, %v3196_v53 }
 0x80d   :  { %v3197_v25 = vpop.f32.mrf.mxu0  ;;  %v3210_v33 = vpop.f32.mrf.mxu1 }
 0x812   :  { %v3221_v46 = vpop.f32.mrf.mxu2  ;;  %v3234_v40 = vpop.f32.mrf.mxu3 }
 0x813   :  { %v3222_v35 = vadd.f32 %v3221_v46, %v3209_v37 }
 0x815   :  { %v3235_v36 = vadd.f32 %v3234_v40, %v3222_v35  ;;  %v3316_v20 = vpop.f32.mrf.mxu0 }
 0x816   :  { %v3317_v2 = vadd.f32 %v4575_v50, %v3316_v20 }
 0x817   :  { %3238 = vst [vmem:[#allocation13] sm:$0x3] %v3235_v36 }
 0x818   :  { %v3323_v9 = vsel %vm3322_vm4, %v3317_v2, 0.0  ;;  %3630 = dma.vmem_to_hbm [thread:$0]  %s3626_s11, 32, %s3628_s1, [#allocation4]  }
 0x819   :  { %v3324_v59 = vrot.slane %v3323_v9, 4 }
 0x81a   :  { %v3223_v24 = vpop.f32.mrf.mxu2  ;;  %v3236_v58 = vpop.f32.mrf.mxu3 }
 0x81b   :  { %v3325_v11 = vadd.f32 %v3324_v59, %v3323_v9  ;;  %v4555_v59 = vld [vmem:[%s6392_s18 + $0x10] sm:$0xff]  ;;  %v4554_v24 = vld [vmem:[%s6392_s18 + $0x8] sm:$0xff] }
 0x81d   :  { %v3326_v29 = vrot.slane %v3325_v11, 2  ;;  %v3318_v18 = vpop.f32.mrf.mxu0 }
 0x81f   :  { %v3327_v30 = vadd.f32 %v3326_v29, %v3325_v11  ;;  %v4553_v29 = vld [vmem:[%s6392_s18] sm:$0xff] }
 0x821   :  { %v3328_v27 = vrot.slane %v3327_v30, 1 }
 0x823   :  { %v3329_v0 = vadd.f32 %v3328_v27, %v3327_v30 }
 0x825   :  { %v3337_v5 = vmul.f32 %v6318_v54, %v3329_v0 }
 0x827   :  { %v3338_v28 = vsub.f32 %v3317_v2, %v3337_v5  ;;  %v4556_v2 = vld [vmem:[%s6392_s18 + $0x18] sm:$0xff] }
 0x828   :  { %3542 = vmatpush.bf16.msrb.mxu2 %v4556_v2 }
 0x829   :  { %v3339_v6 = vmul.f32 %v3338_v28, %v3338_v28 }
 0x82b   :  { %v3340_v3 = vsel %vm3322_vm4, %v3339_v6, 0.0 }
 0x82c   :  { %v3341_v13 = vrot.slane %v3340_v3, 4  ;;  %3543 = vmatpush.bf16.msrb.mxu2 %v4555_v59 }
 0x82e   :  { %v3342_v19 = vadd.f32 %v3341_v13, %v3340_v3  ;;  %v4580_v3 = vld [vmem:[%s6391_s17] ss:$0 sm:$0xff] }
 0x830   :  { %v3343_v14 = vrot.slane %v3342_v19, 2  ;;  %3544 = vmatpush.bf16.msrb.mxu2 %v4554_v24 }
 0x832   :  { %v3344_v15 = vadd.f32 %v3343_v14, %v3342_v19 }
 0x834   :  { %v3345_v47 = vrot.slane %v3344_v15, 1  ;;  %3545 = vmatpush.bf16.msrb.mxu2 %v4553_v29 }
 0x836   :  { %v3346_v34 = vadd.f32 %v3345_v47, %v3344_v15  ;;  %v4581_v15 = vld [vmem:[%s7134_s7] ss:$0 sm:$0xff] }
 0x838   :  { %v3347_v49 = vmul.f32 %v3346_v34, %v6318_v54 }
 0x83a   :  { %v3348_v51 = vadd.f32 1e-05, %v3347_v49 }
 0x83c   :  { %4746 = vrsqrt.f32 %v3348_v51  ;;  %vm3355_vm7 = vweird.f32 %v3348_v51 }
 0x842   :  { %v4747_v10 = vpop.eup %4746 }
 0x843   :  { %v3350_v60 = vmul.f32 %v4747_v10, %v3348_v51  ;;  %vm3356_vm6 = vweird.f32 %v4747_v10 }
 0x844   :  { %vm3357_vm8 = vmor %vm3355_vm7, %vm3356_vm6 }
 0x845   :  { %v3351_v17 = vmul.f32 %v4747_v10, %v3350_v60 }
 0x847   :  { %v3352_v39 = vmul.f32 0.5, %v3351_v17 }
 0x849   :  { %v3353_v22 = vsub.f32 1.5, %v3352_v39 }
 0x84b   :  { %v3354_v1 = vmul.f32 %v4747_v10, %v3353_v22 }
 0x84d   :  { %v3358_v41 = vsel %vm3357_vm8, %v4747_v10, %v3354_v1 }
 0x84e   :  { %v3359_v57 = vmul.f32 %v3358_v41, %v3338_v28  ;;  %v4579_v28 = vld [vmem:[%s6390_s16] ss:$0 sm:$0xff] }
 0x850   :  { %v3363_v45 = vmul.f32 %v4576_v56, %v3359_v57 }
 0x852   :  { %v3367_v42 = vadd.f32 %v4577_v23, %v3363_v45 }
 0x854   :  { %vm3368_vm9 = vcmp.gt.f32.partialorder %v3367_v42, 0.0  ;;  %v3369_v26 = vmul.f32 0.01, %v3367_v42 }
 0x856   :  { %v3370_v8 = vsel %vm3368_vm9, %v3367_v42, %v3369_v26 }
 0x857   :  { %v3387_v12 = vpack.c.bf16 %v3370_v8, %v3370_v8 }
 0x859   :  { %3448 = vmatmul.bf16.vlgmr.msrb.gmra.mxu1 %v3387_v12 }
 0x8d6   :  { %v3449_v4 = vpop.f32.mrf.mxu1 }
 0x8d7   :  { %v3450_v53 = vadd.f32 %v4578_v21, %v3449_v4 }
 0x8d9   :  { %v3456_v25 = vsel %vm3455_vm10, %v3450_v53, 0.0 }
 0x8da   :  { %v3457_v33 = vrot.slane %v3456_v25, 4 }
 0x8dc   :  { %v3458_v61 = vadd.f32 %v3457_v33, %v3456_v25 }
 0x8de   :  { %v3459_v37 = vrot.slane %v3458_v61, 2  ;;  %v3451_v46 = vpop.f32.mrf.mxu1 }
 0x8e0   :  { %v3460_v40 = vadd.f32 %v3459_v37, %v3458_v61 }
 0x8e2   :  { %v3461_v50 = vrot.slane %v3460_v40, 1 }
 0x8e4   :  { %v3462_v62 = vadd.f32 %v3461_v50, %v3460_v40  ;;  %v4582_v40 = vld [vmem:[%s7135_s28] ss:$0 sm:$0xff] }
 0x8e6   :  { %v3463_v35 = vmul.f32 %v3462_v62, %v6318_v54 }
 0x8e8   :  { %v3464_v36 = vsub.f32 %v3450_v53, %v3463_v35 }
 0x8ea   :  { %v3465_v20 = vmul.f32 %v3464_v36, %v3464_v36 }
 0x8ec   :  { %v3466_v63 = vsel %vm3455_vm10, %v3465_v20, 0.0 }
 0x8ed   :  { %v3467_v9 = vrot.slane %v3466_v63, 4 }
 0x8ef   :  { %v3468_v31 = vadd.f32 %v3467_v9, %v3466_v63 }
 0x8f1   :  { %v3469_v7 = vrot.slane %v3468_v31, 2 }
 0x8f3   :  { %v3470_v58 = vadd.f32 %v3469_v7, %v3468_v31 }
 0x8f5   :  { %v3471_v11 = vrot.slane %v3470_v58, 1 }
 0x8f7   :  { %v3472_v18 = vadd.f32 %v3471_v11, %v3470_v58 }
 0x8f9   :  { %v3473_v48 = vmul.f32 %v3472_v18, %v6318_v54 }
 0x8fb   :  { %v3474_v38 = vadd.f32 1e-05, %v3473_v48 }
 0x8fd   :  { %4748 = vrsqrt.f32 %v3474_v38  ;;  %vm3481_vm12 = vweird.f32 %v3474_v38 }
 0x903   :  { %v4749_v30 = vpop.eup %4748 }
 0x904   :  { %v3476_v27 = vmul.f32 %v4749_v30, %v3474_v38  ;;  %vm3482_vm11 = vweird.f32 %v4749_v30 }
 0x905   :  { %vm3483_vm13 = vmor %vm3481_vm12, %vm3482_vm11 }
 0x906   :  { %v3477_v55 = vmul.f32 %v4749_v30, %v3476_v27 }
 0x908   :  { %v3478_v0 = vmul.f32 0.5, %v3477_v55 }
 0x90a   :  { %v3479_v5 = vsub.f32 1.5, %v3478_v0 }
 0x90c   :  { %v3480_v52 = vmul.f32 %v4749_v30, %v3479_v5 }
 0x90e   :  { %v3484_v6 = vsel %vm3483_vm13, %v4749_v30, %v3480_v52 }
 0x90f   :  { %v3485_v43 = vmul.f32 %v3484_v6, %v3464_v36 }
 0x911   :  { %v3489_v13 = vmul.f32 %v4579_v28, %v3485_v43 }
 0x913   :  { %v3493_v44 = vadd.f32 %v4580_v3, %v3489_v13 }
 0x915   :  { %vm3494_vm14 = vcmp.gt.f32.partialorder %v3493_v44, 0.0  ;;  %v3495_v19 = vmul.f32 0.01, %v3493_v44 }
 0x917   :  { %v3496_v14 = vsel %vm3494_vm14, %v3493_v44, %v3495_v19 }
 0x918   :  { %v3505_v16 = vpack.c.bf16 %v3496_v14, %v3496_v14 }
 0x91a   :  { %4376 = vmatmul.msk.bf16.vlgmr.msrb.gmra.mxu2 %vm3534_vm15, %v3505_v16 }
 0x99d   :  { %v3547_v47 = vpop.f32.mrf.mxu2 }
 0x99e   :  { %v3548_v32 = vadd.f32 %v4581_v15, %v3547_v47 }
 0x9a0   :  { %v3554_v34 = vsel %vm3553_vm0, %v3548_v32, 0.0 }
 0x9a1   :  { %v3555_v49 = vrot.slane %v3554_v34, 4 }
 0x9a3   :  { %v3556_v51 = vadd.f32 %v3555_v49, %v3554_v34 }
 0x9a5   :  { %v3557_v10 = vrot.slane %v3556_v51, 2  ;;  %v3549_v60 = vpop.f32.mrf.mxu2 }
 0x9a7   :  { %v3558_v17 = vadd.f32 %v3557_v10, %v3556_v51 }
 0x9a9   :  { %v3559_v39 = vrot.slane %v3558_v17, 1 }
 0x9ab   :  { %v3560_v22 = vadd.f32 %v3559_v39, %v3558_v17 }
 0x9ad   :  { %v3561_v1 = vmul.f32 %v3560_v22, %v6318_v54 }
 0x9af   :  { %v3562_v56 = vsub.f32 %v3548_v32, %v3561_v1 }
 0x9b1   :  { %v3563_v41 = vmul.f32 %v3562_v56, %v3562_v56 }
 0x9b3   :  { %v3564_v57 = vsel %vm3553_vm0, %v3563_v41, 0.0 }
 0x9b4   :  { %v3565_v23 = vrot.slane %v3564_v57, 4 }
 0x9b6   :  { %v3566_v45 = vadd.f32 %v3565_v23, %v3564_v57 }
 0x9b8   :  { %v3567_v42 = vrot.slane %v3566_v45, 2 }
 0x9ba   :  { %v3568_v26 = vadd.f32 %v3567_v42, %v3566_v45 }
 0x9bc   :  { %v3569_v8 = vrot.slane %v3568_v26, 1 }
 0x9be   :  { %v3570_v12 = vadd.f32 %v3569_v8, %v3568_v26 }
 0x9c0   :  { %v3571_v21 = vmul.f32 %v3570_v12, %v6318_v54  ;;  %v4583_v54 = vld [vmem:[%s7136_s2] ss:$0 sm:$0xff] }
 0x9c2   :  { %v3572_v4 = vadd.f32 1e-05, %v3571_v21 }
 0x9c4   :  { %4750 = vrsqrt.f32 %v3572_v4  ;;  %vm3579_vm2 = vweird.f32 %v3572_v4 }
 0x9ca   :  { %v4751_v53 = vpop.eup %4750 }
 0x9cb   :  { %v3574_v25 = vmul.f32 %v4751_v53, %v3572_v4  ;;  %vm3580_vm1 = vweird.f32 %v4751_v53 }
 0x9cc   :  { %vm3581_vm3 = vmor %vm3579_vm2, %vm3580_vm1 }
 0x9cd   :  { %v3575_v33 = vmul.f32 %v4751_v53, %v3574_v25 }
 0x9cf   :  { %v3576_v61 = vmul.f32 0.5, %v3575_v33 }
 0x9d1   :  { %v3577_v37 = vsub.f32 1.5, %v3576_v61 }
 0x9d3   :  { %v3578_v46 = vmul.f32 %v4751_v53, %v3577_v37 }
 0x9d5   :  { %v3582_v50 = vsel %vm3581_vm3, %v4751_v53, %v3578_v46 }
 0x9d6   :  { %v3583_v62 = vmul.f32 %v3582_v50, %v3562_v56 }
 0x9d8   :  { %v3587_v35 = vmul.f32 %v4582_v40, %v3583_v62 }
 0x9da   :  { %v3591_v36 = vadd.f32 %v4583_v54, %v3587_v35 }
 0x9dc   :  { %vm3592_vm4 = vcmp.gt.f32.partialorder %v3591_v36, 0.0  ;;  %v3593_v20 = vmul.f32 0.01, %v3591_v36 }
 0x9de   :  { %v3594_v2 = vsel %vm3592_vm4, %v3591_v36, %v3593_v20 }
 0x9df   :  { %v3595_v63 = vsel %vm3553_vm0, %v3594_v2, -inf }
 0x9e0   :  { %3596 = vmax.xlane.f32.xlu0 %v3595_v63 }
 0xa53   :  { %v3597_v9 = vpop.xlane.xlu0 %3596 }
 0xa54   :  { %v3598_v59 = vsub.f32 %v3594_v2, %v3597_v9 }
 0xa56   :  { %v3599_v31 = vmul.f32 1.442695, %v3598_v59 }
 0xa58   :  { %4752 = vpow2.f32 %v3599_v31 }
 0xa5e   :  { %v4753_v7 = vpop.eup %4752 }
 0xa5f   :  { %v3601_v24 = vsel %vm3553_vm0, %v4753_v7, 0.0 }
 0xa60   :  { %3602 = vadd.xlane.f32.xlu0 %v3601_v24 }
 0xad3   :  { %v3603_v58 = vpop.xlane.xlu0 %3602 }
 0xad4   :  { %4754 = vrcp.f32 %v3603_v58  ;;  %v3615_v48 = vand.u32 2147483648, %v3603_v58  ;;  %v3613_v30 = vand.u32 2147483647, %v3603_v58  ;;  %vm3609_vm6 = vweird.f32 %v3603_v58 }
 0xad6   :  { %v3616_v55 = vor.u32 1.1754944e-38, %v3615_v48  ;;  %vm3614_vm8 = vcmp.eq.f32.partialorder %v3613_v30, 8.507059e+37 }
 0xada   :  { %v4755_v11 = vpop.eup %4754 }
 0xadb   :  { %v3605_v29 = vmul.f32 %v4755_v11, %v3603_v58  ;;  %vm3610_vm5 = vweird.f32 %v4755_v11 }
 0xadc   :  { %vm3611_vm7 = vmor %vm3609_vm6, %vm3610_vm5 }
 0xadd   :  { %v3606_v18 = vsub.f32 1.0, %v3605_v29 }
 0xadf   :  { %v3607_v38 = vmul.f32 %v4755_v11, %v3606_v18 }
 0xae1   :  { %v3608_v27 = vadd.f32 %v4755_v11, %v3607_v38 }
 0xae3   :  { %v3612_v0 = vsel %vm3611_vm7, %v4755_v11, %v3608_v27 }
 0xae4   :  { %v3617_v5 = vsel %vm3614_vm8, %v3616_v55, %v3612_v0 }
 0xae5   :  { %v3618_v52 = vmul.f32 %v4753_v7, %v3617_v5 }
 0xae7   :  { %3619 = vst.msk [vmem:[#allocation14] sm:$0x3] %vm3553_vm0, %v3618_v52 }
 0xae8   :  { %3641 = dma.vmem_to_hbm [thread:$0]  %s3637_s22, 32, %s3639_s13, [#allocation15]  }
 0xae9   :  { %4956 = dma.done.wait [#allocation4], 32  }
 0xaea   :  { %4957 = vsyncadd [#allocation4], 4294967264 }
 0xaeb   :  { %4958 = dma.done.wait [#allocation15], 32  }
 0xaec   :  { %4959 = vsyncadd [#allocation15], 4294967264 }
 0xaed   :  { %3650 = vsyncpa [#allocation3], 1 }
 0xaee   :  { %3651 = vsyncpa [#allocation6], 1 }
 0xaef   :  { %3652 = vsyncpa [#allocation9], 1 }
 0xaf0   :  { %3653 = vsyncpa [#allocation12], 1 }
 0xaf1   :  { %3654 = vsyncpa [#allocation4], 1 }
 0xaf2   :  { %3655 = vsyncpa [#allocation15], 1 }

</bundles_post_ra>
